<compile_context>
chip_gen: v7x
topology: tpu7x:2x2x1
jax: 0.10.0
libtpu: 0.0.40
codegen_flags: <defaults>
</compile_context>

<pallas_src>
import jax
import jax.numpy as jnp
from jax.experimental import pallas as pl
from jax.experimental.pallas import tpu as pltpu


def track_encoder_kernel(x_ref, wih0_ref, b0_ref, wbig_ref, b1_ref,
                         w1_ref, bm1_ref, w2_ref, bm2_ref,
                         out_ref, gin_ref):
    T, B, D = x_ref.shape                # time-major block: (T, B_block, D)
    H4 = wbig_ref.shape[1] // 2          # wbig is (2H, 8H)
    H = H4 // 4

    f32 = jnp.float32
    bf16 = jnp.bfloat16

    # ---- Hoisted layer-0 input projection: ONE MXU matmul for all timesteps,
    # bias folded in, result stored to a VMEM scratch ref (bounded live range;
    # per-step slices are reloaded below -- VMEM loads are nearly free).
    x_all = x_ref[...].reshape(T * B, D)                       # f32
    gin_ref[...] = (jnp.dot(x_all, wih0_ref[...], preferred_element_type=f32)
                    + b0_ref[...])                             # (T*B, 4H) f32

    wbig = wbig_ref[...]                                       # (2H, 8H) bf16
    # Hoisted bias broadcast (JAX does not CSE broadcasts inside loops).
    b1 = jnp.broadcast_to(b1_ref[...], (B, H4)).astype(f32)

    def gate_combine(gates, c):
        # gates: (B, 4H) f32.  H == 128 -> each slice is lane-aligned.
        i = jax.nn.sigmoid(gates[:, 0 * H:1 * H])
        f = jax.nn.sigmoid(gates[:, 1 * H:2 * H])
        g = jnp.tanh(gates[:, 2 * H:3 * H])
        o = jax.nn.sigmoid(gates[:, 3 * H:4 * H])
        c_new = f * c + i * g
        h_new = o * jnp.tanh(c_new)
        return h_new, c_new

    h1 = jnp.zeros((B, H), f32)
    c0 = jnp.zeros((B, H), f32)
    c1 = jnp.zeros((B, H), f32)
    rec0 = jnp.zeros((B, H4), f32)       # h0(t-1) @ Whh0 ; zero at t = 0

    # Fully unrolled recurrence (small static T): ONE fused K=2H matmul/step.
    for t in range(T):
        # Layer 0: precomputed input gates + recurrent term from last step.
        g0 = gin_ref[pl.ds(t * B, B), :] + rec0
        h0, c0 = gate_combine(g0, c0)

        # TODO(synk): nn.LSTM applies dropout(0.2) to h0 between layers only
        # in training mode; eval-mode (no dropout) semantics implemented here.

        # Fused: [h0(t) | h1(t-1)] @ [[Wih1, Whh0], [Whh1, 0]]  -> (B, 8H)
        #   z[:, :4H] = layer-1 gates (pre-bias) for step t
        #   z[:, 4H:] = h0(t) @ Whh0  (layer-0 recurrent term for step t+1)
        cat = jnp.concatenate([h0, h1], axis=1).astype(bf16)    # (B, 2H)
        z = jnp.dot(cat, wbig, preferred_element_type=f32)
        rec0 = z[:, H4:]
        h1, c1 = gate_combine(z[:, :H4] + b1, c1)

    # ---- MLP head on final top-layer hidden state: Linear -> ReLU -> Linear.
    hid = jnp.maximum(
        jnp.dot(h1, w1_ref[...], preferred_element_type=f32) + bm1_ref[...],
        0.0)
    out_ref[...] = (jnp.dot(hid, w2_ref[...], preferred_element_type=f32)
                    + bm2_ref[...])


def track_encoder(x, params, *, max_block=256):
    """x: (B, T, D) float32 (batch_first, like the PyTorch module)."""
    B, T, D = x.shape
    H = params["whh0_t"].shape[0]
    L = params["w2_t"].shape[1]
    H4 = 4 * H

    # ---- Batch blocking: whole (padded) batch in one block when small;
    # otherwise <=256-row blocks, additionally capped so the per-block gin
    # scratch (T*B_block*4H f32) stays small vs v7x's 64 MiB physical VMEM.
    B_pad16 = max(16, ((B + 15) // 16) * 16)            # 16-row packed tiles
    vmem_cap = 8 * 1024 * 1024
    scr_cap = max(16, (vmem_cap // (T * H4 * 4)) // 16 * 16)
    B_block = min(B_pad16, max_block, scr_cap)
    n_blocks = (B_pad16 + B_block - 1) // B_block
    B_pad = n_blocks * B_block

    # Host-side: time-major layout, pad batch; x stays f32 (tiny, D=16).
    x_tm = jnp.transpose(x, (1, 0, 2)).astype(jnp.float32)        # (T, B, D)
    x_tm = jnp.pad(x_tm, ((0, 0), (0, B_pad - B), (0, 0)))

    bf = jnp.bfloat16
    # Pre-stack the fused per-step weight: [[Wih1, Whh0], [Whh1, 0]] (2H, 8H).
    w_big = jnp.concatenate(
        [jnp.concatenate([params["wih1_t"], params["whh0_t"]], axis=1),
         jnp.concatenate([params["whh1_t"],
                          jnp.zeros((H, H4), jnp.float32)], axis=1)],
        axis=0).astype(bf)

    f32 = jnp.float32
    args = (x_tm,
            params["wih0_t"].astype(f32), params["b0"].astype(f32),
            w_big, params["b1"].astype(f32),
            params["w1_t"].astype(f32), params["bm1"].astype(f32),
            params["w2_t"].astype(f32), params["bm2"].astype(f32))

    def full_spec(a):
        nd = a.ndim
        return pl.BlockSpec(a.shape, lambda i, _nd=nd: (0,) * _nd)

    in_specs = ([pl.BlockSpec((T, B_block, D), lambda i: (0, i, 0))]
                + [full_spec(a) for a in args[1:]])
    out_specs = pl.BlockSpec((B_block, L), lambda i: (i, 0))

    out = pl.pallas_call(
        track_encoder_kernel,
        out_shape=jax.ShapeDtypeStruct((B_pad, L), jnp.float32),
        grid=(n_blocks,),
        in_specs=in_specs,
        out_specs=out_specs,
        scratch_shapes=[pltpu.VMEM((T * B_block, H4), jnp.float32)],
        compiler_params=pltpu.CompilerParams(
            dimension_semantics=("parallel",),
            vmem_limit_bytes=32 * 1024 * 1024),
    )(*args)
    return out[:B]


def init_params(key, input_dim, hidden_dim, latent_dim):
    """Deterministic init mirroring PyTorch's uniform(-1/sqrt(H), 1/sqrt(H))."""
    ks = jax.random.split(key, 12)
    H = hidden_dim
    s = 1.0 / float(H) ** 0.5

    def u(k, shape):
        return jax.random.uniform(k, shape, jnp.float32, -s, s)

    wih0 = u(ks[0], (4 * H, input_dim))
    whh0 = u(ks[1], (4 * H, H))
    bih0 = u(ks[2], (4 * H,))
    bhh0 = u(ks[3], (4 * H,))
    wih1 = u(ks[4], (4 * H, H))
    whh1 = u(ks[5], (4 * H, H))
    bih1 = u(ks[6], (4 * H,))
    bhh1 = u(ks[7], (4 * H,))
    w1 = u(ks[8], (H, H))
    b1m = u(ks[9], (H,))
    w2 = u(ks[10], (latent_dim, H))
    b2m = u(ks[11], (latent_dim,))

    return dict(
        wih0_t=wih0.T, whh0_t=whh0.T, b0=(bih0 + bhh0)[None, :],
        wih1_t=wih1.T, whh1_t=whh1.T, b1=(bih1 + bhh1)[None, :],
        w1_t=w1.T, bm1=b1m[None, :],
        w2_t=w2.T, bm2=b2m[None, :],
    )


def reference(x, params):
    """Pure-JAX f32 reference matching PyTorch eval-mode LSTM+MLP semantics."""
    B, T, _ = x.shape
    H = params["whh0_t"].shape[0]

    def cell(x_t, h, c, wih, whh, b):
        g = x_t @ wih + h @ whh + b
        i = jax.nn.sigmoid(g[:, 0:H])
        f = jax.nn.sigmoid(g[:, H:2 * H])
        gg = jnp.tanh(g[:, 2 * H:3 * H])
        o = jax.nn.sigmoid(g[:, 3 * H:4 * H])
        c = f * c + i * gg
        return o * jnp.tanh(c), c

    h0 = c0 = h1 = c1 = jnp.zeros((B, H), jnp.float32)
    for t in range(T):
        h0, c0 = cell(x[:, t], h0, c0, params["wih0_t"], params["whh0_t"], params["b0"])
        h1, c1 = cell(h0, h1, c1, params["wih1_t"], params["whh1_t"], params["b1"])
    hid = jnp.maximum(h1 @ params["w1_t"] + params["bm1"], 0.0)
    return hid @ params["w2_t"] + params["bm2"]


if __name__ == "__main__":
    B, T, D = 2, 8, 16        # batch, sequence length, input_dim
    H, L = 128, 64            # module defaults: hidden_dim=128, latent_dim=64

    key = jax.random.PRNGKey(0)
    kx, kp = jax.random.split(key)
    x = jax.random.normal(kx, (B, T, D), jnp.float32)
    params = init_params(kp, D, H, L)

    out = jax.block_until_ready(track_encoder(x, params))
    ref = reference(x, params)

    assert out.shape == (B, L), out.shape
    # bf16 recurrence operands with f32 accumulation -> relaxed tolerance; the
    # per-step h requantization error compounds with T (fine for small T).
    assert jnp.allclose(out, ref, atol=2e-2, rtol=2e-2), \
        float(jnp.max(jnp.abs(out - ref)))
    print("KERNEL_OK")
</pallas_src>

<mosaic_0001>
module attributes {stable_mosaic.version = 11 : i64} {
  func.func @track_encoder_kernel(%arg0: i32, %arg1: memref<8x16x16xf32, #tpu.memory_space<vmem>>, %arg2: memref<16x512xf32, #tpu.memory_space<vmem>>, %arg3: memref<1x512xf32, #tpu.memory_space<vmem>>, %arg4: memref<256x1024xbf16, #tpu.memory_space<vmem>>, %arg5: memref<1x512xf32, #tpu.memory_space<vmem>>, %arg6: memref<128x128xf32, #tpu.memory_space<vmem>>, %arg7: memref<1x128xf32, #tpu.memory_space<vmem>>, %arg8: memref<128x64xf32, #tpu.memory_space<vmem>>, %arg9: memref<1x64xf32, #tpu.memory_space<vmem>>, %arg10: memref<16x64xf32, #tpu.memory_space<vmem>>, %arg11: memref<128x512xf32, #tpu.memory_space<vmem>>) attributes {dimension_semantics = [#tpu.dimension_semantics<parallel>], iteration_bounds = array<i64: 1>, scalar_prefetch = 0 : i64, scratch_operands = 1 : i64, tpu.core_type = #tpu.core_type<tc>, window_params = [{transform_indices = @transform_0, window_bounds = array<i64: 8, 16, 16>}, {pipeline_mode = #tpu.pipeline_mode<synchronous>, transform_indices = @transform_1, window_bounds = array<i64: 16, 512>}, {pipeline_mode = #tpu.pipeline_mode<synchronous>, transform_indices = @transform_2, window_bounds = array<i64: 1, 512>}, {pipeline_mode = #tpu.pipeline_mode<synchronous>, transform_indices = @transform_3, window_bounds = array<i64: 256, 1024>}, {pipeline_mode = #tpu.pipeline_mode<synchronous>, transform_indices = @transform_4, window_bounds = array<i64: 1, 512>}, {pipeline_mode = #tpu.pipeline_mode<synchronous>, transform_indices = @transform_5, window_bounds = array<i64: 128, 128>}, {pipeline_mode = #tpu.pipeline_mode<synchronous>, transform_indices = @transform_6, window_bounds = array<i64: 1, 128>}, {pipeline_mode = #tpu.pipeline_mode<synchronous>, transform_indices = @transform_7, window_bounds = array<i64: 128, 64>}, {pipeline_mode = #tpu.pipeline_mode<synchronous>, transform_indices = @transform_8, window_bounds = array<i64: 1, 64>}, {transform_indices = @transform_9, window_bounds = array<i64: 16, 64>}]} {
    %c0 = arith.constant 0 : index
    %c0_0 = arith.constant 0 : index
    %c0_1 = arith.constant 0 : index
    %0 = vector.load %arg1[%c0, %c0_0, %c0_1] : memref<8x16x16xf32, #tpu.memory_space<vmem>>, vector<8x16x16xf32>
    %1 = vector.shape_cast %0 : vector<8x16x16xf32> to vector<128x16xf32>
    %c0_2 = arith.constant 0 : index
    %c0_3 = arith.constant 0 : index
    %2 = vector.load %arg2[%c0_2, %c0_3] : memref<16x512xf32, #tpu.memory_space<vmem>>, vector<16x512xf32>
    %cst = arith.constant dense<0.000000e+00> : vector<128x512xf32>
    %3 = tpu.matmul %1, %2, %cst {dimension_numbers = #tpu.dot_dimension_numbers<[1], [0], [0], [1], [0, 0, 1, 1], [], []>} : vector<128x16xf32>, vector<16x512xf32>, vector<128x512xf32> -> vector<128x512xf32>
    %c0_4 = arith.constant 0 : index
    %c0_5 = arith.constant 0 : index
    %4 = vector.load %arg3[%c0_4, %c0_5] : memref<1x512xf32, #tpu.memory_space<vmem>>, vector<1x512xf32>
    %5 = vector.broadcast %4 : vector<1x512xf32> to vector<128x512xf32>
    %6 = arith.addf %3, %5 : vector<128x512xf32>
    %c0_6 = arith.constant 0 : index
    %c0_7 = arith.constant 0 : index
    %7 = vector.load %arg11[%c0_6, %c0_7] : memref<128x512xf32, #tpu.memory_space<vmem>>, vector<128x512xf32>
    tpu.vector_store %arg11[%c0_6, %c0_7], %6 {strides = array<i32>} : memref<128x512xf32, #tpu.memory_space<vmem>>, vector<128x512xf32>,
    %c0_8 = arith.constant 0 : index
    %c0_9 = arith.constant 0 : index
    %8 = vector.load %arg4[%c0_8, %c0_9] : memref<256x1024xbf16, #tpu.memory_space<vmem>>, vector<256x1024xbf16>
    %c0_10 = arith.constant 0 : index
    %c0_11 = arith.constant 0 : index
    %9 = vector.load %arg5[%c0_10, %c0_11] : memref<1x512xf32, #tpu.memory_space<vmem>>, vector<1x512xf32>
    %10 = vector.shape_cast %9 : vector<1x512xf32> to vector<1x512xf32>
    %11 = vector.broadcast %10 : vector<1x512xf32> to vector<16x512xf32>
    %cst_12 = arith.constant 0.000000e+00 : f32
    %12 = vector.broadcast %cst_12 : f32 to vector<16x128xf32>
    %cst_13 = arith.constant 0.000000e+00 : f32
    %13 = vector.broadcast %cst_13 : f32 to vector<16x128xf32>
    %cst_14 = arith.constant 0.000000e+00 : f32
    %14 = vector.broadcast %cst_14 : f32 to vector<16x128xf32>
    %cst_15 = arith.constant 0.000000e+00 : f32
    %15 = vector.broadcast %cst_15 : f32 to vector<16x512xf32>
    %c0_16 = arith.constant 0 : index
    %c0_17 = arith.constant 0 : index
    %16 = vector.load %arg11[%c0_16, %c0_17] : memref<128x512xf32, #tpu.memory_space<vmem>>, vector<16x512xf32>
    %17 = arith.addf %16, %15 : vector<16x512xf32>
    %18 = vector.extract_strided_slice %17 {offsets = [0, 0], sizes = [16, 128], strides = [1, 1]} : vector<16x512xf32> to vector<16x128xf32>
    %19 = arith.negf %18 : vector<16x128xf32>
    %20 = math.exp %19 : vector<16x128xf32>
    %cst_18 = arith.constant 1.000000e+00 : f32
    %21 = vector.broadcast %cst_18 : f32 to vector<16x128xf32>
    %22 = arith.addf %21, %20 : vector<16x128xf32>
    %23 = arith.divf %21, %22 : vector<16x128xf32>
    %24 = vector.extract_strided_slice %17 {offsets = [0, 128], sizes = [16, 128], strides = [1, 1]} : vector<16x512xf32> to vector<16x128xf32>
    %25 = arith.negf %24 : vector<16x128xf32>
    %26 = math.exp %25 : vector<16x128xf32>
    %cst_19 = arith.constant 1.000000e+00 : f32
    %27 = vector.broadcast %cst_19 : f32 to vector<16x128xf32>
    %28 = arith.addf %27, %26 : vector<16x128xf32>
    %29 = arith.divf %27, %28 : vector<16x128xf32>
    %30 = vector.extract_strided_slice %17 {offsets = [0, 256], sizes = [16, 128], strides = [1, 1]} : vector<16x512xf32> to vector<16x128xf32>
    %31 = math.tanh %30 : vector<16x128xf32>
    %32 = vector.extract_strided_slice %17 {offsets = [0, 384], sizes = [16, 128], strides = [1, 1]} : vector<16x512xf32> to vector<16x128xf32>
    %33 = arith.negf %32 : vector<16x128xf32>
    %34 = math.exp %33 : vector<16x128xf32>
    %cst_20 = arith.constant 1.000000e+00 : f32
    %35 = vector.broadcast %cst_20 : f32 to vector<16x128xf32>
    %36 = arith.addf %35, %34 : vector<16x128xf32>
    %37 = arith.divf %35, %36 : vector<16x128xf32>
    %38 = arith.mulf %29, %13 : vector<16x128xf32>
    %39 = arith.mulf %23, %31 : vector<16x128xf32>
    %40 = arith.addf %38, %39 : vector<16x128xf32>
    %41 = math.tanh %40 : vector<16x128xf32>
    %42 = arith.mulf %37, %41 : vector<16x128xf32>
    %43 = tpu.concatenate %42, %12 in 1 : vector<16x128xf32>, vector<16x128xf32> -> vector<16x256xf32>
    %44 = arith.truncf %43 : vector<16x256xf32> to vector<16x256xbf16>
    %cst_21 = arith.constant dense<0.000000e+00> : vector<16x1024xf32>
    %45 = tpu.matmul %44, %8, %cst_21 {dimension_numbers = #tpu.dot_dimension_numbers<[1], [0], [0], [1], [0, 0, 1, 1], [], []>} : vector<16x256xbf16>, vector<256x1024xbf16>, vector<16x1024xf32> -> vector<16x1024xf32>
    %46 = vector.extract_strided_slice %45 {offsets = [0, 512], sizes = [16, 512], strides = [1, 1]} : vector<16x1024xf32> to vector<16x512xf32>
    %47 = vector.extract_strided_slice %45 {offsets = [0, 0], sizes = [16, 512], strides = [1, 1]} : vector<16x1024xf32> to vector<16x512xf32>
    %48 = arith.addf %47, %11 : vector<16x512xf32>
    %49 = vector.extract_strided_slice %48 {offsets = [0, 0], sizes = [16, 128], strides = [1, 1]} : vector<16x512xf32> to vector<16x128xf32>
    %50 = arith.negf %49 : vector<16x128xf32>
    %51 = math.exp %50 : vector<16x128xf32>
    %cst_22 = arith.constant 1.000000e+00 : f32
    %52 = vector.broadcast %cst_22 : f32 to vector<16x128xf32>
    %53 = arith.addf %52, %51 : vector<16x128xf32>
    %54 = arith.divf %52, %53 : vector<16x128xf32>
    %55 = vector.extract_strided_slice %48 {offsets = [0, 128], sizes = [16, 128], strides = [1, 1]} : vector<16x512xf32> to vector<16x128xf32>
    %56 = arith.negf %55 : vector<16x128xf32>
    %57 = math.exp %56 : vector<16x128xf32>
    %cst_23 = arith.constant 1.000000e+00 : f32
    %58 = vector.broadcast %cst_23 : f32 to vector<16x128xf32>
    %59 = arith.addf %58, %57 : vector<16x128xf32>
    %60 = arith.divf %58, %59 : vector<16x128xf32>
    %61 = vector.extract_strided_slice %48 {offsets = [0, 256], sizes = [16, 128], strides = [1, 1]} : vector<16x512xf32> to vector<16x128xf32>
    %62 = math.tanh %61 : vector<16x128xf32>
    %63 = vector.extract_strided_slice %48 {offsets = [0, 384], sizes = [16, 128], strides = [1, 1]} : vector<16x512xf32> to vector<16x128xf32>
    %64 = arith.negf %63 : vector<16x128xf32>
    %65 = math.exp %64 : vector<16x128xf32>
    %cst_24 = arith.constant 1.000000e+00 : f32
    %66 = vector.broadcast %cst_24 : f32 to vector<16x128xf32>
    %67 = arith.addf %66, %65 : vector<16x128xf32>
    %68 = arith.divf %66, %67 : vector<16x128xf32>
    %69 = arith.mulf %60, %14 : vector<16x128xf32>
    %70 = arith.mulf %54, %62 : vector<16x128xf32>
    %71 = arith.addf %69, %70 : vector<16x128xf32>
    %72 = math.tanh %71 : vector<16x128xf32>
    %73 = arith.mulf %68, %72 : vector<16x128xf32>
    %c16 = arith.constant 16 : index
    %c0_25 = arith.constant 0 : index
    %74 = vector.load %arg11[%c16, %c0_25] : memref<128x512xf32, #tpu.memory_space<vmem>>, vector<16x512xf32>
    %75 = arith.addf %74, %46 : vector<16x512xf32>
    %76 = vector.extract_strided_slice %75 {offsets = [0, 0], sizes = [16, 128], strides = [1, 1]} : vector<16x512xf32> to vector<16x128xf32>
    %77 = arith.negf %76 : vector<16x128xf32>
    %78 = math.exp %77 : vector<16x128xf32>
    %cst_26 = arith.constant 1.000000e+00 : f32
    %79 = vector.broadcast %cst_26 : f32 to vector<16x128xf32>
    %80 = arith.addf %79, %78 : vector<16x128xf32>
    %81 = arith.divf %79, %80 : vector<16x128xf32>
    %82 = vector.extract_strided_slice %75 {offsets = [0, 128], sizes = [16, 128], strides = [1, 1]} : vector<16x512xf32> to vector<16x128xf32>
    %83 = arith.negf %82 : vector<16x128xf32>
    %84 = math.exp %83 : vector<16x128xf32>
    %cst_27 = arith.constant 1.000000e+00 : f32
    %85 = vector.broadcast %cst_27 : f32 to vector<16x128xf32>
    %86 = arith.addf %85, %84 : vector<16x128xf32>
    %87 = arith.divf %85, %86 : vector<16x128xf32>
    %88 = vector.extract_strided_slice %75 {offsets = [0, 256], sizes = [16, 128], strides = [1, 1]} : vector<16x512xf32> to vector<16x128xf32>
    %89 = math.tanh %88 : vector<16x128xf32>
    %90 = vector.extract_strided_slice %75 {offsets = [0, 384], sizes = [16, 128], strides = [1, 1]} : vector<16x512xf32> to vector<16x128xf32>
    %91 = arith.negf %90 : vector<16x128xf32>
    %92 = math.exp %91 : vector<16x128xf32>
    %cst_28 = arith.constant 1.000000e+00 : f32
    %93 = vector.broadcast %cst_28 : f32 to vector<16x128xf32>
    %94 = arith.addf %93, %92 : vector<16x128xf32>
    %95 = arith.divf %93, %94 : vector<16x128xf32>
    %96 = arith.mulf %87, %40 : vector<16x128xf32>
    %97 = arith.mulf %81, %89 : vector<16x128xf32>
    %98 = arith.addf %96, %97 : vector<16x128xf32>
    %99 = math.tanh %98 : vector<16x128xf32>
    %100 = arith.mulf %95, %99 : vector<16x128xf32>
    %101 = tpu.concatenate %100, %73 in 1 : vector<16x128xf32>, vector<16x128xf32> -> vector<16x256xf32>
    %102 = arith.truncf %101 : vector<16x256xf32> to vector<16x256xbf16>
    %cst_29 = arith.constant dense<0.000000e+00> : vector<16x1024xf32>
    %103 = tpu.matmul %102, %8, %cst_29 {dimension_numbers = #tpu.dot_dimension_numbers<[1], [0], [0], [1], [0, 0, 1, 1], [], []>} : vector<16x256xbf16>, vector<256x1024xbf16>, vector<16x1024xf32> -> vector<16x1024xf32>
    %104 = vector.extract_strided_slice %103 {offsets = [0, 512], sizes = [16, 512], strides = [1, 1]} : vector<16x1024xf32> to vector<16x512xf32>
    %105 = vector.extract_strided_slice %103 {offsets = [0, 0], sizes = [16, 512], strides = [1, 1]} : vector<16x1024xf32> to vector<16x512xf32>
    %106 = arith.addf %105, %11 : vector<16x512xf32>
    %107 = vector.extract_strided_slice %106 {offsets = [0, 0], sizes = [16, 128], strides = [1, 1]} : vector<16x512xf32> to vector<16x128xf32>
    %108 = arith.negf %107 : vector<16x128xf32>
    %109 = math.exp %108 : vector<16x128xf32>
    %cst_30 = arith.constant 1.000000e+00 : f32
    %110 = vector.broadcast %cst_30 : f32 to vector<16x128xf32>
    %111 = arith.addf %110, %109 : vector<16x128xf32>
    %112 = arith.divf %110, %111 : vector<16x128xf32>
    %113 = vector.extract_strided_slice %106 {offsets = [0, 128], sizes = [16, 128], strides = [1, 1]} : vector<16x512xf32> to vector<16x128xf32>
    %114 = arith.negf %113 : vector<16x128xf32>
    %115 = math.exp %114 : vector<16x128xf32>
    %cst_31 = arith.constant 1.000000e+00 : f32
    %116 = vector.broadcast %cst_31 : f32 to vector<16x128xf32>
    %117 = arith.addf %116, %115 : vector<16x128xf32>
    %118 = arith.divf %116, %117 : vector<16x128xf32>
    %119 = vector.extract_strided_slice %106 {offsets = [0, 256], sizes = [16, 128], strides = [1, 1]} : vector<16x512xf32> to vector<16x128xf32>
    %120 = math.tanh %119 : vector<16x128xf32>
    %121 = vector.extract_strided_slice %106 {offsets = [0, 384], sizes = [16, 128], strides = [1, 1]} : vector<16x512xf32> to vector<16x128xf32>
    %122 = arith.negf %121 : vector<16x128xf32>
    %123 = math.exp %122 : vector<16x128xf32>
    %cst_32 = arith.constant 1.000000e+00 : f32
    %124 = vector.broadcast %cst_32 : f32 to vector<16x128xf32>
    %125 = arith.addf %124, %123 : vector<16x128xf32>
    %126 = arith.divf %124, %125 : vector<16x128xf32>
    %127 = arith.mulf %118, %71 : vector<16x128xf32>
    %128 = arith.mulf %112, %120 : vector<16x128xf32>
    %129 = arith.addf %127, %128 : vector<16x128xf32>
    %130 = math.tanh %129 : vector<16x128xf32>
    %131 = arith.mulf %126, %130 : vector<16x128xf32>
    %c32 = arith.constant 32 : index
    %c0_33 = arith.constant 0 : index
    %132 = vector.load %arg11[%c32, %c0_33] : memref<128x512xf32, #tpu.memory_space<vmem>>, vector<16x512xf32>
    %133 = arith.addf %132, %104 : vector<16x512xf32>
    %134 = vector.extract_strided_slice %133 {offsets = [0, 0], sizes = [16, 128], strides = [1, 1]} : vector<16x512xf32> to vector<16x128xf32>
    %135 = arith.negf %134 : vector<16x128xf32>
    %136 = math.exp %135 : vector<16x128xf32>
    %cst_34 = arith.constant 1.000000e+00 : f32
    %137 = vector.broadcast %cst_34 : f32 to vector<16x128xf32>
    %138 = arith.addf %137, %136 : vector<16x128xf32>
    %139 = arith.divf %137, %138 : vector<16x128xf32>
    %140 = vector.extract_strided_slice %133 {offsets = [0, 128], sizes = [16, 128], strides = [1, 1]} : vector<16x512xf32> to vector<16x128xf32>
    %141 = arith.negf %140 : vector<16x128xf32>
    %142 = math.exp %141 : vector<16x128xf32>
    %cst_35 = arith.constant 1.000000e+00 : f32
    %143 = vector.broadcast %cst_35 : f32 to vector<16x128xf32>
    %144 = arith.addf %143, %142 : vector<16x128xf32>
    %145 = arith.divf %143, %144 : vector<16x128xf32>
    %146 = vector.extract_strided_slice %133 {offsets = [0, 256], sizes = [16, 128], strides = [1, 1]} : vector<16x512xf32> to vector<16x128xf32>
    %147 = math.tanh %146 : vector<16x128xf32>
    %148 = vector.extract_strided_slice %133 {offsets = [0, 384], sizes = [16, 128], strides = [1, 1]} : vector<16x512xf32> to vector<16x128xf32>
    %149 = arith.negf %148 : vector<16x128xf32>
    %150 = math.exp %149 : vector<16x128xf32>
    %cst_36 = arith.constant 1.000000e+00 : f32
    %151 = vector.broadcast %cst_36 : f32 to vector<16x128xf32>
    %152 = arith.addf %151, %150 : vector<16x128xf32>
    %153 = arith.divf %151, %152 : vector<16x128xf32>
    %154 = arith.mulf %145, %98 : vector<16x128xf32>
    %155 = arith.mulf %139, %147 : vector<16x128xf32>
    %156 = arith.addf %154, %155 : vector<16x128xf32>
    %157 = math.tanh %156 : vector<16x128xf32>
    %158 = arith.mulf %153, %157 : vector<16x128xf32>
    %159 = tpu.concatenate %158, %131 in 1 : vector<16x128xf32>, vector<16x128xf32> -> vector<16x256xf32>
    %160 = arith.truncf %159 : vector<16x256xf32> to vector<16x256xbf16>
    %cst_37 = arith.constant dense<0.000000e+00> : vector<16x1024xf32>
    %161 = tpu.matmul %160, %8, %cst_37 {dimension_numbers = #tpu.dot_dimension_numbers<[1], [0], [0], [1], [0, 0, 1, 1], [], []>} : vector<16x256xbf16>, vector<256x1024xbf16>, vector<16x1024xf32> -> vector<16x1024xf32>
    %162 = vector.extract_strided_slice %161 {offsets = [0, 512], sizes = [16, 512], strides = [1, 1]} : vector<16x1024xf32> to vector<16x512xf32>
    %163 = vector.extract_strided_slice %161 {offsets = [0, 0], sizes = [16, 512], strides = [1, 1]} : vector<16x1024xf32> to vector<16x512xf32>
    %164 = arith.addf %163, %11 : vector<16x512xf32>
    %165 = vector.extract_strided_slice %164 {offsets = [0, 0], sizes = [16, 128], strides = [1, 1]} : vector<16x512xf32> to vector<16x128xf32>
    %166 = arith.negf %165 : vector<16x128xf32>
    %167 = math.exp %166 : vector<16x128xf32>
    %cst_38 = arith.constant 1.000000e+00 : f32
    %168 = vector.broadcast %cst_38 : f32 to vector<16x128xf32>
    %169 = arith.addf %168, %167 : vector<16x128xf32>
    %170 = arith.divf %168, %169 : vector<16x128xf32>
    %171 = vector.extract_strided_slice %164 {offsets = [0, 128], sizes = [16, 128], strides = [1, 1]} : vector<16x512xf32> to vector<16x128xf32>
    %172 = arith.negf %171 : vector<16x128xf32>
    %173 = math.exp %172 : vector<16x128xf32>
    %cst_39 = arith.constant 1.000000e+00 : f32
    %174 = vector.broadcast %cst_39 : f32 to vector<16x128xf32>
    %175 = arith.addf %174, %173 : vector<16x128xf32>
    %176 = arith.divf %174, %175 : vector<16x128xf32>
    %177 = vector.extract_strided_slice %164 {offsets = [0, 256], sizes = [16, 128], strides = [1, 1]} : vector<16x512xf32> to vector<16x128xf32>
    %178 = math.tanh %177 : vector<16x128xf32>
    %179 = vector.extract_strided_slice %164 {offsets = [0, 384], sizes = [16, 128], strides = [1, 1]} : vector<16x512xf32> to vector<16x128xf32>
    %180 = arith.negf %179 : vector<16x128xf32>
    %181 = math.exp %180 : vector<16x128xf32>
    %cst_40 = arith.constant 1.000000e+00 : f32
    %182 = vector.broadcast %cst_40 : f32 to vector<16x128xf32>
    %183 = arith.addf %182, %181 : vector<16x128xf32>
    %184 = arith.divf %182, %183 : vector<16x128xf32>
    %185 = arith.mulf %176, %129 : vector<16x128xf32>
    %186 = arith.mulf %170, %178 : vector<16x128xf32>
    %187 = arith.addf %185, %186 : vector<16x128xf32>
    %188 = math.tanh %187 : vector<16x128xf32>
    %189 = arith.mulf %184, %188 : vector<16x128xf32>
    %c48 = arith.constant 48 : index
    %c0_41 = arith.constant 0 : index
    %190 = vector.load %arg11[%c48, %c0_41] : memref<128x512xf32, #tpu.memory_space<vmem>>, vector<16x512xf32>
    %191 = arith.addf %190, %162 : vector<16x512xf32>
    %192 = vector.extract_strided_slice %191 {offsets = [0, 0], sizes = [16, 128], strides = [1, 1]} : vector<16x512xf32> to vector<16x128xf32>
    %193 = arith.negf %192 : vector<16x128xf32>
    %194 = math.exp %193 : vector<16x128xf32>
    %cst_42 = arith.constant 1.000000e+00 : f32
    %195 = vector.broadcast %cst_42 : f32 to vector<16x128xf32>
    %196 = arith.addf %195, %194 : vector<16x128xf32>
    %197 = arith.divf %195, %196 : vector<16x128xf32>
    %198 = vector.extract_strided_slice %191 {offsets = [0, 128], sizes = [16, 128], strides = [1, 1]} : vector<16x512xf32> to vector<16x128xf32>
    %199 = arith.negf %198 : vector<16x128xf32>
    %200 = math.exp %199 : vector<16x128xf32>
    %cst_43 = arith.constant 1.000000e+00 : f32
    %201 = vector.broadcast %cst_43 : f32 to vector<16x128xf32>
    %202 = arith.addf %201, %200 : vector<16x128xf32>
    %203 = arith.divf %201, %202 : vector<16x128xf32>
    %204 = vector.extract_strided_slice %191 {offsets = [0, 256], sizes = [16, 128], strides = [1, 1]} : vector<16x512xf32> to vector<16x128xf32>
    %205 = math.tanh %204 : vector<16x128xf32>
    %206 = vector.extract_strided_slice %191 {offsets = [0, 384], sizes = [16, 128], strides = [1, 1]} : vector<16x512xf32> to vector<16x128xf32>
    %207 = arith.negf %206 : vector<16x128xf32>
    %208 = math.exp %207 : vector<16x128xf32>
    %cst_44 = arith.constant 1.000000e+00 : f32
    %209 = vector.broadcast %cst_44 : f32 to vector<16x128xf32>
    %210 = arith.addf %209, %208 : vector<16x128xf32>
    %211 = arith.divf %209, %210 : vector<16x128xf32>
    %212 = arith.mulf %203, %156 : vector<16x128xf32>
    %213 = arith.mulf %197, %205 : vector<16x128xf32>
    %214 = arith.addf %212, %213 : vector<16x128xf32>
    %215 = math.tanh %214 : vector<16x128xf32>
    %216 = arith.mulf %211, %215 : vector<16x128xf32>
    %217 = tpu.concatenate %216, %189 in 1 : vector<16x128xf32>, vector<16x128xf32> -> vector<16x256xf32>
    %218 = arith.truncf %217 : vector<16x256xf32> to vector<16x256xbf16>
    %cst_45 = arith.constant dense<0.000000e+00> : vector<16x1024xf32>
    %219 = tpu.matmul %218, %8, %cst_45 {dimension_numbers = #tpu.dot_dimension_numbers<[1], [0], [0], [1], [0, 0, 1, 1], [], []>} : vector<16x256xbf16>, vector<256x1024xbf16>, vector<16x1024xf32> -> vector<16x1024xf32>
    %220 = vector.extract_strided_slice %219 {offsets = [0, 512], sizes = [16, 512], strides = [1, 1]} : vector<16x1024xf32> to vector<16x512xf32>
    %221 = vector.extract_strided_slice %219 {offsets = [0, 0], sizes = [16, 512], strides = [1, 1]} : vector<16x1024xf32> to vector<16x512xf32>
    %222 = arith.addf %221, %11 : vector<16x512xf32>
    %223 = vector.extract_strided_slice %222 {offsets = [0, 0], sizes = [16, 128], strides = [1, 1]} : vector<16x512xf32> to vector<16x128xf32>
    %224 = arith.negf %223 : vector<16x128xf32>
    %225 = math.exp %224 : vector<16x128xf32>
    %cst_46 = arith.constant 1.000000e+00 : f32
    %226 = vector.broadcast %cst_46 : f32 to vector<16x128xf32>
    %227 = arith.addf %226, %225 : vector<16x128xf32>
    %228 = arith.divf %226, %227 : vector<16x128xf32>
    %229 = vector.extract_strided_slice %222 {offsets = [0, 128], sizes = [16, 128], strides = [1, 1]} : vector<16x512xf32> to vector<16x128xf32>
    %230 = arith.negf %229 : vector<16x128xf32>
    %231 = math.exp %230 : vector<16x128xf32>
    %cst_47 = arith.constant 1.000000e+00 : f32
    %232 = vector.broadcast %cst_47 : f32 to vector<16x128xf32>
    %233 = arith.addf %232, %231 : vector<16x128xf32>
    %234 = arith.divf %232, %233 : vector<16x128xf32>
    %235 = vector.extract_strided_slice %222 {offsets = [0, 256], sizes = [16, 128], strides = [1, 1]} : vector<16x512xf32> to vector<16x128xf32>
    %236 = math.tanh %235 : vector<16x128xf32>
    %237 = vector.extract_strided_slice %222 {offsets = [0, 384], sizes = [16, 128], strides = [1, 1]} : vector<16x512xf32> to vector<16x128xf32>
    %238 = arith.negf %237 : vector<16x128xf32>
    %239 = math.exp %238 : vector<16x128xf32>
    %cst_48 = arith.constant 1.000000e+00 : f32
    %240 = vector.broadcast %cst_48 : f32 to vector<16x128xf32>
    %241 = arith.addf %240, %239 : vector<16x128xf32>
    %242 = arith.divf %240, %241 : vector<16x128xf32>
    %243 = arith.mulf %234, %187 : vector<16x128xf32>
    %244 = arith.mulf %228, %236 : vector<16x128xf32>
    %245 = arith.addf %243, %244 : vector<16x128xf32>
    %246 = math.tanh %245 : vector<16x128xf32>
    %247 = arith.mulf %242, %246 : vector<16x128xf32>
    %c64 = arith.constant 64 : index
    %c0_49 = arith.constant 0 : index
    %248 = vector.load %arg11[%c64, %c0_49] : memref<128x512xf32, #tpu.memory_space<vmem>>, vector<16x512xf32>
    %249 = arith.addf %248, %220 : vector<16x512xf32>
    %250 = vector.extract_strided_slice %249 {offsets = [0, 0], sizes = [16, 128], strides = [1, 1]} : vector<16x512xf32> to vector<16x128xf32>
    %251 = arith.negf %250 : vector<16x128xf32>
    %252 = math.exp %251 : vector<16x128xf32>
    %cst_50 = arith.constant 1.000000e+00 : f32
    %253 = vector.broadcast %cst_50 : f32 to vector<16x128xf32>
    %254 = arith.addf %253, %252 : vector<16x128xf32>
    %255 = arith.divf %253, %254 : vector<16x128xf32>
    %256 = vector.extract_strided_slice %249 {offsets = [0, 128], sizes = [16, 128], strides = [1, 1]} : vector<16x512xf32> to vector<16x128xf32>
    %257 = arith.negf %256 : vector<16x128xf32>
    %258 = math.exp %257 : vector<16x128xf32>
    %cst_51 = arith.constant 1.000000e+00 : f32
    %259 = vector.broadcast %cst_51 : f32 to vector<16x128xf32>
    %260 = arith.addf %259, %258 : vector<16x128xf32>
    %261 = arith.divf %259, %260 : vector<16x128xf32>
    %262 = vector.extract_strided_slice %249 {offsets = [0, 256], sizes = [16, 128], strides = [1, 1]} : vector<16x512xf32> to vector<16x128xf32>
    %263 = math.tanh %262 : vector<16x128xf32>
    %264 = vector.extract_strided_slice %249 {offsets = [0, 384], sizes = [16, 128], strides = [1, 1]} : vector<16x512xf32> to vector<16x128xf32>
    %265 = arith.negf %264 : vector<16x128xf32>
    %266 = math.exp %265 : vector<16x128xf32>
    %cst_52 = arith.constant 1.000000e+00 : f32
    %267 = vector.broadcast %cst_52 : f32 to vector<16x128xf32>
    %268 = arith.addf %267, %266 : vector<16x128xf32>
    %269 = arith.divf %267, %268 : vector<16x128xf32>
    %270 = arith.mulf %261, %214 : vector<16x128xf32>
    %271 = arith.mulf %255, %263 : vector<16x128xf32>
    %272 = arith.addf %270, %271 : vector<16x128xf32>
    %273 = math.tanh %272 : vector<16x128xf32>
    %274 = arith.mulf %269, %273 : vector<16x128xf32>
    %275 = tpu.concatenate %274, %247 in 1 : vector<16x128xf32>, vector<16x128xf32> -> vector<16x256xf32>
    %276 = arith.truncf %275 : vector<16x256xf32> to vector<16x256xbf16>
    %cst_53 = arith.constant dense<0.000000e+00> : vector<16x1024xf32>
    %277 = tpu.matmul %276, %8, %cst_53 {dimension_numbers = #tpu.dot_dimension_numbers<[1], [0], [0], [1], [0, 0, 1, 1], [], []>} : vector<16x256xbf16>, vector<256x1024xbf16>, vector<16x1024xf32> -> vector<16x1024xf32>
    %278 = vector.extract_strided_slice %277 {offsets = [0, 512], sizes = [16, 512], strides = [1, 1]} : vector<16x1024xf32> to vector<16x512xf32>
    %279 = vector.extract_strided_slice %277 {offsets = [0, 0], sizes = [16, 512], strides = [1, 1]} : vector<16x1024xf32> to vector<16x512xf32>
    %280 = arith.addf %279, %11 : vector<16x512xf32>
    %281 = vector.extract_strided_slice %280 {offsets = [0, 0], sizes = [16, 128], strides = [1, 1]} : vector<16x512xf32> to vector<16x128xf32>
    %282 = arith.negf %281 : vector<16x128xf32>
    %283 = math.exp %282 : vector<16x128xf32>
    %cst_54 = arith.constant 1.000000e+00 : f32
    %284 = vector.broadcast %cst_54 : f32 to vector<16x128xf32>
    %285 = arith.addf %284, %283 : vector<16x128xf32>
    %286 = arith.divf %284, %285 : vector<16x128xf32>
    %287 = vector.extract_strided_slice %280 {offsets = [0, 128], sizes = [16, 128], strides = [1, 1]} : vector<16x512xf32> to vector<16x128xf32>
    %288 = arith.negf %287 : vector<16x128xf32>
    %289 = math.exp %288 : vector<16x128xf32>
    %cst_55 = arith.constant 1.000000e+00 : f32
    %290 = vector.broadcast %cst_55 : f32 to vector<16x128xf32>
    %291 = arith.addf %290, %289 : vector<16x128xf32>
    %292 = arith.divf %290, %291 : vector<16x128xf32>
    %293 = vector.extract_strided_slice %280 {offsets = [0, 256], sizes = [16, 128], strides = [1, 1]} : vector<16x512xf32> to vector<16x128xf32>
    %294 = math.tanh %293 : vector<16x128xf32>
    %295 = vector.extract_strided_slice %280 {offsets = [0, 384], sizes = [16, 128], strides = [1, 1]} : vector<16x512xf32> to vector<16x128xf32>
    %296 = arith.negf %295 : vector<16x128xf32>
    %297 = math.exp %296 : vector<16x128xf32>
    %cst_56 = arith.constant 1.000000e+00 : f32
    %298 = vector.broadcast %cst_56 : f32 to vector<16x128xf32>
    %299 = arith.addf %298, %297 : vector<16x128xf32>
    %300 = arith.divf %298, %299 : vector<16x128xf32>
    %301 = arith.mulf %292, %245 : vector<16x128xf32>
    %302 = arith.mulf %286, %294 : vector<16x128xf32>
    %303 = arith.addf %301, %302 : vector<16x128xf32>
    %304 = math.tanh %303 : vector<16x128xf32>
    %305 = arith.mulf %300, %304 : vector<16x128xf32>
    %c80 = arith.constant 80 : index
    %c0_57 = arith.constant 0 : index
    %306 = vector.load %arg11[%c80, %c0_57] : memref<128x512xf32, #tpu.memory_space<vmem>>, vector<16x512xf32>
    %307 = arith.addf %306, %278 : vector<16x512xf32>
    %308 = vector.extract_strided_slice %307 {offsets = [0, 0], sizes = [16, 128], strides = [1, 1]} : vector<16x512xf32> to vector<16x128xf32>
    %309 = arith.negf %308 : vector<16x128xf32>
    %310 = math.exp %309 : vector<16x128xf32>
    %cst_58 = arith.constant 1.000000e+00 : f32
    %311 = vector.broadcast %cst_58 : f32 to vector<16x128xf32>
    %312 = arith.addf %311, %310 : vector<16x128xf32>
    %313 = arith.divf %311, %312 : vector<16x128xf32>
    %314 = vector.extract_strided_slice %307 {offsets = [0, 128], sizes = [16, 128], strides = [1, 1]} : vector<16x512xf32> to vector<16x128xf32>
    %315 = arith.negf %314 : vector<16x128xf32>
    %316 = math.exp %315 : vector<16x128xf32>
    %cst_59 = arith.constant 1.000000e+00 : f32
    %317 = vector.broadcast %cst_59 : f32 to vector<16x128xf32>
    %318 = arith.addf %317, %316 : vector<16x128xf32>
    %319 = arith.divf %317, %318 : vector<16x128xf32>
    %320 = vector.extract_strided_slice %307 {offsets = [0, 256], sizes = [16, 128], strides = [1, 1]} : vector<16x512xf32> to vector<16x128xf32>
    %321 = math.tanh %320 : vector<16x128xf32>
    %322 = vector.extract_strided_slice %307 {offsets = [0, 384], sizes = [16, 128], strides = [1, 1]} : vector<16x512xf32> to vector<16x128xf32>
    %323 = arith.negf %322 : vector<16x128xf32>
    %324 = math.exp %323 : vector<16x128xf32>
    %cst_60 = arith.constant 1.000000e+00 : f32
    %325 = vector.broadcast %cst_60 : f32 to vector<16x128xf32>
    %326 = arith.addf %325, %324 : vector<16x128xf32>
    %327 = arith.divf %325, %326 : vector<16x128xf32>
    %328 = arith.mulf %319, %272 : vector<16x128xf32>
    %329 = arith.mulf %313, %321 : vector<16x128xf32>
    %330 = arith.addf %328, %329 : vector<16x128xf32>
    %331 = math.tanh %330 : vector<16x128xf32>
    %332 = arith.mulf %327, %331 : vector<16x128xf32>
    %333 = tpu.concatenate %332, %305 in 1 : vector<16x128xf32>, vector<16x128xf32> -> vector<16x256xf32>
    %334 = arith.truncf %333 : vector<16x256xf32> to vector<16x256xbf16>
    %cst_61 = arith.constant dense<0.000000e+00> : vector<16x1024xf32>
    %335 = tpu.matmul %334, %8, %cst_61 {dimension_numbers = #tpu.dot_dimension_numbers<[1], [0], [0], [1], [0, 0, 1, 1], [], []>} : vector<16x256xbf16>, vector<256x1024xbf16>, vector<16x1024xf32> -> vector<16x1024xf32>
    %336 = vector.extract_strided_slice %335 {offsets = [0, 512], sizes = [16, 512], strides = [1, 1]} : vector<16x1024xf32> to vector<16x512xf32>
    %337 = vector.extract_strided_slice %335 {offsets = [0, 0], sizes = [16, 512], strides = [1, 1]} : vector<16x1024xf32> to vector<16x512xf32>
    %338 = arith.addf %337, %11 : vector<16x512xf32>
    %339 = vector.extract_strided_slice %338 {offsets = [0, 0], sizes = [16, 128], strides = [1, 1]} : vector<16x512xf32> to vector<16x128xf32>
    %340 = arith.negf %339 : vector<16x128xf32>
    %341 = math.exp %340 : vector<16x128xf32>
    %cst_62 = arith.constant 1.000000e+00 : f32
    %342 = vector.broadcast %cst_62 : f32 to vector<16x128xf32>
    %343 = arith.addf %342, %341 : vector<16x128xf32>
    %344 = arith.divf %342, %343 : vector<16x128xf32>
    %345 = vector.extract_strided_slice %338 {offsets = [0, 128], sizes = [16, 128], strides = [1, 1]} : vector<16x512xf32> to vector<16x128xf32>
    %346 = arith.negf %345 : vector<16x128xf32>
    %347 = math.exp %346 : vector<16x128xf32>
    %cst_63 = arith.constant 1.000000e+00 : f32
    %348 = vector.broadcast %cst_63 : f32 to vector<16x128xf32>
    %349 = arith.addf %348, %347 : vector<16x128xf32>
    %350 = arith.divf %348, %349 : vector<16x128xf32>
    %351 = vector.extract_strided_slice %338 {offsets = [0, 256], sizes = [16, 128], strides = [1, 1]} : vector<16x512xf32> to vector<16x128xf32>
    %352 = math.tanh %351 : vector<16x128xf32>
    %353 = vector.extract_strided_slice %338 {offsets = [0, 384], sizes = [16, 128], strides = [1, 1]} : vector<16x512xf32> to vector<16x128xf32>
    %354 = arith.negf %353 : vector<16x128xf32>
    %355 = math.exp %354 : vector<16x128xf32>
    %cst_64 = arith.constant 1.000000e+00 : f32
    %356 = vector.broadcast %cst_64 : f32 to vector<16x128xf32>
    %357 = arith.addf %356, %355 : vector<16x128xf32>
    %358 = arith.divf %356, %357 : vector<16x128xf32>
    %359 = arith.mulf %350, %303 : vector<16x128xf32>
    %360 = arith.mulf %344, %352 : vector<16x128xf32>
    %361 = arith.addf %359, %360 : vector<16x128xf32>
    %362 = math.tanh %361 : vector<16x128xf32>
    %363 = arith.mulf %358, %362 : vector<16x128xf32>
    %c96 = arith.constant 96 : index
    %c0_65 = arith.constant 0 : index
    %364 = vector.load %arg11[%c96, %c0_65] : memref<128x512xf32, #tpu.memory_space<vmem>>, vector<16x512xf32>
    %365 = arith.addf %364, %336 : vector<16x512xf32>
    %366 = vector.extract_strided_slice %365 {offsets = [0, 0], sizes = [16, 128], strides = [1, 1]} : vector<16x512xf32> to vector<16x128xf32>
    %367 = arith.negf %366 : vector<16x128xf32>
    %368 = math.exp %367 : vector<16x128xf32>
    %cst_66 = arith.constant 1.000000e+00 : f32
    %369 = vector.broadcast %cst_66 : f32 to vector<16x128xf32>
    %370 = arith.addf %369, %368 : vector<16x128xf32>
    %371 = arith.divf %369, %370 : vector<16x128xf32>
    %372 = vector.extract_strided_slice %365 {offsets = [0, 128], sizes = [16, 128], strides = [1, 1]} : vector<16x512xf32> to vector<16x128xf32>
    %373 = arith.negf %372 : vector<16x128xf32>
    %374 = math.exp %373 : vector<16x128xf32>
    %cst_67 = arith.constant 1.000000e+00 : f32
    %375 = vector.broadcast %cst_67 : f32 to vector<16x128xf32>
    %376 = arith.addf %375, %374 : vector<16x128xf32>
    %377 = arith.divf %375, %376 : vector<16x128xf32>
    %378 = vector.extract_strided_slice %365 {offsets = [0, 256], sizes = [16, 128], strides = [1, 1]} : vector<16x512xf32> to vector<16x128xf32>
    %379 = math.tanh %378 : vector<16x128xf32>
    %380 = vector.extract_strided_slice %365 {offsets = [0, 384], sizes = [16, 128], strides = [1, 1]} : vector<16x512xf32> to vector<16x128xf32>
    %381 = arith.negf %380 : vector<16x128xf32>
    %382 = math.exp %381 : vector<16x128xf32>
    %cst_68 = arith.constant 1.000000e+00 : f32
    %383 = vector.broadcast %cst_68 : f32 to vector<16x128xf32>
    %384 = arith.addf %383, %382 : vector<16x128xf32>
    %385 = arith.divf %383, %384 : vector<16x128xf32>
    %386 = arith.mulf %377, %330 : vector<16x128xf32>
    %387 = arith.mulf %371, %379 : vector<16x128xf32>
    %388 = arith.addf %386, %387 : vector<16x128xf32>
    %389 = math.tanh %388 : vector<16x128xf32>
    %390 = arith.mulf %385, %389 : vector<16x128xf32>
    %391 = tpu.concatenate %390, %363 in 1 : vector<16x128xf32>, vector<16x128xf32> -> vector<16x256xf32>
    %392 = arith.truncf %391 : vector<16x256xf32> to vector<16x256xbf16>
    %cst_69 = arith.constant dense<0.000000e+00> : vector<16x1024xf32>
    %393 = tpu.matmul %392, %8, %cst_69 {dimension_numbers = #tpu.dot_dimension_numbers<[1], [0], [0], [1], [0, 0, 1, 1], [], []>} : vector<16x256xbf16>, vector<256x1024xbf16>, vector<16x1024xf32> -> vector<16x1024xf32>
    %394 = vector.extract_strided_slice %393 {offsets = [0, 512], sizes = [16, 512], strides = [1, 1]} : vector<16x1024xf32> to vector<16x512xf32>
    %395 = vector.extract_strided_slice %393 {offsets = [0, 0], sizes = [16, 512], strides = [1, 1]} : vector<16x1024xf32> to vector<16x512xf32>
    %396 = arith.addf %395, %11 : vector<16x512xf32>
    %397 = vector.extract_strided_slice %396 {offsets = [0, 0], sizes = [16, 128], strides = [1, 1]} : vector<16x512xf32> to vector<16x128xf32>
    %398 = arith.negf %397 : vector<16x128xf32>
    %399 = math.exp %398 : vector<16x128xf32>
    %cst_70 = arith.constant 1.000000e+00 : f32
    %400 = vector.broadcast %cst_70 : f32 to vector<16x128xf32>
    %401 = arith.addf %400, %399 : vector<16x128xf32>
    %402 = arith.divf %400, %401 : vector<16x128xf32>
    %403 = vector.extract_strided_slice %396 {offsets = [0, 128], sizes = [16, 128], strides = [1, 1]} : vector<16x512xf32> to vector<16x128xf32>
    %404 = arith.negf %403 : vector<16x128xf32>
    %405 = math.exp %404 : vector<16x128xf32>
    %cst_71 = arith.constant 1.000000e+00 : f32
    %406 = vector.broadcast %cst_71 : f32 to vector<16x128xf32>
    %407 = arith.addf %406, %405 : vector<16x128xf32>
    %408 = arith.divf %406, %407 : vector<16x128xf32>
    %409 = vector.extract_strided_slice %396 {offsets = [0, 256], sizes = [16, 128], strides = [1, 1]} : vector<16x512xf32> to vector<16x128xf32>
    %410 = math.tanh %409 : vector<16x128xf32>
    %411 = vector.extract_strided_slice %396 {offsets = [0, 384], sizes = [16, 128], strides = [1, 1]} : vector<16x512xf32> to vector<16x128xf32>
    %412 = arith.negf %411 : vector<16x128xf32>
    %413 = math.exp %412 : vector<16x128xf32>
    %cst_72 = arith.constant 1.000000e+00 : f32
    %414 = vector.broadcast %cst_72 : f32 to vector<16x128xf32>
    %415 = arith.addf %414, %413 : vector<16x128xf32>
    %416 = arith.divf %414, %415 : vector<16x128xf32>
    %417 = arith.mulf %408, %361 : vector<16x128xf32>
    %418 = arith.mulf %402, %410 : vector<16x128xf32>
    %419 = arith.addf %417, %418 : vector<16x128xf32>
    %420 = math.tanh %419 : vector<16x128xf32>
    %421 = arith.mulf %416, %420 : vector<16x128xf32>
    %c112 = arith.constant 112 : index
    %c0_73 = arith.constant 0 : index
    %422 = vector.load %arg11[%c112, %c0_73] : memref<128x512xf32, #tpu.memory_space<vmem>>, vector<16x512xf32>
    %423 = arith.addf %422, %394 : vector<16x512xf32>
    %424 = vector.extract_strided_slice %423 {offsets = [0, 0], sizes = [16, 128], strides = [1, 1]} : vector<16x512xf32> to vector<16x128xf32>
    %425 = arith.negf %424 : vector<16x128xf32>
    %426 = math.exp %425 : vector<16x128xf32>
    %cst_74 = arith.constant 1.000000e+00 : f32
    %427 = vector.broadcast %cst_74 : f32 to vector<16x128xf32>
    %428 = arith.addf %427, %426 : vector<16x128xf32>
    %429 = arith.divf %427, %428 : vector<16x128xf32>
    %430 = vector.extract_strided_slice %423 {offsets = [0, 128], sizes = [16, 128], strides = [1, 1]} : vector<16x512xf32> to vector<16x128xf32>
    %431 = arith.negf %430 : vector<16x128xf32>
    %432 = math.exp %431 : vector<16x128xf32>
    %cst_75 = arith.constant 1.000000e+00 : f32
    %433 = vector.broadcast %cst_75 : f32 to vector<16x128xf32>
    %434 = arith.addf %433, %432 : vector<16x128xf32>
    %435 = arith.divf %433, %434 : vector<16x128xf32>
    %436 = vector.extract_strided_slice %423 {offsets = [0, 256], sizes = [16, 128], strides = [1, 1]} : vector<16x512xf32> to vector<16x128xf32>
    %437 = math.tanh %436 : vector<16x128xf32>
    %438 = vector.extract_strided_slice %423 {offsets = [0, 384], sizes = [16, 128], strides = [1, 1]} : vector<16x512xf32> to vector<16x128xf32>
    %439 = arith.negf %438 : vector<16x128xf32>
    %440 = math.exp %439 : vector<16x128xf32>
    %cst_76 = arith.constant 1.000000e+00 : f32
    %441 = vector.broadcast %cst_76 : f32 to vector<16x128xf32>
    %442 = arith.addf %441, %440 : vector<16x128xf32>
    %443 = arith.divf %441, %442 : vector<16x128xf32>
    %444 = arith.mulf %435, %388 : vector<16x128xf32>
    %445 = arith.mulf %429, %437 : vector<16x128xf32>
    %446 = arith.addf %444, %445 : vector<16x128xf32>
    %447 = math.tanh %446 : vector<16x128xf32>
    %448 = arith.mulf %443, %447 : vector<16x128xf32>
    %449 = tpu.concatenate %448, %421 in 1 : vector<16x128xf32>, vector<16x128xf32> -> vector<16x256xf32>
    %450 = arith.truncf %449 : vector<16x256xf32> to vector<16x256xbf16>
    %cst_77 = arith.constant dense<0.000000e+00> : vector<16x1024xf32>
    %451 = tpu.matmul %450, %8, %cst_77 {dimension_numbers = #tpu.dot_dimension_numbers<[1], [0], [0], [1], [0, 0, 1, 1], [], []>} : vector<16x256xbf16>, vector<256x1024xbf16>, vector<16x1024xf32> -> vector<16x1024xf32>
    %452 = vector.extract_strided_slice %451 {offsets = [0, 0], sizes = [16, 512], strides = [1, 1]} : vector<16x1024xf32> to vector<16x512xf32>
    %453 = arith.addf %452, %11 : vector<16x512xf32>
    %454 = vector.extract_strided_slice %453 {offsets = [0, 0], sizes = [16, 128], strides = [1, 1]} : vector<16x512xf32> to vector<16x128xf32>
    %455 = arith.negf %454 : vector<16x128xf32>
    %456 = math.exp %455 : vector<16x128xf32>
    %cst_78 = arith.constant 1.000000e+00 : f32
    %457 = vector.broadcast %cst_78 : f32 to vector<16x128xf32>
    %458 = arith.addf %457, %456 : vector<16x128xf32>
    %459 = arith.divf %457, %458 : vector<16x128xf32>
    %460 = vector.extract_strided_slice %453 {offsets = [0, 128], sizes = [16, 128], strides = [1, 1]} : vector<16x512xf32> to vector<16x128xf32>
    %461 = arith.negf %460 : vector<16x128xf32>
    %462 = math.exp %461 : vector<16x128xf32>
    %cst_79 = arith.constant 1.000000e+00 : f32
    %463 = vector.broadcast %cst_79 : f32 to vector<16x128xf32>
    %464 = arith.addf %463, %462 : vector<16x128xf32>
    %465 = arith.divf %463, %464 : vector<16x128xf32>
    %466 = vector.extract_strided_slice %453 {offsets = [0, 256], sizes = [16, 128], strides = [1, 1]} : vector<16x512xf32> to vector<16x128xf32>
    %467 = math.tanh %466 : vector<16x128xf32>
    %468 = vector.extract_strided_slice %453 {offsets = [0, 384], sizes = [16, 128], strides = [1, 1]} : vector<16x512xf32> to vector<16x128xf32>
    %469 = arith.negf %468 : vector<16x128xf32>
    %470 = math.exp %469 : vector<16x128xf32>
    %cst_80 = arith.constant 1.000000e+00 : f32
    %471 = vector.broadcast %cst_80 : f32 to vector<16x128xf32>
    %472 = arith.addf %471, %470 : vector<16x128xf32>
    %473 = arith.divf %471, %472 : vector<16x128xf32>
    %474 = arith.mulf %465, %419 : vector<16x128xf32>
    %475 = arith.mulf %459, %467 : vector<16x128xf32>
    %476 = arith.addf %474, %475 : vector<16x128xf32>
    %477 = math.tanh %476 : vector<16x128xf32>
    %478 = arith.mulf %473, %477 : vector<16x128xf32>
    %c0_81 = arith.constant 0 : index
    %c0_82 = arith.constant 0 : index
    %479 = vector.load %arg6[%c0_81, %c0_82] : memref<128x128xf32, #tpu.memory_space<vmem>>, vector<128x128xf32>
    %cst_83 = arith.constant dense<0.000000e+00> : vector<16x128xf32>
    %480 = tpu.matmul %478, %479, %cst_83 {dimension_numbers = #tpu.dot_dimension_numbers<[1], [0], [0], [1], [0, 0, 1, 1], [], []>} : vector<16x128xf32>, vector<128x128xf32>, vector<16x128xf32> -> vector<16x128xf32>
    %c0_84 = arith.constant 0 : index
    %c0_85 = arith.constant 0 : index
    %481 = vector.load %arg7[%c0_84, %c0_85] : memref<1x128xf32, #tpu.memory_space<vmem>>, vector<1x128xf32>
    %482 = vector.broadcast %481 : vector<1x128xf32> to vector<16x128xf32>
    %483 = arith.addf %480, %482 : vector<16x128xf32>
    %cst_86 = arith.constant 0.000000e+00 : f32
    %484 = vector.broadcast %cst_86 : f32 to vector<16x128xf32>
    %485 = arith.maximumf %483, %484 : vector<16x128xf32>
    %c0_87 = arith.constant 0 : index
    %c0_88 = arith.constant 0 : index
    %486 = vector.load %arg8[%c0_87, %c0_88] : memref<128x64xf32, #tpu.memory_space<vmem>>, vector<128x64xf32>
    %cst_89 = arith.constant dense<0.000000e+00> : vector<16x64xf32>
    %487 = tpu.matmul %485, %486, %cst_89 {dimension_numbers = #tpu.dot_dimension_numbers<[1], [0], [0], [1], [0, 0, 1, 1], [], []>} : vector<16x128xf32>, vector<128x64xf32>, vector<16x64xf32> -> vector<16x64xf32>
    %c0_90 = arith.constant 0 : index
    %c0_91 = arith.constant 0 : index
    %488 = vector.load %arg9[%c0_90, %c0_91] : memref<1x64xf32, #tpu.memory_space<vmem>>, vector<1x64xf32>
    %489 = vector.broadcast %488 : vector<1x64xf32> to vector<16x64xf32>
    %490 = arith.addf %487, %489 : vector<16x64xf32>
    %c0_92 = arith.constant 0 : index
    %c0_93 = arith.constant 0 : index
    %491 = vector.load %arg10[%c0_92, %c0_93] : memref<16x64xf32, #tpu.memory_space<vmem>>, vector<16x64xf32>
    tpu.vector_store %arg10[%c0_92, %c0_93], %490 {strides = array<i32>} : memref<16x64xf32, #tpu.memory_space<vmem>>, vector<16x64xf32>,
    return
  }
  func.func @transform_0(%arg0: i32) -> (i32, i32, i32) {
    %c0_i32 = arith.constant 0 : i32
    %c0_i32_0 = arith.constant 0 : i32
    %c0_i32_1 = arith.constant 0 : i32
    return %c0_i32, %arg0, %c0_i32_0 : i32, i32, i32
  }
  func.func @transform_1(%arg0: i32) -> (i32, i32) {
    %c0_i32 = arith.constant 0 : i32
    %c0_i32_0 = arith.constant 0 : i32
    %c0_i32_1 = arith.constant 0 : i32
    return %c0_i32, %c0_i32_0 : i32, i32
  }
  func.func @transform_2(%arg0: i32) -> (i32, i32) {
    %c0_i32 = arith.constant 0 : i32
    %c0_i32_0 = arith.constant 0 : i32
    %c0_i32_1 = arith.constant 0 : i32
    return %c0_i32, %c0_i32_0 : i32, i32
  }
  func.func @transform_3(%arg0: i32) -> (i32, i32) {
    %c0_i32 = arith.constant 0 : i32
    %c0_i32_0 = arith.constant 0 : i32
    %c0_i32_1 = arith.constant 0 : i32
    return %c0_i32, %c0_i32_0 : i32, i32
  }
  func.func @transform_4(%arg0: i32) -> (i32, i32) {
    %c0_i32 = arith.constant 0 : i32
    %c0_i32_0 = arith.constant 0 : i32
    %c0_i32_1 = arith.constant 0 : i32
    return %c0_i32, %c0_i32_0 : i32, i32
  }
  func.func @transform_5(%arg0: i32) -> (i32, i32) {
    %c0_i32 = arith.constant 0 : i32
    %c0_i32_0 = arith.constant 0 : i32
    %c0_i32_1 = arith.constant 0 : i32
    return %c0_i32, %c0_i32_0 : i32, i32
  }
  func.func @transform_6(%arg0: i32) -> (i32, i32) {
    %c0_i32 = arith.constant 0 : i32
    %c0_i32_0 = arith.constant 0 : i32
    %c0_i32_1 = arith.constant 0 : i32
    return %c0_i32, %c0_i32_0 : i32, i32
  }
  func.func @transform_7(%arg0: i32) -> (i32, i32) {
    %c0_i32 = arith.constant 0 : i32
    %c0_i32_0 = arith.constant 0 : i32
    %c0_i32_1 = arith.constant 0 : i32
    return %c0_i32, %c0_i32_0 : i32, i32
  }
  func.func @transform_8(%arg0: i32) -> (i32, i32) {
    %c0_i32 = arith.constant 0 : i32
    %c0_i32_0 = arith.constant 0 : i32
    %c0_i32_1 = arith.constant 0 : i32
    return %c0_i32, %c0_i32_0 : i32, i32
  }
  func.func @transform_9(%arg0: i32) -> (i32, i32) {
    %c0_i32 = arith.constant 0 : i32
    %c0_i32_0 = arith.constant 0 : i32
    return %arg0, %c0_i32 : i32, i32
  }
}

</mosaic_0001>

<bundles_post_ra>
// kernel: tpu_custom_call.1
= control target key start
LH: loop header
LB: loop body
LE: loop exit
PB: predicated region body
PF: predicated region fallthrough
CT: control target
= control target key end

     0   :  { %14 = vsyncpa [#allocation4], 0  ;;  %s6887_s0 = inlined_call_operand.vmem [shape: f32[8,16,16], index: 0, kind: input, shape index: {}]   ;;  %s6888_s1 = inlined_call_operand.vmem [shape: f32[16,512], index: 1, kind: input, shape index: {}]   ;;  %s6889_s2 = inlined_call_operand.vmem [shape: f32[1,512], index: 2, kind: input, shape index: {}]   ;;  %s6890_s3 = inlined_call_operand.hbm [shape: bf16[256,1024], index: 3, kind: input, shape index: {}]   ;;  %s6891_s4 = inlined_call_operand.vmem [shape: f32[1,512], index: 4, kind: input, shape index: {}]   ;;  %s6892_s5 = inlined_call_operand.hbm [shape: f32[128,128], index: 5, kind: input, shape index: {}]   ;;  %s6893_s6 = inlined_call_operand.vmem [shape: f32[1,128], index: 6, kind: input, shape index: {}]   ;;  %s6894_s7 = inlined_call_operand.vmem [shape: f32[128,64], index: 7, kind: input, shape index: {}]   ;;  %s6895_s8 = inlined_call_operand.vmem [shape: f32[1,64], index: 8, kind: input, shape index: {}]   ;;  %s6896_s9 = inlined_call_operand.hbm [shape: f32[16,64], index: 9, kind: output, shape index: {}]  }
   0x1   :  { %15 = vsyncpa [#allocation7], 0 }
   0x2   :  { %16 = vsyncpa [#allocation5], 0  ;;  %s4846_s30 = smov [#allocation3]   ;;  %s4774_s13 = scalar_lea.hbm %s6890_s3, 16384 }
   0x3   :  { %s28_s10 = sshll.u32 %s4846_s30, 4  ;;  %p4775_p0 = scmp.ne.s32.totalorder %s6890_s3, %s4774_s13  ;;  %s29_s10 = int_to_ptr.vmem [resolvable:$true] %s28_s10 }
   0x4   :  { %p4778_p1 = scmp.lt.u32.totalorder %s4774_s13, %s6890_s3 }
   0x6   :  { %p4780_p2 = pnand %p4778_p1, %p4775_p0 }
   0x8   :  { %4783 = shalt.err (!%p4780_p2)
}
   0x9   :  { %s4784_s18 = scalar_lea.vmem %s29_s10, 16384  ;;  %p4789_p4 = scmp.lt.s32.totalorder %s29_s10, %s29_s10 }
   0xa   :  { %p4785_p3 = scmp.ne.s32.totalorder %s29_s10, %s4784_s18  ;;  %p4790_p5 = scmp.lt.s32.totalorder %s4784_s18, %s4784_s18 }
   0xc   :  { %p4791_p6 = por %p4790_p5, %p4789_p4 }
   0xe   :  { %p4792_p7 = pnand %p4791_p6, %p4785_p3 }
  0x10   :  { %4795 = shalt.err (!%p4792_p7)
}
  0x11   :  { %s4847_s19 = smov 512   ;;  %s4848_s20 = smov 32  }
  0x12   :  { %34 = dma.hbm_to_vmem [thread:$0]  %s6890_s3, 16384, %s29_s10, [#allocation4], %s4847_s19, %s4847_s19, %s4848_s20  }
  0x13   :  { %s4849_s23 = smov [#allocation6]   ;;  %s4796_s27 = scalar_lea.hbm %s6892_s5, 2048 }
  0x14   :  { %s42_s24 = sshll.u32 %s4849_s23, 4  ;;  %p4797_p8 = scmp.ne.s32.totalorder %s6892_s5, %s4796_s27  ;;  %s43_s24 = int_to_ptr.vmem [resolvable:$true] %s42_s24 }
  0x15   :  { %p4800_p9 = scmp.lt.u32.totalorder %s4796_s27, %s6892_s5 }
  0x17   :  { %p4802_p10 = pnand %p4800_p9, %p4797_p8 }
  0x19   :  { %4805 = shalt.err (!%p4802_p10)
}
  0x1a   :  { %s4806_s12 = scalar_lea.vmem %s43_s24, 2048  ;;  %p4811_p12 = scmp.lt.s32.totalorder %s43_s24, %s43_s24 }
  0x1b   :  { %p4807_p11 = scmp.ne.s32.totalorder %s43_s24, %s4806_s12  ;;  %p4812_p13 = scmp.lt.s32.totalorder %s4806_s12, %s4806_s12 }
  0x1d   :  { %p4813_p0 = por %p4812_p13, %p4811_p12 }
  0x1f   :  { %p4814_p1 = pnand %p4813_p0, %p4807_p11 }
  0x21   :  { %4817 = shalt.err (!%p4814_p1)
}
  0x22   :  { %s4850_s3 = smov 128   ;;  %s4851_s10 = smov 8  }
  0x23   :  { %48 = dma.hbm_to_vmem [thread:$0]  %s6892_s5, 2048, %s43_s24, [#allocation7], %s4850_s3, %s4850_s3, %s4851_s10  }
  0x24   :  { %4840 = dma.done.wait [#allocation4], 16384  }
  0x25   :  { %4841 = vsyncadd [#allocation4], 4294950912 }
  0x26   :  { %4842 = dma.done.wait [#allocation7], 2048  }
  0x27   :  { %4843 = vsyncadd [#allocation7], 4294965248  ;;  %v6903_v0 = vmov 0.0   ;;  %v78_v1 = vld [vmem:[%s6888_s1 + $0x8] sm:$0xff]  ;;  %v77_v3 = vld [vmem:[%s6888_s1] sm:$0xff]  ;;  %vm107_vm0 = vcmask 130048  }
  0x28   :  { %220 = vmatprep.mubr.f32.mxu0 %v6903_v0  ;;  %381 = vmatprep.mubr.f32.mxu1 %v6903_v0  ;;  %v82_v2 = vld [vmem:[%s6888_s1 + $0x28] sm:$0xff]  ;;  %v81_v5 = vld [vmem:[%s6888_s1 + $0x20] sm:$0xff]  ;;  %v80_v8 = vld [vmem:[%s6888_s1 + $0x18] sm:$0xff]  ;;  %vm3796_vm1 = vcmask 523264  }
  0x29   :  { %v4181_v4 = vpack.c.bf16 %v82_v2, %v78_v1  ;;  %v4183_v6 = vpack.c.bf16 %v81_v5, %v77_v3  ;;  %v61_v7 = vld [vmem:[%s6887_s0] sm:$0xff]  ;;  %v84_v9 = vld [vmem:[%s6888_s1 + $0x38] sm:$0xff]  ;;  %v79_v10 = vld [vmem:[%s6888_s1 + $0x10] sm:$0xff] }
  0x2a   :  { %v4185_v11 = vpack.c.bf16 %v84_v9, %v80_v8  ;;  %v83_v12 = vld [vmem:[%s6888_s1 + $0x30] sm:$0xff]  ;;  %v542_v13 = vld [vmem:[#allocation3] sm:$0xff]  ;;  %v543_v17 = vld [vmem:[#allocation3 + $0x8] sm:$0xff] }
  0x2b   :  { %4182 = vmatprep.subr.bf16.mxu0 %v4181_v4  ;;  %v546_v14 = vld [vmem:[#allocation3 + $0x20] sm:$0xff]  ;;  %v4187_v15 = vpack.c.bf16 %v83_v12, %v79_v10  ;;  %v547_v18 = vld [vmem:[#allocation3 + $0x28] sm:$0xff]  ;;  %v63_v37 = vld [vmem:[%s6887_s0 + $0x10] sm:$0xff] }
  0x2c   :  { %4184 = vmatpush1.bf16.msra.mxu0 %v4183_v6  ;;  %v4961_v16 = vcombine.high %v542_v13, %v546_v14  ;;  %v4963_v19 = vcombine.low %v542_v13, %v546_v14  ;;  %v550_v20 = vld [vmem:[#allocation3 + $0x40] sm:$0xff]  ;;  %4186 = vmatprep.subr.bf16.mxu1 %v4185_v11  ;;  %v4965_v21 = vcombine.high %v543_v17, %v547_v18  ;;  %v551_v23 = vld [vmem:[#allocation3 + $0x48] sm:$0xff]  ;;  %v64_v45 = vld [vmem:[%s6887_s0 + $0x18] sm:$0xff] }
  0x2d   :  { %v554_v22 = vld [vmem:[#allocation3 + $0x60] sm:$0xff]  ;;  %v555_v24 = vld [vmem:[#allocation3 + $0x68] sm:$0xff]  ;;  %4188 = vmatpush1.bf16.msra.mxu1 %v4187_v15  ;;  %v4968_v25 = vcombine.low %v543_v17, %v547_v18  ;;  %v67_v9 = vld [vmem:[%s6887_s0 + $0x30] sm:$0xff] }
  0x2e   :  { %7228 = vst [vmem:[#allocation12_spill] sm:$0xff] %v4961_v16  ;;  %7229 = vst [vmem:[#allocation13_spill] sm:$0xff] %v4963_v19  ;;  %1398 = vmatprep.subr.bf16.mxu0 %v4961_v16  ;;  %v4970_v26 = vcombine.high %v550_v20, %v554_v22  ;;  %v558_v27 = vld [vmem:[#allocation3 + $0x80] sm:$0xff]  ;;  %1441 = vmatprep.subr.bf16.mxu1 %v4965_v21  ;;  %v4974_v29 = vcombine.high %v551_v23, %v555_v24  ;;  %v62_v30 = vld [vmem:[%s6887_s0 + $0x8] sm:$0xff] }
  0x2f   :  { %7230 = vst [vmem:[#allocation14_spill] sm:$0xff] %v4965_v21  ;;  %7231 = vst [vmem:[#allocation15_spill] sm:$0xff] %v4968_v25  ;;  %v562_v28 = vld [vmem:[#allocation3 + $0xa0] sm:$0xff]  ;;  %3817 = vmatmul.mubr.msk.f32.vlgmr.msra.gmra.mrb[0].mxu0 %vm107_vm0, %v61_v7  ;;  %v4981_v31 = vcombine.low %v550_v20, %v554_v22  ;;  %v559_v32 = vld [vmem:[#allocation3 + $0x88] sm:$0xff]  ;;  %v4989_v35 = vcombine.low %v551_v23, %v555_v24 }
  0x30   :  { %7232 = vst [vmem:[#allocation16_spill] sm:$0xff] %v4970_v26  ;;  %7233 = vst [vmem:[#allocation17_spill] sm:$0xff] %v4974_v29  ;;  %226 = vmatprep.mubr.f32.mxu0 %v6903_v0  ;;  %1399 = vmatpush1.bf16.msra.mxu0 %v4963_v19  ;;  %v563_v33 = vld [vmem:[#allocation3 + $0xa8] sm:$0xff]  ;;  %v4985_v34 = vcombine.high %v558_v27, %v562_v28  ;;  %v5000_v38 = vcombine.low %v558_v27, %v562_v28  ;;  %v566_v40 = vld [vmem:[#allocation3 + $0xc0] sm:$0xff] }
  0x31   :  { %7234 = vst [vmem:[#allocation18_spill] sm:$0xff] %v4981_v31  ;;  %3833 = vmatmul.mubr.msk.f32.vlgmr.msra.gmra.mrb[0].mxu1 %vm107_vm0, %v61_v7  ;;  %1400 = vmatprep.subr.bf16.mxu0 %v4970_v26  ;;  %7236 = vst [vmem:[#allocation20_spill] sm:$0xff] %v4989_v35  ;;  %v4993_v36 = vcombine.high %v559_v32, %v563_v33  ;;  %v5006_v39 = vcombine.low %v559_v32, %v563_v33  ;;  %v570_v41 = vld [vmem:[#allocation3 + $0xe0] sm:$0xff]  ;;  %v567_v42 = vld [vmem:[#allocation3 + $0xc8] sm:$0xff] }
  0x32   :  { %7235 = vst [vmem:[#allocation19_spill] sm:$0xff] %v4985_v34  ;;  %387 = vmatprep.mubr.f32.mxu1 %v6903_v0  ;;  %1442 = vmatpush1.bf16.msra.mxu1 %v4968_v25  ;;  %7238 = vst [vmem:[#allocation22_spill] sm:$0xff] %v5000_v38  ;;  %v5015_v43 = vcombine.high %v566_v40, %v570_v41  ;;  %v571_v44 = vld [vmem:[#allocation3 + $0xe8] sm:$0xff]  ;;  %v5022_v47 = vcombine.low %v566_v40, %v570_v41  ;;  %v574_v49 = vld [vmem:[#allocation3 + $0x100] sm:$0xff] }
  0x33   :  { %3818 = vmatmul.mubr.msk.f32.gmra.mrb[2].mxu0 %vm107_vm0, %v62_v30  ;;  %1443 = vmatprep.subr.bf16.mxu1 %v4974_v29  ;;  %7237 = vst [vmem:[#allocation21_spill] sm:$0xff] %v4993_v36  ;;  %7239 = vst [vmem:[#allocation23_spill] sm:$0xff] %v5006_v39  ;;  %v5020_v46 = vcombine.high %v567_v42, %v571_v44  ;;  %v5024_v48 = vcombine.low %v567_v42, %v571_v44  ;;  %v578_v50 = vld [vmem:[#allocation3 + $0x120] sm:$0xff]  ;;  %v575_v51 = vld [vmem:[#allocation3 + $0x108] sm:$0xff] }
  0x34   :  { %1401 = vmatpush1.bf16.msra.mxu0 %v4981_v31  ;;  %232 = vmatprep.mubr.f32.mxu0 %v6903_v0  ;;  %7240 = vst [vmem:[#allocation24_spill] sm:$0xff] %v5015_v43  ;;  %7242 = vst [vmem:[#allocation26_spill] sm:$0xff] %v5022_v47  ;;  %v5032_v52 = vcombine.high %v574_v49, %v578_v50  ;;  %v579_v53 = vld [vmem:[#allocation3 + $0x128] sm:$0xff]  ;;  %v65_v54 = vld [vmem:[%s6887_s0 + $0x20] sm:$0xff]  ;;  %v5041_v56 = vcombine.low %v574_v49, %v578_v50 }
  0x35   :  { %3834 = vmatmul.mubr.msk.f32.gmra.mrb[2].mxu1 %vm107_vm0, %v62_v30  ;;  %1402 = vmatprep.subr.bf16.mxu0 %v4985_v34  ;;  %7241 = vst [vmem:[#allocation25_spill] sm:$0xff] %v5020_v46  ;;  %7243 = vst [vmem:[#allocation27_spill] sm:$0xff] %v5024_v48  ;;  %v5039_v55 = vcombine.high %v575_v51, %v579_v53  ;;  %v5043_v57 = vcombine.low %v575_v51, %v579_v53  ;;  %v582_v58 = vld [vmem:[#allocation3 + $0x140] sm:$0xff]  ;;  %v583_v60 = vld [vmem:[#allocation3 + $0x148] sm:$0xff] }
  0x36   :  { %1444 = vmatpush1.bf16.msra.mxu1 %v4989_v35  ;;  %393 = vmatprep.mubr.f32.mxu1 %v6903_v0  ;;  %7244 = vst [vmem:[#allocation28_spill] sm:$0xff] %v5032_v52  ;;  %7246 = vst [vmem:[#allocation30_spill] sm:$0xff] %v5041_v56  ;;  %v586_v59 = vld [vmem:[#allocation3 + $0x160] sm:$0xff]  ;;  %v587_v62 = vld [vmem:[#allocation3 + $0x168] sm:$0xff] }
  0x37   :  { %3819 = vmatmul.mubr.msk.f32.gmra.mrb[4].mxu0 %vm107_vm0, %v63_v37  ;;  %1445 = vmatprep.subr.bf16.mxu1 %v4993_v36  ;;  %7245 = vst [vmem:[#allocation29_spill] sm:$0xff] %v5039_v55  ;;  %7247 = vst [vmem:[#allocation31_spill] sm:$0xff] %v5043_v57  ;;  %v5051_v61 = vcombine.high %v582_v58, %v586_v59  ;;  %v66_v63 = vld [vmem:[%s6887_s0 + $0x28] sm:$0xff]  ;;  %v5058_v1 = vcombine.high %v583_v60, %v587_v62  ;;  %v590_v4 = vld [vmem:[#allocation3 + $0x180] sm:$0xff] }
  0x38   :  { %1403 = vmatpush1.bf16.msra.mxu0 %v5000_v38  ;;  %238 = vmatprep.mubr.f32.mxu0 %v6903_v0  ;;  %v5060_v2 = vcombine.low %v582_v58, %v586_v59  ;;  %v5062_v3 = vcombine.low %v583_v60, %v587_v62  ;;  %v594_v5 = vld [vmem:[#allocation3 + $0x1a0] sm:$0xff]  ;;  %v591_v6 = vld [vmem:[#allocation3 + $0x188] sm:$0xff]  ;;  %v68_v20 = vld [vmem:[%s6887_s0 + $0x38] sm:$0xff] }
  0x39   :  { %3835 = vmatmul.mubr.msk.f32.gmra.mrb[4].mxu1 %vm107_vm0, %v63_v37  ;;  %1404 = vmatprep.subr.bf16.mxu0 %v5015_v43  ;;  %7248 = vst [vmem:[#allocation32_spill] sm:$0xff] %v5051_v61  ;;  %7249 = vst [vmem:[#allocation33_spill] sm:$0xff] %v5058_v1  ;;  %v5070_v7 = vcombine.high %v590_v4, %v594_v5  ;;  %v595_v8 = vld [vmem:[#allocation3 + $0x1a8] sm:$0xff]  ;;  %v5079_v11 = vcombine.low %v590_v4, %v594_v5  ;;  %v598_v13 = vld [vmem:[#allocation3 + $0x1c0] sm:$0xff] }
  0x3a   :  { %1446 = vmatpush1.bf16.msra.mxu1 %v5006_v39  ;;  %399 = vmatprep.mubr.f32.mxu1 %v6903_v0  ;;  %7250 = vst [vmem:[#allocation34_spill] sm:$0xff] %v5060_v2  ;;  %7251 = vst [vmem:[#allocation35_spill] sm:$0xff] %v5062_v3  ;;  %v5077_v10 = vcombine.high %v591_v6, %v595_v8  ;;  %v5081_v12 = vcombine.low %v591_v6, %v595_v8  ;;  %v602_v14 = vld [vmem:[#allocation3 + $0x1e0] sm:$0xff]  ;;  %v599_v15 = vld [vmem:[#allocation3 + $0x1c8] sm:$0xff] }
  0x3b   :  { %3820 = vmatmul.mubr.msk.f32.gmra.mrb[6].mxu0 %vm107_vm0, %v64_v45  ;;  %1447 = vmatprep.subr.bf16.mxu1 %v5020_v46  ;;  %7252 = vst [vmem:[#allocation36_spill] sm:$0xff] %v5070_v7  ;;  %7254 = vst [vmem:[#allocation38_spill] sm:$0xff] %v5079_v11  ;;  %v5089_v17 = vcombine.high %v598_v13, %v602_v14  ;;  %v603_v18 = vld [vmem:[#allocation3 + $0x1e8] sm:$0xff]  ;;  %v5098_v23 = vcombine.low %v598_v13, %v602_v14  ;;  %v606_v27 = vld [vmem:[#allocation3 + $0x200] sm:$0xff] }
  0x3c   :  { %1405 = vmatpush1.bf16.msra.mxu0 %v5022_v47  ;;  %244 = vmatprep.mubr.f32.mxu0 %v6903_v0  ;;  %7253 = vst [vmem:[#allocation37_spill] sm:$0xff] %v5077_v10  ;;  %7255 = vst [vmem:[#allocation39_spill] sm:$0xff] %v5081_v12  ;;  %v5096_v22 = vcombine.high %v599_v15, %v603_v18  ;;  %v5100_v24 = vcombine.low %v599_v15, %v603_v18  ;;  %v610_v28 = vld [vmem:[#allocation3 + $0x220] sm:$0xff]  ;;  %v607_v30 = vld [vmem:[#allocation3 + $0x208] sm:$0xff] }
  0x3d   :  { %3836 = vmatmul.mubr.msk.f32.gmra.mrb[6].mxu1 %vm107_vm0, %v64_v45  ;;  %1406 = vmatprep.subr.bf16.mxu0 %v5032_v52  ;;  %7256 = vst [vmem:[#allocation40_spill] sm:$0xff] %v5089_v17  ;;  %7258 = vst [vmem:[#allocation42_spill] sm:$0xff] %v5098_v23  ;;  %v5108_v32 = vcombine.high %v606_v27, %v610_v28  ;;  %v611_v33 = vld [vmem:[#allocation3 + $0x228] sm:$0xff]  ;;  %v69_v37 = vld [vmem:[%s6887_s0 + $0x40] sm:$0xff]  ;;  %v5117_v41 = vcombine.low %v606_v27, %v610_v28 }
  0x3e   :  { %1448 = vmatpush1.bf16.msra.mxu1 %v5024_v48  ;;  %405 = vmatprep.mubr.f32.mxu1 %v6903_v0  ;;  %7257 = vst [vmem:[#allocation41_spill] sm:$0xff] %v5096_v22  ;;  %7259 = vst [vmem:[#allocation43_spill] sm:$0xff] %v5100_v24  ;;  %v5115_v40 = vcombine.high %v607_v30, %v611_v33  ;;  %v5119_v42 = vcombine.low %v607_v30, %v611_v33  ;;  %v614_v44 = vld [vmem:[#allocation3 + $0x240] sm:$0xff]  ;;  %v615_v49 = vld [vmem:[#allocation3 + $0x248] sm:$0xff] }
  0x3f   :  { %3821 = vmatmul.mubr.msk.f32.gmra.mrb[8].mxu0 %vm107_vm0, %v65_v54  ;;  %1449 = vmatprep.subr.bf16.mxu1 %v5039_v55  ;;  %7260 = vst [vmem:[#allocation44_spill] sm:$0xff] %v5108_v32  ;;  %7262 = vst [vmem:[#allocation46_spill] sm:$0xff] %v5117_v41  ;;  %v618_v45 = vld [vmem:[#allocation3 + $0x260] sm:$0xff]  ;;  %v619_v51 = vld [vmem:[#allocation3 + $0x268] sm:$0xff] }
  0x40   :  { %1407 = vmatpush1.bf16.msra.mxu0 %v5041_v56  ;;  %250 = vmatprep.mubr.f32.mxu0 %v6903_v0  ;;  %7261 = vst [vmem:[#allocation45_spill] sm:$0xff] %v5115_v40  ;;  %7263 = vst [vmem:[#allocation47_spill] sm:$0xff] %v5119_v42  ;;  %v5127_v50 = vcombine.high %v614_v44, %v618_v45  ;;  %v70_v53 = vld [vmem:[%s6887_s0 + $0x48] sm:$0xff]  ;;  %v5136_v58 = vcombine.low %v614_v44, %v618_v45  ;;  %v622_v60 = vld [vmem:[#allocation3 + $0x280] sm:$0xff] }
  0x41   :  { %3837 = vmatmul.mubr.msk.f32.gmra.mrb[8].mxu1 %vm107_vm0, %v65_v54  ;;  %1408 = vmatprep.subr.bf16.mxu0 %v5051_v61  ;;  %v5134_v54 = vcombine.high %v615_v49, %v619_v51  ;;  %v5138_v59 = vcombine.low %v615_v49, %v619_v51  ;;  %v626_v62 = vld [vmem:[#allocation3 + $0x2a0] sm:$0xff]  ;;  %v627_v5 = vld [vmem:[#allocation3 + $0x2a8] sm:$0xff]  ;;  %v71_v6 = vld [vmem:[%s6887_s0 + $0x50] sm:$0xff] }
  0x42   :  { %1450 = vmatpush1.bf16.msra.mxu1 %v5043_v57  ;;  %411 = vmatprep.mubr.f32.mxu1 %v6903_v0  ;;  %7264 = vst [vmem:[#allocation48_spill] sm:$0xff] %v5127_v50  ;;  %7266 = vst [vmem:[#allocation50_spill] sm:$0xff] %v5136_v58  ;;  %v5146_v4 = vcombine.high %v622_v60, %v626_v62  ;;  %v630_v14 = vld [vmem:[#allocation3 + $0x2c0] sm:$0xff]  ;;  %v631_v18 = vld [vmem:[#allocation3 + $0x2c8] sm:$0xff] }
  0x43   :  { %3822 = vmatmul.mubr.msk.f32.gmra.mrb[10].mxu0 %vm107_vm0, %v66_v63  ;;  %1451 = vmatprep.subr.bf16.mxu1 %v5058_v1  ;;  %7265 = vst [vmem:[#allocation49_spill] sm:$0xff] %v5134_v54  ;;  %7267 = vst [vmem:[#allocation51_spill] sm:$0xff] %v5138_v59  ;;  %v634_v15 = vld [vmem:[#allocation3 + $0x2e0] sm:$0xff]  ;;  %v635_v27 = vld [vmem:[#allocation3 + $0x2e8] sm:$0xff] }
  0x44   :  { %1409 = vmatpush1.bf16.msra.mxu0 %v5060_v2  ;;  %256 = vmatprep.mubr.f32.mxu0 %v6903_v0  ;;  %7268 = vst [vmem:[#allocation52_spill] sm:$0xff] %v5146_v4  ;;  %v72_v28 = vld [vmem:[%s6887_s0 + $0x58] sm:$0xff]  ;;  %v5172_v30 = vcombine.high %v631_v18, %v635_v27  ;;  %v5174_v33 = vcombine.low %v630_v14, %v634_v15  ;;  %v638_v44 = vld [vmem:[#allocation3 + $0x300] sm:$0xff]  ;;  %v639_v49 = vld [vmem:[#allocation3 + $0x308] sm:$0xff] }
  0x45   :  { %3838 = vmatmul.mubr.msk.f32.gmra.mrb[10].mxu1 %vm107_vm0, %v66_v63  ;;  %1410 = vmatprep.subr.bf16.mxu0 %v5070_v7  ;;  %v623_v63 = vld [vmem:[#allocation3 + $0x288] sm:$0xff]  ;;  %v642_v45 = vld [vmem:[#allocation3 + $0x320] sm:$0xff] }
  0x46   :  { %1452 = vmatpush1.bf16.msra.mxu1 %v5062_v3  ;;  %417 = vmatprep.mubr.f32.mxu1 %v6903_v0  ;;  %v5153_v8 = vcombine.high %v623_v63, %v627_v5  ;;  %v5157_v13 = vcombine.low %v623_v63, %v627_v5  ;;  %7273 = vst [vmem:[#allocation57_spill] sm:$0xff] %v5172_v30  ;;  %7274 = vst [vmem:[#allocation58_spill] sm:$0xff] %v5174_v33 }
  0x47   :  { %3823 = vmatmul.mubr.msk.f32.gmra.mrb[12].mxu0 %vm107_vm0, %v67_v9  ;;  %1453 = vmatprep.subr.bf16.mxu1 %v5077_v10  ;;  %v5184_v51 = vcombine.high %v638_v44, %v642_v45  ;;  %v5193_v63 = vcombine.low %v638_v44, %v642_v45 }
  0x48   :  { %1411 = vmatpush1.bf16.msra.mxu0 %v5079_v11  ;;  %262 = vmatprep.mubr.f32.mxu0 %v6903_v0  ;;  %7269 = vst [vmem:[#allocation53_spill] sm:$0xff] %v5153_v8  ;;  %7271 = vst [vmem:[#allocation55_spill] sm:$0xff] %v5157_v13 }
  0x49   :  { %3839 = vmatmul.mubr.msk.f32.gmra.mrb[12].mxu1 %vm107_vm0, %v67_v9  ;;  %1412 = vmatprep.subr.bf16.mxu0 %v5089_v17  ;;  %v5155_v9 = vcombine.low %v622_v60, %v626_v62  ;;  %7276 = vst [vmem:[#allocation60_spill] sm:$0xff] %v5184_v51  ;;  %v73_v60 = vld [vmem:[%s6887_s0 + $0x60] sm:$0xff]  ;;  %7278 = vst [vmem:[#allocation62_spill] sm:$0xff] %v5193_v63 }
  0x4a   :  { %1454 = vmatpush1.bf16.msra.mxu1 %v5081_v12  ;;  %423 = vmatprep.mubr.f32.mxu1 %v6903_v0 }
  0x4b   :  { %3824 = vmatmul.mubr.msk.f32.gmra.mrb[14].mxu0 %vm107_vm0, %v68_v20  ;;  %1455 = vmatprep.subr.bf16.mxu1 %v5096_v22  ;;  %7270 = vst [vmem:[#allocation54_spill] sm:$0xff] %v5155_v9 }
  0x4c   :  { %1413 = vmatpush1.bf16.msra.mxu0 %v5098_v23  ;;  %268 = vmatprep.mubr.f32.mxu0 %v6903_v0 }
  0x4d   :  { %3840 = vmatmul.mubr.msk.f32.gmra.mrb[14].mxu1 %vm107_vm0, %v68_v20  ;;  %1414 = vmatprep.subr.bf16.mxu0 %v5108_v32  ;;  %v5165_v20 = vcombine.high %v630_v14, %v634_v15  ;;  %v650_v14 = vld [vmem:[#allocation3 + $0x360] sm:$0xff]  ;;  %v647_v15 = vld [vmem:[#allocation3 + $0x348] sm:$0xff] }
  0x4e   :  { %1456 = vmatpush1.bf16.msra.mxu1 %v5100_v24  ;;  %429 = vmatprep.mubr.f32.mxu1 %v6903_v0 }
  0x4f   :  { %3825 = vmatmul.mubr.msk.f32.gmra.mrb[16].mxu0 %vm107_vm0, %v69_v37  ;;  %1457 = vmatprep.subr.bf16.mxu1 %v5115_v40  ;;  %7272 = vst [vmem:[#allocation56_spill] sm:$0xff] %v5165_v20 }
  0x50   :  { %1415 = vmatpush1.bf16.msra.mxu0 %v5117_v41  ;;  %274 = vmatprep.mubr.f32.mxu0 %v6903_v0 }
  0x51   :  { %3841 = vmatmul.mubr.msk.f32.gmra.mrb[16].mxu1 %vm107_vm0, %v69_v37  ;;  %1416 = vmatprep.subr.bf16.mxu0 %v5127_v50  ;;  %v5176_v37 = vcombine.low %v631_v18, %v635_v27  ;;  %v74_v18 = vld [vmem:[%s6887_s0 + $0x68] sm:$0xff] }
  0x52   :  { %1458 = vmatpush1.bf16.msra.mxu1 %v5119_v42  ;;  %435 = vmatprep.mubr.f32.mxu1 %v6903_v0 }
  0x53   :  { %3826 = vmatmul.mubr.msk.f32.gmra.mrb[18].mxu0 %vm107_vm0, %v70_v53  ;;  %1459 = vmatprep.subr.bf16.mxu1 %v5134_v54  ;;  %7275 = vst [vmem:[#allocation59_spill] sm:$0xff] %v5176_v37 }
  0x54   :  { %1417 = vmatpush1.bf16.msra.mxu0 %v5136_v58  ;;  %280 = vmatprep.mubr.f32.mxu0 %v6903_v0 }
  0x55   :  { %3842 = vmatmul.mubr.msk.f32.gmra.mrb[18].mxu1 %vm107_vm0, %v70_v53  ;;  %1418 = vmatprep.subr.bf16.mxu0 %v5146_v4  ;;  %v643_v53 = vld [vmem:[#allocation3 + $0x328] sm:$0xff] }
  0x56   :  { %1460 = vmatpush1.bf16.msra.mxu1 %v5138_v59  ;;  %441 = vmatprep.mubr.f32.mxu1 %v6903_v0  ;;  %v5191_v62 = vcombine.high %v639_v49, %v643_v53  ;;  %v5195_v5 = vcombine.low %v639_v49, %v643_v53  ;;  %v654_v53 = vld [vmem:[#allocation3 + $0x380] sm:$0xff] }
  0x57   :  { %3827 = vmatmul.mubr.msk.f32.gmra.mrb[20].mxu0 %vm107_vm0, %v71_v6  ;;  %1461 = vmatprep.subr.bf16.mxu1 %v5153_v8 }
  0x58   :  { %1419 = vmatpush1.bf16.msra.mxu0 %v5155_v9  ;;  %286 = vmatprep.mubr.f32.mxu0 %v6903_v0  ;;  %7277 = vst [vmem:[#allocation61_spill] sm:$0xff] %v5191_v62  ;;  %7279 = vst [vmem:[#allocation63_spill] sm:$0xff] %v5195_v5 }
  0x59   :  { %3843 = vmatmul.mubr.msk.f32.gmra.mrb[20].mxu1 %vm107_vm0, %v71_v6  ;;  %1420 = vmatprep.subr.bf16.mxu0 %v5165_v20  ;;  %v646_v6 = vld [vmem:[#allocation3 + $0x340] sm:$0xff] }
  0x5a   :  { %1462 = vmatpush1.bf16.msra.mxu1 %v5157_v13  ;;  %447 = vmatprep.mubr.f32.mxu1 %v6903_v0  ;;  %v5206_v27 = vcombine.high %v646_v6, %v650_v14  ;;  %v5208_v44 = vcombine.low %v646_v6, %v650_v14  ;;  %v75_v6 = vld [vmem:[%s6887_s0 + $0x70] sm:$0xff] }
  0x5b   :  { %3828 = vmatmul.mubr.msk.f32.gmra.mrb[22].mxu0 %vm107_vm0, %v72_v28  ;;  %1463 = vmatprep.subr.bf16.mxu1 %v5172_v30 }
  0x5c   :  { %1421 = vmatpush1.bf16.msra.mxu0 %v5174_v33  ;;  %292 = vmatprep.mubr.f32.mxu0 %v6903_v0  ;;  %7280 = vst [vmem:[#allocation64_spill] sm:$0xff] %v5206_v27  ;;  %7281 = vst [vmem:[#allocation65_spill] sm:$0xff] %v5208_v44 }
  0x5d   :  { %3844 = vmatmul.mubr.msk.f32.gmra.mrb[22].mxu1 %vm107_vm0, %v72_v28  ;;  %1422 = vmatprep.subr.bf16.mxu0 %v5184_v51  ;;  %v651_v28 = vld [vmem:[#allocation3 + $0x368] sm:$0xff] }
  0x5e   :  { %1464 = vmatpush1.bf16.msra.mxu1 %v5176_v37  ;;  %453 = vmatprep.mubr.f32.mxu1 %v6903_v0  ;;  %v5212_v45 = vcombine.high %v647_v15, %v651_v28  ;;  %v5214_v49 = vcombine.low %v647_v15, %v651_v28  ;;  %v662_v15 = vld [vmem:[#allocation3 + $0x3c0] sm:$0xff]  ;;  %v663_v51 = vld [vmem:[#allocation3 + $0x3c8] sm:$0xff]  ;;  %v7288_v37 = vmov 0.0  }
  0x5f   :  { %3829 = vmatmul.mubr.msk.f32.gmra.mrb[24].mxu0 %vm107_vm0, %v73_v60  ;;  %1465 = vmatprep.subr.bf16.mxu1 %v5191_v62  ;;  %v659_v62 = vld [vmem:[#allocation3 + $0x3a8] sm:$0xff]  ;;  %v666_v28 = vld [vmem:[#allocation3 + $0x3e0] sm:$0xff] }
  0x60   :  { %1423 = vmatpush1.bf16.msra.mxu0 %v5193_v63  ;;  %298 = vmatprep.mubr.f32.mxu0 %v6903_v0  ;;  %7282 = vst [vmem:[#allocation66_spill] sm:$0xff] %v5212_v45  ;;  %7283 = vst [vmem:[#allocation67_spill] sm:$0xff] %v5214_v49 }
  0x61   :  { %3845 = vmatmul.mubr.msk.f32.gmra.mrb[24].mxu1 %vm107_vm0, %v73_v60  ;;  %v658_v60 = vld [vmem:[#allocation3 + $0x3a0] sm:$0xff]  ;;  %1424 = vmatprep.subr.bf16.mxu0 %v5206_v27 }
  0x62   :  { %1466 = vmatpush1.bf16.msra.mxu1 %v5195_v5  ;;  %459 = vmatprep.mubr.f32.mxu1 %v6903_v0  ;;  %v655_v5 = vld [vmem:[#allocation3 + $0x388] sm:$0xff]  ;;  %v5218_v63 = vcombine.high %v654_v53, %v658_v60  ;;  %v5229_v0 = vcombine.low %v654_v53, %v658_v60  ;;  %v544_v53 = vld [vmem:[#allocation3 + $0x10] sm:$0xff]  ;;  %v545_v60 = vld [vmem:[#allocation3 + $0x18] sm:$0xff] }
  0x63   :  { %3830 = vmatmul.mubr.msk.f32.gmra.mrb[26].mxu0 %vm107_vm0, %v74_v18  ;;  %1467 = vmatprep.subr.bf16.mxu1 %v5212_v45  ;;  %v5225_v14 = vcombine.high %v655_v5, %v659_v62  ;;  %v5231_v27 = vcombine.low %v655_v5, %v659_v62  ;;  %v667_v45 = vld [vmem:[#allocation3 + $0x3e8] sm:$0xff]  ;;  %v548_v5 = vld [vmem:[#allocation3 + $0x30] sm:$0xff] }
  0x64   :  { %7284 = vst [vmem:[#allocation68_spill] sm:$0xff] %v5218_v63  ;;  %1425 = vmatpush1.bf16.msra.mxu0 %v5208_v44  ;;  %7286 = vst [vmem:[#allocation70_spill] sm:$0xff] %v5229_v0  ;;  %304 = vmatprep.mubr.f32.mxu0 %v7288_v37  ;;  %v5240_v44 = vcombine.high %v662_v15, %v666_v28  ;;  %v5244_v62 = vcombine.high %v663_v51, %v667_v45 }
  0x65   :  { %3846 = vmatmul.mubr.msk.f32.gmra.mrb[26].mxu1 %vm107_vm0, %v74_v18  ;;  %7285 = vst [vmem:[#allocation69_spill] sm:$0xff] %v5225_v14  ;;  %7287 = vst [vmem:[#allocation71_spill] sm:$0xff] %v5231_v27  ;;  %1426 = vmatprep.subr.bf16.mxu0 %v5218_v63  ;;  %v76_v18 = vld [vmem:[%s6887_s0 + $0x78] sm:$0xff]  ;;  %v5248_v63 = vcombine.low %v662_v15, %v666_v28  ;;  %v5250_v33 = vcombine.low %v663_v51, %v667_v45  ;;  %v6927_v51 = vmov 0.0|0.0   ;;  %v87_v15 = vlaneseq }
  0x66   :  { %1468 = vmatpush1.bf16.msra.mxu1 %v5214_v49  ;;  %465 = vmatprep.mubr.f32.mxu1 %v7288_v37  ;;  %7289 = vst [vmem:[#allocation72_spill] sm:$0xff] %v5240_v44  ;;  %7290 = vst [vmem:[#allocation73_spill] sm:$0xff] %v5244_v62  ;;  %v549_v49 = vld [vmem:[#allocation3 + $0x38] sm:$0xff] }
  0x67   :  { %3831 = vmatmul.mubr.msk.f32.gmra.mrb[28].mxu0 %vm107_vm0, %v75_v6  ;;  %1469 = vmatprep.subr.bf16.mxu1 %v5225_v14  ;;  %7291 = vst [vmem:[#allocation74_spill] sm:$0xff] %v5248_v63  ;;  %7292 = vst [vmem:[#allocation75_spill] sm:$0xff] %v5250_v33  ;;  %v5258_v14 = vcombine.high %v545_v60, %v549_v49  ;;  %v5270_v45 = vcombine.low %v545_v60, %v549_v49  ;;  %v5272_v28 = vshrl.u32 %v87_v15, 7 }
  0x68   :  { %1427 = vmatpush1.bf16.msra.mxu0 %v5229_v0  ;;  %310 = vmatprep.mubr.f32.mxu0 %v7288_v37 }
  0x69   :  { %3847 = vmatmul.mubr.msk.f32.gmra.mrb[28].mxu1 %vm107_vm0, %v75_v6  ;;  %1428 = vmatprep.subr.bf16.mxu0 %v5240_v44  ;;  %v5256_v6 = vcombine.high %v544_v53, %v548_v5  ;;  %7294 = vst [vmem:[#allocation77_spill] sm:$0xff] %v5258_v14  ;;  %7296 = vst [vmem:[#allocation79_spill] sm:$0xff] %v5270_v45  ;;  %v6956_v60 = vsub.s32 3, %v5272_v28  ;;  %v6955_v44 = vsub.s32 2, %v5272_v28 }
  0x6a   :  { %1470 = vmatpush1.bf16.msra.mxu1 %v5231_v27  ;;  %471 = vmatprep.mubr.f32.mxu1 %v7288_v37  ;;  %v5266_v37 = vcombine.low %v544_v53, %v548_v5 }
  0x6b   :  { %3832 = vmatmul.mubr.msk.f32.gmra.mrb[30].mxu0 %vm107_vm0, %v76_v18  ;;  %7293 = vst [vmem:[#allocation76_spill] sm:$0xff] %v5256_v6  ;;  %1471 = vmatprep.subr.bf16.mxu1 %v5244_v62 }
  0x6c   :  { %1429 = vmatpush1.bf16.msra.mxu0 %v5248_v63  ;;  %1430 = vmatprep.mubr.bf16.mxu0 %v6927_v51  ;;  %7295 = vst [vmem:[#allocation78_spill] sm:$0xff] %v5266_v37  ;;  %v6944_v63 = vsub.s32 1, %v5272_v28 }
  0x6d   :  { %3848 = vmatmul.mubr.msk.f32.gmra.mrb[30].mxu1 %vm107_vm0, %v76_v18  ;;  %1484 = vmatprep.subr.bf16.mxu0 %v5256_v6  ;;  %v6941_v18 = vsub.s32 0, %v5272_v28 }
  0x6e   :  { %1472 = vmatpush1.bf16.msra.mxu1 %v5250_v33  ;;  %1473 = vmatprep.mubr.bf16.mxu1 %v6927_v51  ;;  %v85_v33 = vld [vmem:[%s6889_s2] sm:$0xf] }
  0x6f   :  { %1527 = vmatprep.subr.bf16.mxu1 %v5258_v14  ;;  %v5281_v53 = vrot.slane %v85_v33, %v6941_v18  ;;  %v5285_v5 = vrot.slane %v85_v33, %v6944_v63  ;;  %v5293_v30 = vrot.slane %v85_v33, %v6956_v60 }
  0x71   :  { %7297 = vst [vmem:[#allocation80_spill] sm:$0xff] %v5281_v53  ;;  %7298 = vst [vmem:[#allocation81_spill] sm:$0xff] %v5285_v5 }
  0x72   :  { %7299 = vst [vmem:[#allocation82_spill] sm:$0xff] %v5293_v30 }
 0x102   :  { %v222_v49 = vpop.f32.mrb[0].mxu0 }
 0x103   :  { %v223_v15 = vadd.f32 %v222_v49, %v5281_v53  ;;  %v224_v51 = vpop.f32.mrb[1].mxu0 }
 0x104   :  { %v225_v14 = vadd.f32 %v224_v51, %v5285_v5  ;;  %v383_v6 = vpop.f32.mrb[0].mxu1 }
 0x105   :  { %v3849_v62 = vmul.f32 -1.442695, %v223_v15  ;;  %v385_v27 = vpop.f32.mrb[1].mxu1  ;;  %v5299_v15 = vrot.slane %v85_v33, %v6955_v44 }
 0x106   :  { %v3851_v0 = vmul.f32 -1.442695, %v225_v14  ;;  %v228_v18 = vpop.f32.mrb[2].mxu0  ;;  %v386_v8 = vadd.f32 %v385_v27, %v5293_v30 }
 0x107   :  { %4262 = vpow2.f32 %v3849_v62  ;;  %v229_v63 = vadd.f32 %v228_v18, %v5281_v53  ;;  %v230_v20 = vpop.f32.mrb[3].mxu0  ;;  %7300 = vst [vmem:[#allocation83_spill] sm:$0xff] %v5299_v15 }
 0x108   :  { %4264 = vpow2.f32 %v3851_v0  ;;  %v231_v49 = vadd.f32 %v230_v20, %v5285_v5  ;;  %v389_v13 = vpop.f32.mrb[2].mxu1  ;;  %v384_v20 = vadd.f32 %v383_v6, %v5299_v15  ;;  %v3853_v33 = vmul.f32 -1.442695, %v386_v8 }
 0x109   :  { %v3850_v51 = vmul.f32 -1.442695, %v229_v63  ;;  %v391_v9 = vpop.f32.mrb[3].mxu1 }
 0x10a   :  { %v3852_v14 = vmul.f32 -1.442695, %v231_v49  ;;  %v5302_v4 = vpop.f32.mrb[4].mxu0  ;;  %v392_v62 = vadd.f32 %v391_v9, %v5293_v30 }
 0x10b   :  { %7301 = vst [vmem:[#allocation84_spill] sm:$0xff] %v5302_v4  ;;  %4266 = vpow2.f32 %v3850_v51  ;;  %v5305_v18 = vpop.f32.mrb[5].mxu0  ;;  %v390_v51 = vadd.f32 %v389_v13, %v5299_v15  ;;  %v7313_v4 = vmov 0.0|0.0  }
 0x10c   :  { %7302 = vst [vmem:[#allocation85_spill] sm:$0xff] %v5305_v18  ;;  %4268 = vpow2.f32 %v3852_v14  ;;  %v5307_v0 = vpop.f32.mrb[4].mxu1  ;;  %v3854_v44 = vmul.f32 -1.442695, %v392_v62 }
 0x10d   :  { %7303 = vst [vmem:[#allocation86_spill] sm:$0xff] %v5307_v0  ;;  %v5310_v63 = vpop.f32.mrb[5].mxu1  ;;  %4270 = vtanh.f32 %v384_v20 }
 0x10e   :  { %7304 = vst [vmem:[#allocation87_spill] sm:$0xff] %v5310_v63  ;;  %4272 = vpow2.f32 %v3853_v33 }
 0x10f   :  { %4274 = vpow2.f32 %v3854_v44 }
 0x111   :  { %v4263_v60 = vpop.eup %4262 }
 0x112   :  { %v4265_v49 = vpop.eup %4264  ;;  %v714_v27 = vadd.f32 1.0, %v4263_v60 }
 0x113   :  { %v726_v5 = vadd.f32 1.0, %v4265_v49 }
 0x114   :  { %4276 = vrcp.f32 %v714_v27 }
 0x115   :  { %v4267_v9 = vpop.eup %4266  ;;  %4278 = vrcp.f32 %v726_v5 }
 0x116   :  { %v4269_v14 = vpop.eup %4268  ;;  %v715_v30 = vadd.f32 1.0, %v4267_v9  ;;  %4280 = vtanh.f32 %v390_v51 }
 0x117   :  { %v727_v6 = vadd.f32 1.0, %v4269_v14  ;;  %v4271_v8 = vpop.eup %4270 }
 0x118   :  { %4282 = vrcp.f32 %v715_v30  ;;  %v4273_v62 = vpop.eup %4272 }
 0x119   :  { %4284 = vrcp.f32 %v727_v6  ;;  %v4275_v63 = vpop.eup %4274  ;;  %v740_v13 = vadd.f32 1.0, %v4273_v62  ;;  %v553_v62 = vld [vmem:[#allocation3 + $0x58] sm:$0xff] }
 0x11a   :  { %v741_v49 = vadd.f32 1.0, %v4275_v63  ;;  %v556_v63 = vld [vmem:[#allocation3 + $0x70] sm:$0xff] }
 0x11b   :  { %4286 = vrcp.f32 %v740_v13 }
 0x11c   :  { %4288 = vrcp.f32 %v741_v49 }
 0x11e   :  { %v4277_v20 = vpop.eup %4276 }
 0x11f   :  { %v4279_v18 = vpop.eup %4278  ;;  %v748_v60 = vmul.f32 %v4277_v20, %v4271_v8 }
 0x120   :  { %v4281_v33 = vpop.eup %4280  ;;  %v746_v0 = vmul.f32 0.0, %v4279_v18  ;;  %v552_v18 = vld [vmem:[#allocation3 + $0x50] sm:$0xff] }
 0x121   :  { %v5321_v13 = vcombine.high %v552_v18, %v556_v63 }
 0x122   :  { %v4283_v44 = vpop.eup %4282  ;;  %v5313_v27 = vadd.f32 %v748_v60, %v746_v0  ;;  %v557_v0 = vld [vmem:[#allocation3 + $0x78] sm:$0xff] }
 0x123   :  { %v4285_v5 = vpop.eup %4284  ;;  %v749_v15 = vmul.f32 %v4283_v44, %v4281_v33  ;;  %7307 = vst [vmem:[#allocation90_spill] sm:$0xff] %v5321_v13  ;;  %v5323_v49 = vcombine.high %v553_v62, %v557_v0  ;;  %v564_v44 = vld [vmem:[#allocation3 + $0xb0] sm:$0xff] }
 0x124   :  { %7305 = vst [vmem:[#allocation88_spill] sm:$0xff] %v5313_v27  ;;  %v747_v9 = vmul.f32 0.0, %v4285_v5  ;;  %4290 = vtanh.f32 %v5313_v27  ;;  %v561_v5 = vld [vmem:[#allocation3 + $0x98] sm:$0xff] }
 0x125   :  { %v4287_v51 = vpop.eup %4286  ;;  %7308 = vst [vmem:[#allocation91_spill] sm:$0xff] %v5323_v49  ;;  %v573_v27 = vld [vmem:[#allocation3 + $0xf8] sm:$0xff] }
 0x126   :  { %v5316_v30 = vadd.f32 %v749_v15, %v747_v9  ;;  %v4289_v14 = vpop.eup %4288  ;;  %v560_v15 = vld [vmem:[#allocation3 + $0x90] sm:$0xff]  ;;  %v565_v9 = vld [vmem:[#allocation3 + $0xb8] sm:$0xff] }
 0x128   :  { %7306 = vst [vmem:[#allocation89_spill] sm:$0xff] %v5316_v30  ;;  %4292 = vtanh.f32 %v5316_v30  ;;  %v569_v30 = vld [vmem:[#allocation3 + $0xd8] sm:$0xff] }
 0x12e   :  { %v4291_v6 = vpop.eup %4290 }
 0x12f   :  { %v754_v20 = vmul.f32 %v4291_v6, %v4287_v51  ;;  %v5329_v51 = vcombine.low %v552_v18, %v556_v63  ;;  %v5335_v6 = vcombine.high %v560_v15, %v564_v44  ;;  %v5343_v18 = vcombine.low %v560_v15, %v564_v44 }
 0x130   :  { %v5345_v63 = vcombine.low %v561_v5, %v565_v9  ;;  %v5357_v44 = vcombine.low %v569_v30, %v573_v27 }
 0x131   :  { %7309 = vst [vmem:[#allocation92_spill] sm:$0xff] %v5329_v51  ;;  %7311 = vst [vmem:[#allocation94_spill] sm:$0xff] %v5335_v6 }
 0x132   :  { %v4293_v8 = vpop.eup %4292  ;;  %7314 = vst [vmem:[#allocation96_spill] sm:$0xff] %v5343_v18  ;;  %7315 = vst [vmem:[#allocation97_spill] sm:$0xff] %v5345_v63 }
 0x133   :  { %v755_v60 = vmul.f32 %v4293_v8, %v4289_v14  ;;  %v5331_v14 = vcombine.low %v553_v62, %v557_v0  ;;  %v5337_v8 = vcombine.high %v561_v5, %v565_v9  ;;  %v5351_v0 = vcombine.high %v569_v30, %v573_v27  ;;  %7319 = vst [vmem:[#allocation101_spill] sm:$0xff] %v5357_v44 }
 0x135   :  { %v5319_v33 = vpack.c.bf16 %v755_v60, %v754_v20  ;;  %7310 = vst [vmem:[#allocation93_spill] sm:$0xff] %v5331_v14  ;;  %7312 = vst [vmem:[#allocation95_spill] sm:$0xff] %v5337_v8  ;;  %v568_v20 = vld [vmem:[#allocation3 + $0xd0] sm:$0xff] }
 0x136   :  { %v572_v60 = vld [vmem:[#allocation3 + $0xf0] sm:$0xff]  ;;  %7317 = vst [vmem:[#allocation99_spill] sm:$0xff] %v5351_v0 }
 0x137   :  { %1431 = vmatmul.mubr.bf16.vlgmr.msra.gmra.mrb[32].mxu0 %v5319_v33  ;;  %1474 = vmatmul.mubr.bf16.vlgmr.msra.gmra.mrb[32].mxu1 %v5319_v33  ;;  %v5349_v62 = vcombine.high %v568_v20, %v572_v60  ;;  %v5355_v15 = vcombine.low %v568_v20, %v572_v60 }
 0x138   :  { %1485 = vmatpush1.bf16.msra.mxu0 %v5266_v37  ;;  %1528 = vmatpush1.bf16.msra.mxu1 %v5270_v45  ;;  %v577_v45 = vld [vmem:[#allocation3 + $0x118] sm:$0xff] }
 0x139   :  { %1486 = vmatprep.subr.bf16.mxu0 %v5321_v13  ;;  %1529 = vmatprep.subr.bf16.mxu1 %v5323_v49  ;;  %7316 = vst [vmem:[#allocation98_spill] sm:$0xff] %v5349_v62  ;;  %v576_v49 = vld [vmem:[#allocation3 + $0x110] sm:$0xff]  ;;  %7318 = vst [vmem:[#allocation100_spill] sm:$0xff] %v5355_v15 }
 0x13a   :  { %1516 = vmatprep.mubr.bf16.mxu0 %v7313_v4  ;;  %1559 = vmatprep.mubr.bf16.mxu1 %v7313_v4  ;;  %v580_v13 = vld [vmem:[#allocation3 + $0x130] sm:$0xff]  ;;  %v581_v4 = vld [vmem:[#allocation3 + $0x138] sm:$0xff] }
 0x13b   :  { %v5361_v5 = vcombine.high %v576_v49, %v580_v13  ;;  %v5363_v9 = vcombine.high %v577_v45, %v581_v4  ;;  %v5367_v20 = vcombine.low %v576_v49, %v580_v13  ;;  %v5369_v27 = vcombine.low %v577_v45, %v581_v4 }
 0x13c   :  { %1487 = vmatpush1.bf16.msra.mxu0 %v5329_v51  ;;  %1530 = vmatpush1.bf16.msra.mxu1 %v5331_v14  ;;  %v585_v14 = vld [vmem:[#allocation3 + $0x158] sm:$0xff] }
 0x13d   :  { %1488 = vmatprep.subr.bf16.mxu0 %v5335_v6  ;;  %1531 = vmatprep.subr.bf16.mxu1 %v5337_v8  ;;  %7320 = vst [vmem:[#allocation102_spill] sm:$0xff] %v5361_v5  ;;  %7321 = vst [vmem:[#allocation103_spill] sm:$0xff] %v5363_v9  ;;  %v584_v8 = vld [vmem:[#allocation3 + $0x150] sm:$0xff]  ;;  %v589_v51 = vld [vmem:[#allocation3 + $0x178] sm:$0xff] }
 0x13e   :  { %v588_v6 = vld [vmem:[#allocation3 + $0x170] sm:$0xff]  ;;  %7322 = vst [vmem:[#allocation104_spill] sm:$0xff] %v5367_v20  ;;  %7323 = vst [vmem:[#allocation105_spill] sm:$0xff] %v5369_v27  ;;  %v5375_v60 = vcombine.high %v585_v14, %v589_v51  ;;  %v5381_v45 = vcombine.low %v585_v14, %v589_v51 }
 0x13f   :  { %v5373_v30 = vcombine.high %v584_v8, %v588_v6  ;;  %v5379_v13 = vcombine.low %v584_v8, %v588_v6 }
 0x140   :  { %1489 = vmatpush1.bf16.msra.mxu0 %v5343_v18  ;;  %1532 = vmatpush1.bf16.msra.mxu1 %v5345_v63  ;;  %7325 = vst [vmem:[#allocation107_spill] sm:$0xff] %v5375_v60  ;;  %v593_v63 = vld [vmem:[#allocation3 + $0x198] sm:$0xff]  ;;  %7327 = vst [vmem:[#allocation109_spill] sm:$0xff] %v5381_v45 }
 0x141   :  { %1490 = vmatprep.subr.bf16.mxu0 %v5349_v62  ;;  %1533 = vmatprep.subr.bf16.mxu1 %v5351_v0  ;;  %7324 = vst [vmem:[#allocation106_spill] sm:$0xff] %v5373_v30  ;;  %v592_v0 = vld [vmem:[#allocation3 + $0x190] sm:$0xff]  ;;  %v597_v18 = vld [vmem:[#allocation3 + $0x1b8] sm:$0xff]  ;;  %7326 = vst [vmem:[#allocation108_spill] sm:$0xff] %v5379_v13 }
 0x142   :  { %v596_v62 = vld [vmem:[#allocation3 + $0x1b0] sm:$0xff]  ;;  %v5387_v4 = vcombine.high %v593_v63, %v597_v18  ;;  %v5393_v51 = vcombine.low %v593_v63, %v597_v18 }
 0x143   :  { %v5385_v49 = vcombine.high %v592_v0, %v596_v62  ;;  %v5391_v6 = vcombine.low %v592_v0, %v596_v62 }
 0x144   :  { %1491 = vmatpush1.bf16.msra.mxu0 %v5355_v15  ;;  %1534 = vmatpush1.bf16.msra.mxu1 %v5357_v44  ;;  %7329 = vst [vmem:[#allocation111_spill] sm:$0xff] %v5387_v4  ;;  %v601_v44 = vld [vmem:[#allocation3 + $0x1d8] sm:$0xff]  ;;  %7331 = vst [vmem:[#allocation113_spill] sm:$0xff] %v5393_v51 }
 0x145   :  { %1492 = vmatprep.subr.bf16.mxu0 %v5361_v5  ;;  %1535 = vmatprep.subr.bf16.mxu1 %v5363_v9  ;;  %7328 = vst [vmem:[#allocation110_spill] sm:$0xff] %v5385_v49  ;;  %v600_v9 = vld [vmem:[#allocation3 + $0x1d0] sm:$0xff]  ;;  %v605_v15 = vld [vmem:[#allocation3 + $0x1f8] sm:$0xff]  ;;  %7330 = vst [vmem:[#allocation112_spill] sm:$0xff] %v5391_v6 }
 0x146   :  { %v604_v5 = vld [vmem:[#allocation3 + $0x1f0] sm:$0xff]  ;;  %v5399_v8 = vcombine.high %v601_v44, %v605_v15  ;;  %v5405_v18 = vcombine.low %v601_v44, %v605_v15 }
 0x147   :  { %v5397_v14 = vcombine.high %v600_v9, %v604_v5  ;;  %v5403_v62 = vcombine.low %v600_v9, %v604_v5 }
 0x148   :  { %1493 = vmatpush1.bf16.msra.mxu0 %v5367_v20  ;;  %1536 = vmatpush1.bf16.msra.mxu1 %v5369_v27  ;;  %7333 = vst [vmem:[#allocation115_spill] sm:$0xff] %v5399_v8  ;;  %v609_v27 = vld [vmem:[#allocation3 + $0x218] sm:$0xff]  ;;  %7335 = vst [vmem:[#allocation117_spill] sm:$0xff] %v5405_v18 }
 0x149   :  { %1494 = vmatprep.subr.bf16.mxu0 %v5373_v30  ;;  %1537 = vmatprep.subr.bf16.mxu1 %v5375_v60  ;;  %7332 = vst [vmem:[#allocation114_spill] sm:$0xff] %v5397_v14  ;;  %v608_v60 = vld [vmem:[#allocation3 + $0x210] sm:$0xff]  ;;  %v613_v20 = vld [vmem:[#allocation3 + $0x238] sm:$0xff]  ;;  %7334 = vst [vmem:[#allocation116_spill] sm:$0xff] %v5403_v62 }
 0x14a   :  { %v612_v30 = vld [vmem:[#allocation3 + $0x230] sm:$0xff]  ;;  %v5411_v0 = vcombine.high %v609_v27, %v613_v20  ;;  %v5417_v15 = vcombine.low %v609_v27, %v613_v20 }
 0x14b   :  { %v5409_v63 = vcombine.high %v608_v60, %v612_v30  ;;  %v5415_v5 = vcombine.low %v608_v60, %v612_v30  ;;  %v5429_v30 = vpop.f32.mrb[6].mxu1 }
 0x14c   :  { %1495 = vmatpush1.bf16.msra.mxu0 %v5379_v13  ;;  %1538 = vmatpush1.bf16.msra.mxu1 %v5381_v45  ;;  %7337 = vst [vmem:[#allocation119_spill] sm:$0xff] %v5411_v0  ;;  %v617_v45 = vld [vmem:[#allocation3 + $0x258] sm:$0xff]  ;;  %7339 = vst [vmem:[#allocation121_spill] sm:$0xff] %v5417_v15  ;;  %v5431_v20 = vpop.f32.mrb[7].mxu1 }
 0x14d   :  { %1496 = vmatprep.subr.bf16.mxu0 %v5385_v49  ;;  %1539 = vmatprep.subr.bf16.mxu1 %v5387_v4  ;;  %7336 = vst [vmem:[#allocation118_spill] sm:$0xff] %v5409_v63  ;;  %v616_v4 = vld [vmem:[#allocation3 + $0x250] sm:$0xff]  ;;  %v621_v13 = vld [vmem:[#allocation3 + $0x278] sm:$0xff]  ;;  %7338 = vst [vmem:[#allocation120_spill] sm:$0xff] %v5415_v5 }
 0x14e   :  { %v620_v49 = vld [vmem:[#allocation3 + $0x270] sm:$0xff]  ;;  %v5423_v9 = vcombine.high %v617_v45, %v621_v13  ;;  %7344 = vst [vmem:[#allocation126_spill] sm:$0xff] %v5429_v30  ;;  %7345 = vst [vmem:[#allocation127_spill] sm:$0xff] %v5431_v20  ;;  %v5437_v60 = vcombine.low %v617_v45, %v621_v13  ;;  %v633_v30 = vld [vmem:[#allocation3 + $0x2d8] sm:$0xff] }
 0x14f   :  { %v5421_v44 = vcombine.high %v616_v4, %v620_v49  ;;  %v5435_v27 = vcombine.low %v616_v4, %v620_v49  ;;  %v636_v20 = vld [vmem:[#allocation3 + $0x2f0] sm:$0xff]  ;;  %v5449_v49 = vpop.f32.mrb[8].mxu1 }
 0x150   :  { %1497 = vmatpush1.bf16.msra.mxu0 %v5391_v6  ;;  %1540 = vmatpush1.bf16.msra.mxu1 %v5393_v51  ;;  %7341 = vst [vmem:[#allocation123_spill] sm:$0xff] %v5423_v9  ;;  %v628_v51 = vld [vmem:[#allocation3 + $0x2b0] sm:$0xff]  ;;  %v625_v6 = vld [vmem:[#allocation3 + $0x298] sm:$0xff]  ;;  %7347 = vst [vmem:[#allocation129_spill] sm:$0xff] %v5437_v60  ;;  %v5451_v13 = vpop.f32.mrb[9].mxu1 }
 0x151   :  { %1498 = vmatprep.subr.bf16.mxu0 %v5397_v14  ;;  %1541 = vmatprep.subr.bf16.mxu1 %v5399_v8  ;;  %7340 = vst [vmem:[#allocation122_spill] sm:$0xff] %v5421_v44  ;;  %v624_v8 = vld [vmem:[#allocation3 + $0x290] sm:$0xff]  ;;  %v5425_v14 = vpop.f32.mrb[6].mxu0  ;;  %7346 = vst [vmem:[#allocation128_spill] sm:$0xff] %v5435_v27 }
 0x152   :  { %7342 = vst [vmem:[#allocation124_spill] sm:$0xff] %v5425_v14  ;;  %v5427_v37 = vpop.f32.mrb[7].mxu0  ;;  %7352 = vst [vmem:[#allocation134_spill] sm:$0xff] %v5449_v49  ;;  %v5455_v45 = vcombine.low %v624_v8, %v628_v51 }
 0x153   :  { %7343 = vst [vmem:[#allocation125_spill] sm:$0xff] %v5427_v37  ;;  %v5445_v37 = vpop.f32.mrb[8].mxu0  ;;  %7353 = vst [vmem:[#allocation135_spill] sm:$0xff] %v5451_v13  ;;  %v644_v13 = vld [vmem:[#allocation3 + $0x330] sm:$0xff] }
 0x154   :  { %1499 = vmatpush1.bf16.msra.mxu0 %v5403_v62  ;;  %1542 = vmatpush1.bf16.msra.mxu1 %v5405_v18  ;;  %v629_v62 = vld [vmem:[#allocation3 + $0x2b8] sm:$0xff]  ;;  %v632_v18 = vld [vmem:[#allocation3 + $0x2d0] sm:$0xff]  ;;  %7350 = vst [vmem:[#allocation132_spill] sm:$0xff] %v5445_v37  ;;  %v5447_v14 = vpop.f32.mrb[9].mxu0  ;;  %7354 = vst [vmem:[#allocation136_spill] sm:$0xff] %v5455_v45 }
 0x155   :  { %1500 = vmatprep.subr.bf16.mxu0 %v5409_v63  ;;  %1543 = vmatprep.subr.bf16.mxu1 %v5411_v0  ;;  %v5441_v0 = vcombine.high %v624_v8, %v628_v51  ;;  %v5443_v63 = vcombine.high %v625_v6, %v629_v62  ;;  %7351 = vst [vmem:[#allocation133_spill] sm:$0xff] %v5447_v14  ;;  %v640_v14 = vld [vmem:[#allocation3 + $0x310] sm:$0xff]  ;;  %v5465_v49 = vpop.f32.mrb[10].mxu0  ;;  %v5469_v51 = vpop.f32.mrb[10].mxu1 }
 0x156   :  { %v5457_v4 = vcombine.low %v625_v6, %v629_v62  ;;  %v5461_v37 = vcombine.high %v632_v18, %v636_v20  ;;  %7358 = vst [vmem:[#allocation140_spill] sm:$0xff] %v5465_v49  ;;  %7360 = vst [vmem:[#allocation142_spill] sm:$0xff] %v5469_v51  ;;  %v5471_v6 = vpop.f32.mrb[11].mxu1  ;;  %v5475_v8 = vcombine.low %v632_v18, %v636_v20 }
 0x157   :  { %7348 = vst [vmem:[#allocation130_spill] sm:$0xff] %v5441_v0  ;;  %7349 = vst [vmem:[#allocation131_spill] sm:$0xff] %v5443_v63  ;;  %v5481_v49 = vcombine.high %v640_v14, %v644_v13  ;;  %v5489_v18 = vpop.f32.mrb[12].mxu1 }
 0x158   :  { %1501 = vmatpush1.bf16.msra.mxu0 %v5415_v5  ;;  %1544 = vmatpush1.bf16.msra.mxu1 %v5417_v15  ;;  %v637_v5 = vld [vmem:[#allocation3 + $0x2f8] sm:$0xff]  ;;  %7355 = vst [vmem:[#allocation137_spill] sm:$0xff] %v5457_v4  ;;  %7356 = vst [vmem:[#allocation138_spill] sm:$0xff] %v5461_v37  ;;  %v5467_v15 = vpop.f32.mrb[11].mxu0 }
 0x159   :  { %1502 = vmatprep.subr.bf16.mxu0 %v5421_v44  ;;  %1545 = vmatprep.subr.bf16.mxu1 %v5423_v9  ;;  %v5463_v9 = vcombine.high %v633_v30, %v637_v5  ;;  %v641_v44 = vld [vmem:[#allocation3 + $0x318] sm:$0xff]  ;;  %7359 = vst [vmem:[#allocation141_spill] sm:$0xff] %v5467_v15  ;;  %7361 = vst [vmem:[#allocation143_spill] sm:$0xff] %v5471_v6  ;;  %v5477_v62 = vcombine.low %v633_v30, %v637_v5  ;;  %v648_v15 = vld [vmem:[#allocation3 + $0x350] sm:$0xff]  ;;  %v5485_v51 = vpop.f32.mrb[12].mxu0  ;;  %v5491_v5 = vpop.f32.mrb[13].mxu1 }
 0x15a   :  { %7362 = vst [vmem:[#allocation144_spill] sm:$0xff] %v5475_v8  ;;  %7364 = vst [vmem:[#allocation146_spill] sm:$0xff] %v5481_v49  ;;  %v652_v6 = vld [vmem:[#allocation3 + $0x370] sm:$0xff]  ;;  %v5495_v30 = vcombine.low %v640_v14, %v644_v13  ;;  %v5509_v14 = vpop.f32.mrb[14].mxu1 }
 0x15b   :  { %7357 = vst [vmem:[#allocation139_spill] sm:$0xff] %v5463_v9  ;;  %7363 = vst [vmem:[#allocation145_spill] sm:$0xff] %v5477_v62 }
 0x15c   :  { %1503 = vmatpush1.bf16.msra.mxu0 %v5435_v27  ;;  %1546 = vmatpush1.bf16.msra.mxu1 %v5437_v60  ;;  %v645_v27 = vld [vmem:[#allocation3 + $0x338] sm:$0xff]  ;;  %7366 = vst [vmem:[#allocation148_spill] sm:$0xff] %v5485_v51  ;;  %v5487_v60 = vpop.f32.mrb[13].mxu0  ;;  %7368 = vst [vmem:[#allocation150_spill] sm:$0xff] %v5489_v18  ;;  %v5501_v51 = vcombine.high %v648_v15, %v652_v6 }
 0x15d   :  { %1504 = vmatprep.subr.bf16.mxu0 %v5441_v0  ;;  %1547 = vmatprep.subr.bf16.mxu1 %v5443_v63  ;;  %v5483_v63 = vcombine.high %v641_v44, %v645_v27  ;;  %v649_v0 = vld [vmem:[#allocation3 + $0x358] sm:$0xff]  ;;  %7367 = vst [vmem:[#allocation149_spill] sm:$0xff] %v5487_v60  ;;  %7369 = vst [vmem:[#allocation151_spill] sm:$0xff] %v5491_v5  ;;  %v5497_v20 = vcombine.low %v641_v44, %v645_v27  ;;  %v656_v60 = vld [vmem:[#allocation3 + $0x390] sm:$0xff]  ;;  %v5505_v18 = vpop.f32.mrb[14].mxu0  ;;  %v5511_v44 = vpop.f32.mrb[15].mxu1 }
 0x15e   :  { %7370 = vst [vmem:[#allocation152_spill] sm:$0xff] %v5495_v30  ;;  %7372 = vst [vmem:[#allocation154_spill] sm:$0xff] %v5501_v51  ;;  %v660_v5 = vld [vmem:[#allocation3 + $0x3b0] sm:$0xff]  ;;  %v5515_v27 = vcombine.low %v648_v15, %v652_v6  ;;  %v5529_v15 = vpop.f32.mrb[16].mxu1 }
 0x15f   :  { %7365 = vst [vmem:[#allocation147_spill] sm:$0xff] %v5483_v63  ;;  %7371 = vst [vmem:[#allocation153_spill] sm:$0xff] %v5497_v20 }
 0x160   :  { %1505 = vmatpush1.bf16.msra.mxu0 %v5455_v45  ;;  %1548 = vmatpush1.bf16.msra.mxu1 %v5457_v4  ;;  %v653_v45 = vld [vmem:[#allocation3 + $0x378] sm:$0xff]  ;;  %7374 = vst [vmem:[#allocation156_spill] sm:$0xff] %v5505_v18  ;;  %v5507_v4 = vpop.f32.mrb[15].mxu0  ;;  %7376 = vst [vmem:[#allocation158_spill] sm:$0xff] %v5509_v14  ;;  %v5521_v18 = vcombine.high %v656_v60, %v660_v5 }
 0x161   :  { %1506 = vmatprep.subr.bf16.mxu0 %v5461_v37  ;;  %1549 = vmatprep.subr.bf16.mxu1 %v5463_v9  ;;  %v5503_v9 = vcombine.high %v649_v0, %v653_v45  ;;  %v657_v37 = vld [vmem:[#allocation3 + $0x398] sm:$0xff]  ;;  %7375 = vst [vmem:[#allocation157_spill] sm:$0xff] %v5507_v4  ;;  %7377 = vst [vmem:[#allocation159_spill] sm:$0xff] %v5511_v44  ;;  %v5517_v13 = vcombine.low %v649_v0, %v653_v45  ;;  %v664_v4 = vld [vmem:[#allocation3 + $0x3d0] sm:$0xff]  ;;  %v5525_v14 = vpop.f32.mrb[16].mxu0  ;;  %v5531_v0 = vpop.f32.mrb[17].mxu1 }
 0x162   :  { %7378 = vst [vmem:[#allocation160_spill] sm:$0xff] %v5515_v27  ;;  %7380 = vst [vmem:[#allocation162_spill] sm:$0xff] %v5521_v18  ;;  %v668_v44 = vld [vmem:[#allocation3 + $0x3f0] sm:$0xff]  ;;  %v5535_v45 = vcombine.low %v656_v60, %v660_v5 }
 0x163   :  { %7373 = vst [vmem:[#allocation155_spill] sm:$0xff] %v5503_v9  ;;  %7379 = vst [vmem:[#allocation161_spill] sm:$0xff] %v5517_v13 }
 0x164   :  { %1507 = vmatpush1.bf16.msra.mxu0 %v5475_v8  ;;  %1550 = vmatpush1.bf16.msra.mxu1 %v5477_v62  ;;  %v661_v8 = vld [vmem:[#allocation3 + $0x3b8] sm:$0xff]  ;;  %7382 = vst [vmem:[#allocation164_spill] sm:$0xff] %v5525_v14  ;;  %v5527_v62 = vpop.f32.mrb[17].mxu0  ;;  %7384 = vst [vmem:[#allocation166_spill] sm:$0xff] %v5529_v15  ;;  %v5541_v14 = vcombine.high %v664_v4, %v668_v44 }
 0x165   :  { %1508 = vmatprep.subr.bf16.mxu0 %v5481_v49  ;;  %1551 = vmatprep.subr.bf16.mxu1 %v5483_v63  ;;  %v5523_v63 = vcombine.high %v657_v37, %v661_v8  ;;  %v665_v49 = vld [vmem:[#allocation3 + $0x3d8] sm:$0xff]  ;;  %7383 = vst [vmem:[#allocation165_spill] sm:$0xff] %v5527_v62  ;;  %7385 = vst [vmem:[#allocation167_spill] sm:$0xff] %v5531_v0  ;;  %v5537_v6 = vcombine.low %v657_v37, %v661_v8  ;;  %v5545_v62 = vpop.f32.mrb[18].mxu0  ;;  %v5549_v0 = vpop.f32.mrb[18].mxu1 }
 0x166   :  { %7386 = vst [vmem:[#allocation168_spill] sm:$0xff] %v5535_v45  ;;  %7388 = vst [vmem:[#allocation170_spill] sm:$0xff] %v5541_v14  ;;  %v5547_v15 = vpop.f32.mrb[19].mxu0  ;;  %v5555_v37 = vcombine.low %v664_v4, %v668_v44 }
 0x167   :  { %7381 = vst [vmem:[#allocation163_spill] sm:$0xff] %v5523_v63  ;;  %7387 = vst [vmem:[#allocation169_spill] sm:$0xff] %v5537_v6  ;;  %v5561_v8 = vpop.f32.mrb[20].mxu0 }
 0x168   :  { %1509 = vmatpush1.bf16.msra.mxu0 %v5495_v30  ;;  %1552 = vmatpush1.bf16.msra.mxu1 %v5497_v20  ;;  %v669_v30 = vld [vmem:[#allocation3 + $0x3f8] sm:$0xff]  ;;  %7390 = vst [vmem:[#allocation172_spill] sm:$0xff] %v5545_v62  ;;  %7391 = vst [vmem:[#allocation173_spill] sm:$0xff] %v5547_v15  ;;  %v5563_v5 = vpop.f32.mrb[21].mxu0  ;;  %v7430_v62 = vld [vmem:[#allocation62_spill] sm:$0xff] }
 0x169   :  { %1510 = vmatprep.subr.bf16.mxu0 %v5501_v51  ;;  %1553 = vmatprep.subr.bf16.mxu1 %v5503_v9  ;;  %v5543_v9 = vcombine.high %v665_v49, %v669_v30  ;;  %7392 = vst [vmem:[#allocation174_spill] sm:$0xff] %v5549_v0  ;;  %7394 = vst [vmem:[#allocation176_spill] sm:$0xff] %v5555_v37  ;;  %v5557_v60 = vcombine.low %v665_v49, %v669_v30  ;;  %v5571_v4 = vpop.f32.mrb[22].mxu0 }
 0x16a   :  { %7396 = vst [vmem:[#allocation178_spill] sm:$0xff] %v5561_v8  ;;  %7397 = vst [vmem:[#allocation179_spill] sm:$0xff] %v5563_v5  ;;  %v5575_v49 = vpop.f32.mrb[23].mxu0  ;;  %v7428_v8 = vld [vmem:[#allocation60_spill] sm:$0xff] }
 0x16b   :  { %7389 = vst [vmem:[#allocation171_spill] sm:$0xff] %v5543_v9  ;;  %7395 = vst [vmem:[#allocation177_spill] sm:$0xff] %v5557_v60 }
 0x16c   :  { %1511 = vmatpush1.bf16.msra.mxu0 %v5515_v27  ;;  %1554 = vmatpush1.bf16.msra.mxu1 %v5517_v13  ;;  %v5551_v27 = vpop.f32.mrb[19].mxu1  ;;  %7400 = vst [vmem:[#allocation182_spill] sm:$0xff] %v5571_v4  ;;  %7401 = vst [vmem:[#allocation183_spill] sm:$0xff] %v5575_v49 }
 0x16d   :  { %1512 = vmatprep.subr.bf16.mxu0 %v5521_v18  ;;  %1555 = vmatprep.subr.bf16.mxu1 %v5523_v63  ;;  %7393 = vst [vmem:[#allocation175_spill] sm:$0xff] %v5551_v27  ;;  %v5565_v15 = vpop.f32.mrb[20].mxu1  ;;  %v7429_v27 = vld [vmem:[#allocation61_spill] sm:$0xff] }
 0x16e   :  { %7398 = vst [vmem:[#allocation180_spill] sm:$0xff] %v5565_v15  ;;  %v5567_v0 = vpop.f32.mrb[21].mxu1  ;;  %v7427_v15 = vld [vmem:[#allocation59_spill] sm:$0xff] }
 0x16f   :  { %7399 = vst [vmem:[#allocation181_spill] sm:$0xff] %v5567_v0  ;;  %v5577_v30 = vpop.f32.mrb[22].mxu1  ;;  %v5585_v0 = vpop.f32.mrb[24].mxu0 }
 0x170   :  { %1513 = vmatpush1.bf16.msra.mxu0 %v5535_v45  ;;  %1556 = vmatpush1.bf16.msra.mxu1 %v5537_v6  ;;  %7402 = vst [vmem:[#allocation184_spill] sm:$0xff] %v5577_v30  ;;  %v5581_v44 = vpop.f32.mrb[23].mxu1  ;;  %7404 = vst [vmem:[#allocation186_spill] sm:$0xff] %v5585_v0  ;;  %v5589_v4 = vpop.f32.mrb[25].mxu0 }
 0x171   :  { %1514 = vmatprep.subr.bf16.mxu0 %v5541_v14  ;;  %1557 = vmatprep.subr.bf16.mxu1 %v5543_v9  ;;  %7403 = vst [vmem:[#allocation185_spill] sm:$0xff] %v5581_v44  ;;  %7405 = vst [vmem:[#allocation187_spill] sm:$0xff] %v5589_v4  ;;  %v5591_v49 = vpop.f32.mrb[24].mxu1 }
 0x172   :  { %7406 = vst [vmem:[#allocation188_spill] sm:$0xff] %v5591_v49  ;;  %v5593_v30 = vpop.f32.mrb[25].mxu1 }
 0x173   :  { %7407 = vst [vmem:[#allocation189_spill] sm:$0xff] %v5593_v30  ;;  %v5603_v44 = vpop.f32.mrb[26].mxu1 }
 0x174   :  { %1515 = vmatpush1.bf16.msra.mxu0 %v5555_v37  ;;  %1558 = vmatpush1.bf16.msra.mxu1 %v5557_v60  ;;  %7410 = vst [vmem:[#allocation192_spill] sm:$0xff] %v5603_v44  ;;  %v5605_v5 = vpop.f32.mrb[27].mxu1 }
 0x175   :  { %1692 = vmatprep.subr.bf16.mxu0 %v4961_v16  ;;  %1735 = vmatprep.subr.bf16.mxu1 %v4965_v21  ;;  %7411 = vst [vmem:[#allocation193_spill] sm:$0xff] %v5605_v5  ;;  %v5615_v4 = vpop.f32.mrb[28].mxu1 }
 0x176   :  { %7414 = vst [vmem:[#allocation196_spill] sm:$0xff] %v5615_v4  ;;  %v5617_v49 = vpop.f32.mrb[29].mxu1  ;;  %v7426_v4 = vld [vmem:[#allocation58_spill] sm:$0xff] }
 0x177   :  { %1517 = vmatmul.mubr.bf16.vlgmr.msra.gmra.mrb[36].mxu0 %v5319_v33  ;;  %1560 = vmatmul.mubr.bf16.vlgmr.msra.gmra.mrb[36].mxu1 %v5319_v33  ;;  %v5597_v33 = vpop.f32.mrb[26].mxu0  ;;  %7415 = vst [vmem:[#allocation197_spill] sm:$0xff] %v5617_v49  ;;  %v7424_v49 = vld [vmem:[#allocation56_spill] sm:$0xff] }
 0x178   :  { %1693 = vmatpush1.bf16.msra.mxu0 %v4963_v19  ;;  %1736 = vmatpush1.bf16.msra.mxu1 %v4968_v25  ;;  %7408 = vst [vmem:[#allocation190_spill] sm:$0xff] %v5597_v33  ;;  %v5601_v0 = vpop.f32.mrb[27].mxu0 }
 0x179   :  { %1694 = vmatprep.subr.bf16.mxu0 %v4970_v26  ;;  %1737 = vmatprep.subr.bf16.mxu1 %v4974_v29  ;;  %7409 = vst [vmem:[#allocation191_spill] sm:$0xff] %v5601_v0  ;;  %v5609_v30 = vpop.f32.mrb[28].mxu0  ;;  %v5627_v0 = vpop.f32.mrb[30].mxu1 }
 0x17a   :  { %7412 = vst [vmem:[#allocation194_spill] sm:$0xff] %v5609_v30  ;;  %v5613_v33 = vpop.f32.mrb[29].mxu0  ;;  %7418 = vst [vmem:[#allocation200_spill] sm:$0xff] %v5627_v0  ;;  %v5629_v44 = vpop.f32.mrb[31].mxu1  ;;  %v7422_v0 = vld [vmem:[#allocation54_spill] sm:$0xff] }
 0x17b   :  { %7413 = vst [vmem:[#allocation195_spill] sm:$0xff] %v5613_v33  ;;  %v5621_v5 = vpop.f32.mrb[30].mxu0  ;;  %7419 = vst [vmem:[#allocation201_spill] sm:$0xff] %v5629_v44  ;;  %v7420_v44 = vld [vmem:[#allocation52_spill] sm:$0xff]  ;;  %v7425_v33 = vld [vmem:[#allocation57_spill] sm:$0xff] }
 0x17c   :  { %1695 = vmatpush1.bf16.msra.mxu0 %v4981_v31  ;;  %1738 = vmatpush1.bf16.msra.mxu1 %v4989_v35  ;;  %7416 = vst [vmem:[#allocation198_spill] sm:$0xff] %v5621_v5  ;;  %v5625_v30 = vpop.f32.mrb[31].mxu0  ;;  %v7423_v5 = vld [vmem:[#allocation55_spill] sm:$0xff] }
 0x17d   :  { %1696 = vmatprep.subr.bf16.mxu0 %v4985_v34  ;;  %1739 = vmatprep.subr.bf16.mxu1 %v4993_v36  ;;  %7417 = vst [vmem:[#allocation199_spill] sm:$0xff] %v5625_v30  ;;  %v7421_v30 = vld [vmem:[#allocation53_spill] sm:$0xff] }
 0x180   :  { %1697 = vmatpush1.bf16.msra.mxu0 %v5000_v38  ;;  %1740 = vmatpush1.bf16.msra.mxu1 %v5006_v39 }
 0x181   :  { %1698 = vmatprep.subr.bf16.mxu0 %v5015_v43  ;;  %1741 = vmatprep.subr.bf16.mxu1 %v5020_v46 }
 0x184   :  { %1699 = vmatpush1.bf16.msra.mxu0 %v5022_v47  ;;  %1742 = vmatpush1.bf16.msra.mxu1 %v5024_v48 }
 0x185   :  { %1700 = vmatprep.subr.bf16.mxu0 %v5032_v52  ;;  %1743 = vmatprep.subr.bf16.mxu1 %v5039_v55 }
 0x188   :  { %1701 = vmatpush1.bf16.msra.mxu0 %v5041_v56  ;;  %1744 = vmatpush1.bf16.msra.mxu1 %v5043_v57 }
 0x189   :  { %1702 = vmatprep.subr.bf16.mxu0 %v5051_v61  ;;  %1745 = vmatprep.subr.bf16.mxu1 %v5058_v1 }
 0x18c   :  { %1703 = vmatpush1.bf16.msra.mxu0 %v5060_v2  ;;  %1746 = vmatpush1.bf16.msra.mxu1 %v5062_v3 }
 0x18d   :  { %1704 = vmatprep.subr.bf16.mxu0 %v5070_v7  ;;  %1747 = vmatprep.subr.bf16.mxu1 %v5077_v10 }
 0x190   :  { %1705 = vmatpush1.bf16.msra.mxu0 %v5079_v11  ;;  %1748 = vmatpush1.bf16.msra.mxu1 %v5081_v12 }
 0x191   :  { %1706 = vmatprep.subr.bf16.mxu0 %v5089_v17  ;;  %1749 = vmatprep.subr.bf16.mxu1 %v5096_v22 }
 0x194   :  { %1707 = vmatpush1.bf16.msra.mxu0 %v5098_v23  ;;  %1750 = vmatpush1.bf16.msra.mxu1 %v5100_v24 }
 0x195   :  { %1708 = vmatprep.subr.bf16.mxu0 %v5108_v32  ;;  %1751 = vmatprep.subr.bf16.mxu1 %v5115_v40  ;;  %v7450_v40 = vsub.s32 3, %v5272_v28 }
 0x198   :  { %1709 = vmatpush1.bf16.msra.mxu0 %v5117_v41  ;;  %1752 = vmatpush1.bf16.msra.mxu1 %v5119_v42 }
 0x199   :  { %1710 = vmatprep.subr.bf16.mxu0 %v5127_v50  ;;  %1753 = vmatprep.subr.bf16.mxu1 %v5134_v54 }
 0x19c   :  { %1711 = vmatpush1.bf16.msra.mxu0 %v5136_v58  ;;  %1754 = vmatpush1.bf16.msra.mxu1 %v5138_v59 }
 0x19d   :  { %1712 = vmatprep.subr.bf16.mxu0 %v7420_v44  ;;  %1755 = vmatprep.subr.bf16.mxu1 %v7421_v30  ;;  %v7431_v44 = vld [vmem:[#allocation63_spill] sm:$0xff]  ;;  %v7432_v30 = vld [vmem:[#allocation64_spill] sm:$0xff] }
 0x1a0   :  { %1713 = vmatpush1.bf16.msra.mxu0 %v7422_v0  ;;  %1756 = vmatpush1.bf16.msra.mxu1 %v7423_v5  ;;  %v7433_v0 = vld [vmem:[#allocation66_spill] sm:$0xff]  ;;  %v7434_v5 = vld [vmem:[#allocation65_spill] sm:$0xff] }
 0x1a1   :  { %1714 = vmatprep.subr.bf16.mxu0 %v7424_v49  ;;  %1757 = vmatprep.subr.bf16.mxu1 %v7425_v33  ;;  %v7435_v49 = vld [vmem:[#allocation67_spill] sm:$0xff]  ;;  %v7436_v33 = vld [vmem:[#allocation68_spill] sm:$0xff] }
 0x1a4   :  { %1715 = vmatpush1.bf16.msra.mxu0 %v7426_v4  ;;  %1758 = vmatpush1.bf16.msra.mxu1 %v7427_v15  ;;  %v7437_v4 = vld [vmem:[#allocation69_spill] sm:$0xff]  ;;  %v7438_v15 = vld [vmem:[#allocation70_spill] sm:$0xff] }
 0x1a5   :  { %1716 = vmatprep.subr.bf16.mxu0 %v7428_v8  ;;  %1759 = vmatprep.subr.bf16.mxu1 %v7429_v27  ;;  %v7439_v8 = vld [vmem:[#allocation71_spill] sm:$0xff]  ;;  %v7440_v27 = vld [vmem:[#allocation72_spill] sm:$0xff] }
 0x1a8   :  { %1717 = vmatpush1.bf16.msra.mxu0 %v7430_v62  ;;  %1760 = vmatpush1.bf16.msra.mxu1 %v7431_v44  ;;  %v7441_v62 = vld [vmem:[#allocation73_spill] sm:$0xff]  ;;  %v7442_v44 = vld [vmem:[#allocation74_spill] sm:$0xff] }
 0x1a9   :  { %1718 = vmatprep.subr.bf16.mxu0 %v7432_v30  ;;  %1761 = vmatprep.subr.bf16.mxu1 %v7433_v0  ;;  %v7443_v30 = vld [vmem:[#allocation75_spill] sm:$0xff]  ;;  %v7444_v0 = vld [vmem:[#allocation76_spill] sm:$0xff] }
 0x1ac   :  { %1719 = vmatpush1.bf16.msra.mxu0 %v7434_v5  ;;  %1762 = vmatpush1.bf16.msra.mxu1 %v7435_v49  ;;  %v7445_v5 = vld [vmem:[#allocation77_spill] sm:$0xff] }
 0x1ad   :  { %1720 = vmatprep.subr.bf16.mxu0 %v7436_v33  ;;  %1763 = vmatprep.subr.bf16.mxu1 %v7437_v4  ;;  %v670_v4 = vld [vmem:[%s6891_s4] sm:$0xf] }
 0x1b0   :  { %1721 = vmatpush1.bf16.msra.mxu0 %v7438_v15  ;;  %1764 = vmatpush1.bf16.msra.mxu1 %v7439_v8  ;;  %v7446_v15 = vsub.s32 0, %v5272_v28 }
 0x1b1   :  { %1722 = vmatprep.subr.bf16.mxu0 %v7440_v27  ;;  %1765 = vmatprep.subr.bf16.mxu1 %v7441_v62  ;;  %v7448_v27 = vsub.s32 1, %v5272_v28 }
 0x1b2   :  { %v5684_v33 = vrot.slane %v670_v4, %v7446_v15 }
 0x1b3   :  { %v5688_v8 = vrot.slane %v670_v4, %v7448_v27  ;;  %v5695_v27 = vrot.slane %v670_v4, %v7450_v40 }
 0x1b4   :  { %1723 = vmatpush1.bf16.msra.mxu0 %v7442_v44  ;;  %1766 = vmatpush1.bf16.msra.mxu1 %v7443_v30  ;;  %7447 = vst [vmem:[#allocation202_spill] sm:$0xff] %v5684_v33 }
 0x1b5   :  { %1778 = vmatprep.subr.bf16.mxu0 %v7444_v0  ;;  %1821 = vmatprep.subr.bf16.mxu1 %v7445_v5  ;;  %7449 = vst [vmem:[#allocation203_spill] sm:$0xff] %v5688_v8  ;;  %7451 = vst [vmem:[#allocation204_spill] sm:$0xff] %v5695_v27 }
 0x20a   :  { %v1432_v62 = vpop.f32.mrb[32].mxu0  ;;  %v1475_v44 = vpop.f32.mrb[32].mxu1 }
 0x20b   :  { %v1570_v30 = vadd.f32 %v1432_v62, %v5684_v33  ;;  %v1434_v49 = vpop.f32.mrb[33].mxu0  ;;  %v1477_v0 = vpop.f32.mrb[33].mxu1 }
 0x20c   :  { %v1571_v5 = vadd.f32 %v1434_v49, %v5688_v8  ;;  %v1436_v59 = vpop.f32.mrb[34].mxu0  ;;  %v1479_v58 = vpop.f32.mrb[34].mxu1  ;;  %v7452_v49 = vsub.s32 2, %v5272_v28 }
 0x20d   :  { %v3983_v54 = vmul.f32 -1.442695, %v1570_v30  ;;  %v1574_v50 = vadd.f32 %v1436_v59, %v5684_v33  ;;  %v1438_v42 = vpop.f32.mrb[35].mxu0  ;;  %v1481_v15 = vpop.f32.mrb[35].mxu1  ;;  %v1573_v30 = vadd.f32 %v1477_v0, %v5695_v27 }
 0x20e   :  { %v3985_v41 = vmul.f32 -1.442695, %v1571_v5  ;;  %v1575_v32 = vadd.f32 %v1438_v42, %v5688_v8  ;;  %v5700_v23 = vrot.slane %v670_v4, %v7452_v49  ;;  %v1577_v40 = vadd.f32 %v1481_v15, %v5695_v27 }
 0x20f   :  { %4294 = vpow2.f32 %v3983_v54  ;;  %v3984_v62 = vmul.f32 -1.442695, %v1574_v50  ;;  %v3987_v5 = vmul.f32 -1.442695, %v1573_v30 }
 0x210   :  { %4296 = vpow2.f32 %v3985_v41  ;;  %v3986_v24 = vmul.f32 -1.442695, %v1575_v32  ;;  %7453 = vst [vmem:[#allocation205_spill] sm:$0xff] %v5700_v23  ;;  %v1572_v59 = vadd.f32 %v1475_v44, %v5700_v23  ;;  %v1576_v33 = vadd.f32 %v1479_v58, %v5700_v23 }
 0x211   :  { %4298 = vpow2.f32 %v3984_v62  ;;  %v3988_v32 = vmul.f32 -1.442695, %v1577_v40 }
 0x212   :  { %4300 = vpow2.f32 %v3986_v24 }
 0x213   :  { %4302 = vtanh.f32 %v1572_v59 }
 0x214   :  { %4304 = vpow2.f32 %v3987_v5 }
 0x215   :  { %4306 = vtanh.f32 %v1576_v33 }
 0x219   :  { %v4295_v42 = vpop.eup %4294 }
 0x21a   :  { %v4297_v50 = vpop.eup %4296  ;;  %v1584_v41 = vadd.f32 1.0, %v4295_v42 }
 0x21b   :  { %v1596_v54 = vadd.f32 1.0, %v4297_v50  ;;  %v4299_v28 = vpop.eup %4298 }
 0x21c   :  { %4308 = vrcp.f32 %v1584_v41  ;;  %v1585_v0 = vadd.f32 1.0, %v4299_v28  ;;  %v4301_v24 = vpop.eup %4300 }
 0x21d   :  { %4310 = vrcp.f32 %v1596_v54  ;;  %v1597_v4 = vadd.f32 1.0, %v4301_v24  ;;  %v4303_v44 = vpop.eup %4302 }
 0x21e   :  { %4312 = vpow2.f32 %v3988_v32  ;;  %v4305_v15 = vpop.eup %4304 }
 0x21f   :  { %4314 = vrcp.f32 %v1585_v0  ;;  %v4307_v58 = vpop.eup %4306  ;;  %v1610_v42 = vadd.f32 1.0, %v4305_v15 }
 0x220   :  { %4316 = vrcp.f32 %v1597_v4 }
 0x221   :  { %4318 = vrcp.f32 %v1610_v42  ;;  %v7459_v42 = vld [vmem:[#allocation81_spill] sm:$0xff] }
 0x226   :  { %v4309_v62 = vpop.eup %4308 }
 0x227   :  { %v4311_v49 = vpop.eup %4310  ;;  %v1618_v30 = vmul.f32 %v4309_v62, %v4303_v44 }
 0x228   :  { %v4313_v59 = vpop.eup %4312  ;;  %v1616_v5 = vmul.f32 0.0, %v4311_v49 }
 0x229   :  { %v4315_v40 = vpop.eup %4314  ;;  %v1611_v54 = vadd.f32 1.0, %v4313_v59  ;;  %v7457_v59 = vld [vmem:[#allocation83_spill] sm:$0xff] }
 0x22a   :  { %v5706_v33 = vadd.f32 %v1618_v30, %v1616_v5  ;;  %v1619_v50 = vmul.f32 %v4315_v40, %v4307_v58  ;;  %v4317_v41 = vpop.eup %4316  ;;  %v7456_v58 = vld [vmem:[#allocation84_spill] sm:$0xff]  ;;  %v7458_v5 = vld [vmem:[#allocation86_spill] sm:$0xff] }
 0x22b   :  { %v1617_v28 = vmul.f32 0.0, %v4317_v41  ;;  %v4319_v0 = vpop.eup %4318  ;;  %v235_v30 = vadd.f32 %v7456_v58, %v5281_v53  ;;  %v396_v40 = vadd.f32 %v7458_v5, %v7457_v59  ;;  %v7465_v5 = vld [vmem:[#allocation125_spill] sm:$0xff] }
 0x22c   :  { %7454 = vst [vmem:[#allocation206_spill] sm:$0xff] %v5706_v33  ;;  %4320 = vtanh.f32 %v5706_v33  ;;  %v243_v8 = vadd.f32 %v7465_v5, %v7459_v42 }
 0x22d   :  { %v5709_v32 = vadd.f32 %v1619_v50, %v1617_v28  ;;  %4322 = vrcp.f32 %v1611_v54  ;;  %v7460_v50 = vld [vmem:[#allocation85_spill] sm:$0xff]  ;;  %v7461_v54 = vld [vmem:[#allocation82_spill] sm:$0xff]  ;;  %v7462_v28 = vld [vmem:[#allocation87_spill] sm:$0xff] }
 0x22e   :  { %v237_v41 = vadd.f32 %v7460_v50, %v7459_v42  ;;  %v7466_v50 = vld [vmem:[#allocation127_spill] sm:$0xff] }
 0x22f   :  { %7455 = vst [vmem:[#allocation207_spill] sm:$0xff] %v5709_v32  ;;  %4324 = vtanh.f32 %v5709_v32  ;;  %v398_v32 = vadd.f32 %v7462_v28, %v7461_v54  ;;  %v404_v22 = vadd.f32 %v7466_v50, %v7461_v54 }
 0x236   :  { %v4321_v24 = vpop.eup %4320 }
 0x237   :  { %v4323_v4 = vpop.eup %4322  ;;  %v1624_v62 = vmul.f32 %v4321_v24, %v4319_v0 }
 0x239   :  { %v4325_v44 = vpop.eup %4324 }
 0x23a   :  { %v1625_v15 = vmul.f32 %v4325_v44, %v4323_v4  ;;  %v7463_v4 = vld [vmem:[#allocation124_spill] sm:$0xff] }
 0x23b   :  { %v241_v44 = vadd.f32 %v7463_v4, %v5281_v53 }
 0x23c   :  { %v5712_v49 = vpack.c.bf16 %v1625_v15, %v1624_v62  ;;  %v7464_v62 = vld [vmem:[#allocation126_spill] sm:$0xff] }
 0x23d   :  { %v402_v15 = vadd.f32 %v7464_v62, %v7457_v59 }
 0x23e   :  { %1724 = vmatprep.mubr.bf16.mxu0 %v5712_v49  ;;  %1767 = vmatprep.mubr.bf16.mxu1 %v5712_v49 }
 0x24a   :  { %v1518_v0 = vpop.f32.mrb[36].mxu0  ;;  %v1561_v24 = vpop.f32.mrb[36].mxu1 }
 0x24b   :  { %v1634_v33 = vadd.f32 %v1518_v0, %v235_v30  ;;  %v1636_v23 = vadd.f32 %v1561_v24, %v396_v40  ;;  %v1520_v58 = vpop.f32.mrb[37].mxu0  ;;  %v1563_v27 = vpop.f32.mrb[37].mxu1 }
 0x24c   :  { %v1635_v17 = vadd.f32 %v1520_v58, %v237_v41  ;;  %v1637_v28 = vadd.f32 %v1563_v27, %v398_v32  ;;  %v1522_v12 = vpop.f32.mrb[38].mxu0  ;;  %v1565_v11 = vpop.f32.mrb[38].mxu1 }
 0x24d   :  { %v3989_v10 = vmul.f32 -1.442695, %v1634_v33  ;;  %v1638_v7 = vadd.f32 %v1522_v12, %v241_v44  ;;  %v1640_v4 = vadd.f32 %v1565_v11, %v402_v15  ;;  %v1524_v53 = vpop.f32.mrb[39].mxu0  ;;  %v1567_v3 = vpop.f32.mrb[39].mxu1  ;;  %v7467_v15 = vld [vmem:[#allocation88_spill] sm:$0xff] }
 0x24e   :  { %v3991_v62 = vmul.f32 -1.442695, %v1635_v17  ;;  %v1639_v30 = vadd.f32 %v1524_v53, %v243_v8  ;;  %v1641_v40 = vadd.f32 %v1567_v3, %v404_v22  ;;  %v3993_v5 = vmul.f32 -1.442695, %v1637_v28 }
 0x24f   :  { %4326 = vpow2.f32 %v3989_v10  ;;  %v3990_v0 = vmul.f32 -1.442695, %v1638_v7 }
 0x250   :  { %4328 = vpow2.f32 %v3991_v62  ;;  %v3992_v24 = vmul.f32 -1.442695, %v1639_v30  ;;  %v3994_v33 = vmul.f32 -1.442695, %v1641_v40 }
 0x251   :  { %4330 = vpow2.f32 %v3990_v0 }
 0x252   :  { %4332 = vpow2.f32 %v3992_v24  ;;  %v7468_v24 = vld [vmem:[#allocation89_spill] sm:$0xff] }
 0x253   :  { %4334 = vtanh.f32 %v1636_v23 }
 0x254   :  { %4336 = vpow2.f32 %v3993_v5 }
 0x255   :  { %4338 = vtanh.f32 %v1640_v4 }
 0x259   :  { %v4327_v50 = vpop.eup %4326 }
 0x25a   :  { %v4329_v27 = vpop.eup %4328  ;;  %v1648_v32 = vadd.f32 1.0, %v4327_v50 }
 0x25b   :  { %v1660_v12 = vadd.f32 1.0, %v4329_v27  ;;  %v4331_v11 = vpop.eup %4330 }
 0x25c   :  { %4340 = vrcp.f32 %v1648_v32  ;;  %v1649_v17 = vadd.f32 1.0, %v4331_v11  ;;  %v4333_v3 = vpop.eup %4332 }
 0x25d   :  { %4342 = vrcp.f32 %v1660_v12  ;;  %v1661_v7 = vadd.f32 1.0, %v4333_v3  ;;  %v4335_v10 = vpop.eup %4334 }
 0x25e   :  { %4344 = vpow2.f32 %v3994_v33  ;;  %v4337_v22 = vpop.eup %4336 }
 0x25f   :  { %4346 = vrcp.f32 %v1649_v17  ;;  %v4339_v53 = vpop.eup %4338  ;;  %v1674_v4 = vadd.f32 1.0, %v4337_v22  ;;  %v7471_v22 = vld [vmem:[#allocation90_spill] sm:$0xff] }
 0x260   :  { %4348 = vrcp.f32 %v1661_v7  ;;  %v7469_v7 = vld [vmem:[#allocation78_spill] sm:$0xff] }
 0x261   :  { %4350 = vrcp.f32 %v1674_v4  ;;  %v7480_v4 = vld [vmem:[#allocation99_spill] sm:$0xff] }
 0x266   :  { %v4341_v8 = vpop.eup %4340 }
 0x267   :  { %v4343_v23 = vpop.eup %4342  ;;  %v1682_v41 = vmul.f32 %v4341_v8, %v4335_v10  ;;  %v7470_v10 = vld [vmem:[#allocation79_spill] sm:$0xff]  ;;  %v7473_v8 = vld [vmem:[#allocation92_spill] sm:$0xff] }
 0x268   :  { %v4345_v44 = vpop.eup %4344  ;;  %v1680_v58 = vmul.f32 %v4343_v23, %v7467_v15  ;;  %v7474_v23 = vld [vmem:[#allocation93_spill] sm:$0xff]  ;;  %v7477_v15 = vld [vmem:[#allocation96_spill] sm:$0xff] }
 0x269   :  { %v4347_v28 = vpop.eup %4346  ;;  %v1675_v0 = vadd.f32 1.0, %v4345_v44  ;;  %v7476_v44 = vld [vmem:[#allocation95_spill] sm:$0xff] }
 0x26a   :  { %v5733_v62 = vadd.f32 %v1682_v41, %v1680_v58  ;;  %v1683_v30 = vmul.f32 %v4347_v28, %v4339_v53  ;;  %v4349_v40 = vpop.eup %4348  ;;  %v7472_v53 = vld [vmem:[#allocation91_spill] sm:$0xff]  ;;  %v7475_v41 = vld [vmem:[#allocation94_spill] sm:$0xff]  ;;  %v7478_v58 = vld [vmem:[#allocation97_spill] sm:$0xff] }
 0x26b   :  { %v1681_v5 = vmul.f32 %v4349_v40, %v7468_v24  ;;  %v4351_v27 = vpop.eup %4350  ;;  %v7479_v28 = vld [vmem:[#allocation98_spill] sm:$0xff]  ;;  %v7485_v24 = vld [vmem:[#allocation104_spill] sm:$0xff] }
 0x26c   :  { %4352 = vtanh.f32 %v5733_v62  ;;  %v7483_v40 = vld [vmem:[#allocation102_spill] sm:$0xff] }
 0x26d   :  { %v5737_v50 = vadd.f32 %v1683_v30, %v1681_v5  ;;  %4354 = vrcp.f32 %v1675_v0  ;;  %v7482_v30 = vld [vmem:[#allocation101_spill] sm:$0xff]  ;;  %v7484_v0 = vld [vmem:[#allocation103_spill] sm:$0xff] }
 0x26e   :  { %v7486_v5 = vld [vmem:[#allocation105_spill] sm:$0xff] }
 0x26f   :  { %4356 = vtanh.f32 %v5737_v50 }
 0x276   :  { %v4353_v32 = vpop.eup %4352 }
 0x277   :  { %v4355_v33 = vpop.eup %4354  ;;  %v1688_v11 = vmul.f32 %v4353_v32, %v4351_v27  ;;  %v7487_v27 = vld [vmem:[#allocation106_spill] sm:$0xff]  ;;  %v7488_v32 = vld [vmem:[#allocation107_spill] sm:$0xff] }
 0x279   :  { %v4357_v12 = vpop.eup %4356 }
 0x27a   :  { %v1689_v17 = vmul.f32 %v4357_v12, %v4355_v33  ;;  %v7489_v33 = vld [vmem:[#allocation108_spill] sm:$0xff]  ;;  %v7490_v12 = vld [vmem:[#allocation109_spill] sm:$0xff] }
 0x27c   :  { %v5740_v3 = vpack.c.bf16 %v1689_v17, %v1688_v11  ;;  %v7491_v11 = vld [vmem:[#allocation110_spill] sm:$0xff]  ;;  %v7492_v17 = vld [vmem:[#allocation111_spill] sm:$0xff] }
 0x27e   :  { %1725 = vmatmul.mubr.bf16.vlgmr.msra.gmra.mrb[40].mxu0 %v5740_v3  ;;  %1768 = vmatmul.mubr.bf16.vlgmr.msra.gmra.mrb[40].mxu1 %v5740_v3 }
 0x27f   :  { %1779 = vmatpush1.bf16.msra.mxu0 %v7469_v7  ;;  %1822 = vmatpush1.bf16.msra.mxu1 %v7470_v10 }
 0x280   :  { %1810 = vmatprep.mubr.bf16.mxu0 %v5712_v49  ;;  %1853 = vmatprep.mubr.bf16.mxu1 %v5712_v49  ;;  %v7481_v49 = vld [vmem:[#allocation100_spill] sm:$0xff] }
 0x281   :  { %1780 = vmatprep.subr.bf16.mxu0 %v7471_v22  ;;  %1823 = vmatprep.subr.bf16.mxu1 %v7472_v53 }
 0x283   :  { %1781 = vmatpush1.bf16.msra.mxu0 %v7473_v8  ;;  %1824 = vmatpush1.bf16.msra.mxu1 %v7474_v23 }
 0x284   :  { %1782 = vmatprep.subr.bf16.mxu0 %v7475_v41  ;;  %1825 = vmatprep.subr.bf16.mxu1 %v7476_v44 }
 0x287   :  { %1783 = vmatpush1.bf16.msra.mxu0 %v7477_v15  ;;  %1826 = vmatpush1.bf16.msra.mxu1 %v7478_v58 }
 0x288   :  { %1784 = vmatprep.subr.bf16.mxu0 %v7479_v28  ;;  %1827 = vmatprep.subr.bf16.mxu1 %v7480_v4 }
 0x28b   :  { %1785 = vmatpush1.bf16.msra.mxu0 %v7481_v49  ;;  %1828 = vmatpush1.bf16.msra.mxu1 %v7482_v30  ;;  %v7493_v30 = vld [vmem:[#allocation112_spill] sm:$0xff] }
 0x28c   :  { %1786 = vmatprep.subr.bf16.mxu0 %v7483_v40  ;;  %1829 = vmatprep.subr.bf16.mxu1 %v7484_v0  ;;  %v7494_v40 = vld [vmem:[#allocation113_spill] sm:$0xff]  ;;  %v7495_v0 = vld [vmem:[#allocation114_spill] sm:$0xff] }
 0x28f   :  { %1787 = vmatpush1.bf16.msra.mxu0 %v7485_v24  ;;  %1830 = vmatpush1.bf16.msra.mxu1 %v7486_v5  ;;  %v7496_v24 = vld [vmem:[#allocation115_spill] sm:$0xff]  ;;  %v7497_v5 = vld [vmem:[#allocation116_spill] sm:$0xff] }
 0x290   :  { %1788 = vmatprep.subr.bf16.mxu0 %v7487_v27  ;;  %1831 = vmatprep.subr.bf16.mxu1 %v7488_v32  ;;  %v7498_v27 = vld [vmem:[#allocation117_spill] sm:$0xff]  ;;  %v7499_v32 = vld [vmem:[#allocation118_spill] sm:$0xff] }
 0x293   :  { %1789 = vmatpush1.bf16.msra.mxu0 %v7489_v33  ;;  %1832 = vmatpush1.bf16.msra.mxu1 %v7490_v12  ;;  %v7500_v33 = vld [vmem:[#allocation119_spill] sm:$0xff]  ;;  %v7501_v12 = vld [vmem:[#allocation120_spill] sm:$0xff] }
 0x294   :  { %1790 = vmatprep.subr.bf16.mxu0 %v7491_v11  ;;  %1833 = vmatprep.subr.bf16.mxu1 %v7492_v17  ;;  %v7502_v11 = vld [vmem:[#allocation121_spill] sm:$0xff]  ;;  %v7503_v17 = vld [vmem:[#allocation122_spill] sm:$0xff] }
 0x297   :  { %1791 = vmatpush1.bf16.msra.mxu0 %v7493_v30  ;;  %1834 = vmatpush1.bf16.msra.mxu1 %v7494_v40  ;;  %v7504_v30 = vld [vmem:[#allocation123_spill] sm:$0xff]  ;;  %v7505_v40 = vld [vmem:[#allocation128_spill] sm:$0xff] }
 0x298   :  { %1792 = vmatprep.subr.bf16.mxu0 %v7495_v0  ;;  %1835 = vmatprep.subr.bf16.mxu1 %v7496_v24  ;;  %v7506_v0 = vld [vmem:[#allocation129_spill] sm:$0xff]  ;;  %v7507_v24 = vld [vmem:[#allocation130_spill] sm:$0xff] }
 0x29b   :  { %1793 = vmatpush1.bf16.msra.mxu0 %v7497_v5  ;;  %1836 = vmatpush1.bf16.msra.mxu1 %v7498_v27  ;;  %v7508_v5 = vld [vmem:[#allocation131_spill] sm:$0xff]  ;;  %v7509_v27 = vld [vmem:[#allocation136_spill] sm:$0xff] }
 0x29c   :  { %1794 = vmatprep.subr.bf16.mxu0 %v7499_v32  ;;  %1837 = vmatprep.subr.bf16.mxu1 %v7500_v33  ;;  %v7510_v32 = vld [vmem:[#allocation137_spill] sm:$0xff]  ;;  %v7511_v33 = vld [vmem:[#allocation138_spill] sm:$0xff] }
 0x29f   :  { %1795 = vmatpush1.bf16.msra.mxu0 %v7501_v12  ;;  %1838 = vmatpush1.bf16.msra.mxu1 %v7502_v11  ;;  %v7512_v12 = vld [vmem:[#allocation139_spill] sm:$0xff]  ;;  %v7513_v11 = vld [vmem:[#allocation144_spill] sm:$0xff] }
 0x2a0   :  { %1796 = vmatprep.subr.bf16.mxu0 %v7503_v17  ;;  %1839 = vmatprep.subr.bf16.mxu1 %v7504_v30  ;;  %v7514_v17 = vld [vmem:[#allocation145_spill] sm:$0xff]  ;;  %v7515_v30 = vld [vmem:[#allocation146_spill] sm:$0xff] }
 0x2a3   :  { %1797 = vmatpush1.bf16.msra.mxu0 %v7505_v40  ;;  %1840 = vmatpush1.bf16.msra.mxu1 %v7506_v0  ;;  %v7516_v40 = vld [vmem:[#allocation147_spill] sm:$0xff]  ;;  %v7517_v0 = vld [vmem:[#allocation152_spill] sm:$0xff] }
 0x2a4   :  { %1798 = vmatprep.subr.bf16.mxu0 %v7507_v24  ;;  %1841 = vmatprep.subr.bf16.mxu1 %v7508_v5 }
 0x2a7   :  { %1799 = vmatpush1.bf16.msra.mxu0 %v7509_v27  ;;  %1842 = vmatpush1.bf16.msra.mxu1 %v7510_v32  ;;  %v7518_v27 = vld [vmem:[#allocation155_spill] sm:$0xff]  ;;  %v7519_v32 = vld [vmem:[#allocation160_spill] sm:$0xff] }
 0x2a8   :  { %1800 = vmatprep.subr.bf16.mxu0 %v7511_v33  ;;  %1843 = vmatprep.subr.bf16.mxu1 %v7512_v12 }
 0x2ab   :  { %1801 = vmatpush1.bf16.msra.mxu0 %v7513_v11  ;;  %1844 = vmatpush1.bf16.msra.mxu1 %v7514_v17 }
 0x2ac   :  { %1802 = vmatprep.subr.bf16.mxu0 %v7515_v30  ;;  %1845 = vmatprep.subr.bf16.mxu1 %v7516_v40 }
 0x2af   :  { %1803 = vmatpush1.bf16.msra.mxu0 %v7517_v0  ;;  %1846 = vmatpush1.bf16.msra.mxu1 %v5497_v20 }
 0x2b0   :  { %1804 = vmatprep.subr.bf16.mxu0 %v5501_v51  ;;  %1847 = vmatprep.subr.bf16.mxu1 %v7518_v27 }
 0x2b3   :  { %1805 = vmatpush1.bf16.msra.mxu0 %v7519_v32  ;;  %1848 = vmatpush1.bf16.msra.mxu1 %v5517_v13 }
 0x2b4   :  { %1806 = vmatprep.subr.bf16.mxu0 %v5521_v18  ;;  %1849 = vmatprep.subr.bf16.mxu1 %v5523_v63 }
 0x2b7   :  { %1807 = vmatpush1.bf16.msra.mxu0 %v5535_v45  ;;  %1850 = vmatpush1.bf16.msra.mxu1 %v5537_v6 }
 0x2b8   :  { %1808 = vmatprep.subr.bf16.mxu0 %v5541_v14  ;;  %1851 = vmatprep.subr.bf16.mxu1 %v5543_v9 }
 0x2bb   :  { %1809 = vmatpush1.bf16.msra.mxu0 %v5555_v37  ;;  %1852 = vmatpush1.bf16.msra.mxu1 %v5557_v60 }
 0x2bc   :  { %1986 = vmatprep.subr.bf16.mxu0 %v4961_v16  ;;  %2029 = vmatprep.subr.bf16.mxu1 %v4965_v21 }
 0x2be   :  { %1811 = vmatmul.mubr.bf16.vlgmr.msra.gmra.mrb[44].mxu0 %v5740_v3  ;;  %1854 = vmatmul.mubr.bf16.vlgmr.msra.gmra.mrb[44].mxu1 %v5740_v3  ;;  %v7520_v3 = vld [vmem:[#allocation35_spill] sm:$0xff] }
 0x2bf   :  { %1987 = vmatpush1.bf16.msra.mxu0 %v4963_v19  ;;  %2030 = vmatpush1.bf16.msra.mxu1 %v4968_v25 }
 0x2c0   :  { %1988 = vmatprep.subr.bf16.mxu0 %v4970_v26  ;;  %2031 = vmatprep.subr.bf16.mxu1 %v4974_v29  ;;  %v7565_v29 = vld [vmem:[#allocation204_spill] sm:$0xff]  ;;  %v7566_v26 = vld [vmem:[#allocation205_spill] sm:$0xff] }
 0x2c3   :  { %1989 = vmatpush1.bf16.msra.mxu0 %v4981_v31  ;;  %2032 = vmatpush1.bf16.msra.mxu1 %v4989_v35 }
 0x2c4   :  { %1990 = vmatprep.subr.bf16.mxu0 %v4985_v34  ;;  %2033 = vmatprep.subr.bf16.mxu1 %v4993_v36 }
 0x2c7   :  { %1991 = vmatpush1.bf16.msra.mxu0 %v5000_v38  ;;  %2034 = vmatpush1.bf16.msra.mxu1 %v5006_v39  ;;  %v7564_v38 = vld [vmem:[#allocation203_spill] sm:$0xff] }
 0x2c8   :  { %1992 = vmatprep.subr.bf16.mxu0 %v5015_v43  ;;  %2035 = vmatprep.subr.bf16.mxu1 %v5020_v46  ;;  %v7521_v46 = vld [vmem:[#allocation36_spill] sm:$0xff]  ;;  %v7563_v43 = vld [vmem:[#allocation202_spill] sm:$0xff] }
 0x2cb   :  { %1993 = vmatpush1.bf16.msra.mxu0 %v5022_v47  ;;  %2036 = vmatpush1.bf16.msra.mxu1 %v5024_v48  ;;  %v7522_v47 = vld [vmem:[#allocation37_spill] sm:$0xff]  ;;  %v7523_v48 = vld [vmem:[#allocation38_spill] sm:$0xff] }
 0x2cc   :  { %1994 = vmatprep.subr.bf16.mxu0 %v5032_v52  ;;  %2037 = vmatprep.subr.bf16.mxu1 %v5039_v55  ;;  %v7524_v52 = vld [vmem:[#allocation39_spill] sm:$0xff]  ;;  %v7525_v55 = vld [vmem:[#allocation40_spill] sm:$0xff] }
 0x2cf   :  { %1995 = vmatpush1.bf16.msra.mxu0 %v5041_v56  ;;  %2038 = vmatpush1.bf16.msra.mxu1 %v5043_v57  ;;  %v7526_v56 = vld [vmem:[#allocation41_spill] sm:$0xff]  ;;  %v7527_v57 = vld [vmem:[#allocation42_spill] sm:$0xff] }
 0x2d0   :  { %1996 = vmatprep.subr.bf16.mxu0 %v5051_v61  ;;  %2039 = vmatprep.subr.bf16.mxu1 %v5058_v1  ;;  %v7528_v61 = vld [vmem:[#allocation43_spill] sm:$0xff]  ;;  %v7529_v1 = vld [vmem:[#allocation44_spill] sm:$0xff] }
 0x2d3   :  { %1997 = vmatpush1.bf16.msra.mxu0 %v5060_v2  ;;  %2040 = vmatpush1.bf16.msra.mxu1 %v7520_v3  ;;  %v7530_v2 = vld [vmem:[#allocation45_spill] sm:$0xff]  ;;  %v7531_v3 = vld [vmem:[#allocation46_spill] sm:$0xff] }
 0x2d4   :  { %1998 = vmatprep.subr.bf16.mxu0 %v7521_v46  ;;  %2041 = vmatprep.subr.bf16.mxu1 %v7522_v47  ;;  %v7532_v46 = vld [vmem:[#allocation47_spill] sm:$0xff]  ;;  %v7533_v47 = vld [vmem:[#allocation48_spill] sm:$0xff] }
 0x2d7   :  { %1999 = vmatpush1.bf16.msra.mxu0 %v7523_v48  ;;  %2042 = vmatpush1.bf16.msra.mxu1 %v7524_v52  ;;  %v7534_v48 = vld [vmem:[#allocation49_spill] sm:$0xff]  ;;  %v7535_v52 = vld [vmem:[#allocation50_spill] sm:$0xff] }
 0x2d8   :  { %2000 = vmatprep.subr.bf16.mxu0 %v7525_v55  ;;  %2043 = vmatprep.subr.bf16.mxu1 %v7526_v56  ;;  %v7536_v55 = vld [vmem:[#allocation51_spill] sm:$0xff]  ;;  %v7537_v56 = vld [vmem:[#allocation52_spill] sm:$0xff] }
 0x2db   :  { %2001 = vmatpush1.bf16.msra.mxu0 %v7527_v57  ;;  %2044 = vmatpush1.bf16.msra.mxu1 %v7528_v61  ;;  %v7538_v57 = vld [vmem:[#allocation53_spill] sm:$0xff]  ;;  %v7539_v61 = vld [vmem:[#allocation54_spill] sm:$0xff] }
 0x2dc   :  { %2002 = vmatprep.subr.bf16.mxu0 %v7529_v1  ;;  %2045 = vmatprep.subr.bf16.mxu1 %v7530_v2  ;;  %v7540_v1 = vld [vmem:[#allocation55_spill] sm:$0xff]  ;;  %v7541_v2 = vld [vmem:[#allocation56_spill] sm:$0xff] }
 0x2df   :  { %2003 = vmatpush1.bf16.msra.mxu0 %v7531_v3  ;;  %2046 = vmatpush1.bf16.msra.mxu1 %v7532_v46  ;;  %v7542_v3 = vld [vmem:[#allocation57_spill] sm:$0xff]  ;;  %v7543_v46 = vld [vmem:[#allocation58_spill] sm:$0xff] }
 0x2e0   :  { %2004 = vmatprep.subr.bf16.mxu0 %v7533_v47  ;;  %2047 = vmatprep.subr.bf16.mxu1 %v7534_v48  ;;  %v7544_v47 = vld [vmem:[#allocation59_spill] sm:$0xff]  ;;  %v7545_v48 = vld [vmem:[#allocation60_spill] sm:$0xff] }
 0x2e3   :  { %2005 = vmatpush1.bf16.msra.mxu0 %v7535_v52  ;;  %2048 = vmatpush1.bf16.msra.mxu1 %v7536_v55  ;;  %v7546_v52 = vld [vmem:[#allocation61_spill] sm:$0xff]  ;;  %v7547_v55 = vld [vmem:[#allocation62_spill] sm:$0xff] }
 0x2e4   :  { %2006 = vmatprep.subr.bf16.mxu0 %v7537_v56  ;;  %2049 = vmatprep.subr.bf16.mxu1 %v7538_v57  ;;  %v7548_v56 = vld [vmem:[#allocation63_spill] sm:$0xff]  ;;  %v7549_v57 = vld [vmem:[#allocation64_spill] sm:$0xff] }
 0x2e7   :  { %2007 = vmatpush1.bf16.msra.mxu0 %v7539_v61  ;;  %2050 = vmatpush1.bf16.msra.mxu1 %v7540_v1  ;;  %v7550_v61 = vld [vmem:[#allocation66_spill] sm:$0xff]  ;;  %v7551_v1 = vld [vmem:[#allocation65_spill] sm:$0xff] }
 0x2e8   :  { %2008 = vmatprep.subr.bf16.mxu0 %v7541_v2  ;;  %2051 = vmatprep.subr.bf16.mxu1 %v7542_v3  ;;  %v7552_v2 = vld [vmem:[#allocation67_spill] sm:$0xff]  ;;  %v7553_v3 = vld [vmem:[#allocation68_spill] sm:$0xff] }
 0x2eb   :  { %2009 = vmatpush1.bf16.msra.mxu0 %v7543_v46  ;;  %2052 = vmatpush1.bf16.msra.mxu1 %v7544_v47  ;;  %v7554_v46 = vld [vmem:[#allocation69_spill] sm:$0xff]  ;;  %v7555_v47 = vld [vmem:[#allocation70_spill] sm:$0xff] }
 0x2ec   :  { %2010 = vmatprep.subr.bf16.mxu0 %v7545_v48  ;;  %2053 = vmatprep.subr.bf16.mxu1 %v7546_v52  ;;  %v7556_v48 = vld [vmem:[#allocation71_spill] sm:$0xff]  ;;  %v7557_v52 = vld [vmem:[#allocation72_spill] sm:$0xff] }
 0x2ef   :  { %2011 = vmatpush1.bf16.msra.mxu0 %v7547_v55  ;;  %2054 = vmatpush1.bf16.msra.mxu1 %v7548_v56  ;;  %v7558_v55 = vld [vmem:[#allocation73_spill] sm:$0xff]  ;;  %v7559_v56 = vld [vmem:[#allocation74_spill] sm:$0xff] }
 0x2f0   :  { %2012 = vmatprep.subr.bf16.mxu0 %v7549_v57  ;;  %2055 = vmatprep.subr.bf16.mxu1 %v7550_v61  ;;  %v7560_v57 = vld [vmem:[#allocation75_spill] sm:$0xff]  ;;  %v7561_v61 = vld [vmem:[#allocation76_spill] sm:$0xff] }
 0x2f3   :  { %2013 = vmatpush1.bf16.msra.mxu0 %v7551_v1  ;;  %2056 = vmatpush1.bf16.msra.mxu1 %v7552_v2  ;;  %v7562_v1 = vld [vmem:[#allocation77_spill] sm:$0xff] }
 0x2f4   :  { %2014 = vmatprep.subr.bf16.mxu0 %v7553_v3  ;;  %2057 = vmatprep.subr.bf16.mxu1 %v7554_v46 }
 0x2f7   :  { %2015 = vmatpush1.bf16.msra.mxu0 %v7555_v47  ;;  %2058 = vmatpush1.bf16.msra.mxu1 %v7556_v48 }
 0x2f8   :  { %2016 = vmatprep.subr.bf16.mxu0 %v7557_v52  ;;  %2059 = vmatprep.subr.bf16.mxu1 %v7558_v55 }
 0x2fb   :  { %2017 = vmatpush1.bf16.msra.mxu0 %v7559_v56  ;;  %2060 = vmatpush1.bf16.msra.mxu1 %v7560_v57 }
 0x2fc   :  { %2072 = vmatprep.subr.bf16.mxu0 %v7561_v61  ;;  %2115 = vmatprep.subr.bf16.mxu1 %v7562_v1 }
 0x351   :  { %v1726_v2 = vpop.f32.mrb[40].mxu0  ;;  %v1769_v3 = vpop.f32.mrb[40].mxu1 }
 0x352   :  { %v1864_v46 = vadd.f32 %v1726_v2, %v7563_v43  ;;  %v1728_v39 = vpop.f32.mrb[41].mxu0  ;;  %v1771_v47 = vpop.f32.mrb[41].mxu1 }
 0x353   :  { %v1865_v48 = vadd.f32 %v1728_v39, %v7564_v38  ;;  %v1730_v36 = vpop.f32.mrb[42].mxu0  ;;  %v1773_v52 = vpop.f32.mrb[42].mxu1  ;;  %v1867_v2 = vadd.f32 %v1771_v47, %v7565_v29  ;;  %v1866_v39 = vadd.f32 %v1769_v3, %v7566_v26 }
 0x354   :  { %v3995_v34 = vmul.f32 -1.442695, %v1864_v46  ;;  %v1868_v55 = vadd.f32 %v1730_v36, %v7563_v43  ;;  %v1732_v56 = vpop.f32.mrb[43].mxu0  ;;  %v1775_v35 = vpop.f32.mrb[43].mxu1  ;;  %v1870_v36 = vadd.f32 %v1773_v52, %v7566_v26 }
 0x355   :  { %v3997_v57 = vmul.f32 -1.442695, %v1865_v48  ;;  %v1869_v61 = vadd.f32 %v1732_v56, %v7564_v38  ;;  %v3999_v25 = vmul.f32 -1.442695, %v1867_v2  ;;  %v1871_v46 = vadd.f32 %v1775_v35, %v7565_v29 }
 0x356   :  { %4358 = vpow2.f32 %v3995_v34  ;;  %v3996_v1 = vmul.f32 -1.442695, %v1868_v55 }
 0x357   :  { %4360 = vpow2.f32 %v3997_v57  ;;  %v3998_v31 = vmul.f32 -1.442695, %v1869_v61  ;;  %v4000_v34 = vmul.f32 -1.442695, %v1871_v46 }
 0x358   :  { %4362 = vpow2.f32 %v3996_v1 }
 0x359   :  { %4364 = vpow2.f32 %v3998_v31 }
 0x35a   :  { %4366 = vtanh.f32 %v1866_v39 }
 0x35b   :  { %4368 = vpow2.f32 %v3999_v25  ;;  %v7567_v25 = vld [vmem:[#allocation206_spill] sm:$0xff] }
 0x35c   :  { %4370 = vtanh.f32 %v1870_v36 }
 0x360   :  { %v4359_v43 = vpop.eup %4358 }
 0x361   :  { %v4361_v48 = vpop.eup %4360  ;;  %v1878_v19 = vadd.f32 1.0, %v4359_v43 }
 0x362   :  { %v1890_v55 = vadd.f32 1.0, %v4361_v48  ;;  %v4363_v56 = vpop.eup %4362 }
 0x363   :  { %4372 = vrcp.f32 %v1878_v19  ;;  %v1879_v47 = vadd.f32 1.0, %v4363_v56  ;;  %v4365_v31 = vpop.eup %4364 }
 0x364   :  { %4374 = vrcp.f32 %v1890_v55  ;;  %v1891_v57 = vadd.f32 1.0, %v4365_v31  ;;  %v4367_v35 = vpop.eup %4366 }
 0x365   :  { %4376 = vpow2.f32 %v4000_v34  ;;  %v4369_v61 = vpop.eup %4368  ;;  %v7569_v34 = vld [vmem:[#allocation207_spill] sm:$0xff] }
 0x366   :  { %4378 = vrcp.f32 %v1879_v47  ;;  %v4371_v52 = vpop.eup %4370  ;;  %v1904_v36 = vadd.f32 1.0, %v4369_v61 }
 0x367   :  { %4380 = vrcp.f32 %v1891_v57 }
 0x368   :  { %4382 = vrcp.f32 %v1904_v36 }
 0x36d   :  { %v4373_v1 = vpop.eup %4372 }
 0x36e   :  { %v4375_v3 = vpop.eup %4374  ;;  %v1912_v2 = vmul.f32 %v4373_v1, %v4367_v35 }
 0x36f   :  { %v4377_v43 = vpop.eup %4376  ;;  %v1910_v39 = vmul.f32 %v4375_v3, %v7567_v25 }
 0x370   :  { %v4379_v46 = vpop.eup %4378  ;;  %v1905_v56 = vadd.f32 1.0, %v4377_v43  ;;  %v7572_v43 = vld [vmem:[#allocation132_spill] sm:$0xff] }
 0x371   :  { %v5885_v48 = vadd.f32 %v1912_v2, %v1910_v39  ;;  %v1913_v19 = vmul.f32 %v4379_v46, %v4371_v52  ;;  %v4381_v55 = vpop.eup %4380  ;;  %v7571_v52 = vld [vmem:[#allocation80_spill] sm:$0xff]  ;;  %v7573_v46 = vld [vmem:[#allocation134_spill] sm:$0xff] }
 0x372   :  { %v1911_v47 = vmul.f32 %v4381_v55, %v7569_v34  ;;  %v4383_v57 = vpop.eup %4382  ;;  %v247_v39 = vadd.f32 %v7572_v43, %v7571_v52  ;;  %v408_v36 = vadd.f32 %v7573_v46, %v7457_v59  ;;  %v7578_v46 = vld [vmem:[#allocation141_spill] sm:$0xff] }
 0x373   :  { %7568 = vst [vmem:[#allocation84_spill] sm:$0xff] %v5885_v48  ;;  %4384 = vtanh.f32 %v5885_v48  ;;  %v255_v26 = vadd.f32 %v7578_v46, %v7459_v42 }
 0x374   :  { %v5889_v31 = vadd.f32 %v1913_v19, %v1911_v47  ;;  %4386 = vrcp.f32 %v1905_v56  ;;  %v7574_v19 = vld [vmem:[#allocation133_spill] sm:$0xff]  ;;  %v7575_v56 = vld [vmem:[#allocation135_spill] sm:$0xff] }
 0x375   :  { %v249_v55 = vadd.f32 %v7574_v19, %v7459_v42  ;;  %v410_v34 = vadd.f32 %v7575_v56, %v7461_v54  ;;  %v7579_v19 = vld [vmem:[#allocation143_spill] sm:$0xff] }
 0x376   :  { %7570 = vst [vmem:[#allocation83_spill] sm:$0xff] %v5889_v31  ;;  %4388 = vtanh.f32 %v5889_v31  ;;  %v416_v29 = vadd.f32 %v7579_v19, %v7461_v54 }
 0x37d   :  { %v4385_v35 = vpop.eup %4384 }
 0x37e   :  { %v4387_v1 = vpop.eup %4386  ;;  %v1918_v61 = vmul.f32 %v4385_v35, %v4383_v57  ;;  %v7576_v35 = vld [vmem:[#allocation140_spill] sm:$0xff] }
 0x380   :  { %v4389_v3 = vpop.eup %4388 }
 0x381   :  { %v1919_v2 = vmul.f32 %v4389_v3, %v4387_v1  ;;  %v253_v1 = vadd.f32 %v7576_v35, %v7571_v52  ;;  %v7577_v3 = vld [vmem:[#allocation142_spill] sm:$0xff] }
 0x383   :  { %v5892_v25 = vpack.c.bf16 %v1919_v2, %v1918_v61  ;;  %v414_v61 = vadd.f32 %v7577_v3, %v7457_v59 }
 0x385   :  { %2018 = vmatprep.mubr.bf16.mxu0 %v5892_v25  ;;  %2061 = vmatprep.mubr.bf16.mxu1 %v5892_v25 }
 0x391   :  { %v1812_v47 = vpop.f32.mrb[44].mxu0  ;;  %v1855_v57 = vpop.f32.mrb[44].mxu1 }
 0x392   :  { %v1928_v2 = vadd.f32 %v1812_v47, %v247_v39  ;;  %v1930_v31 = vadd.f32 %v1855_v57, %v408_v36  ;;  %v1814_v43 = vpop.f32.mrb[45].mxu0  ;;  %v1857_v48 = vpop.f32.mrb[45].mxu1 }
 0x393   :  { %v1929_v38 = vadd.f32 %v1814_v43, %v249_v55  ;;  %v1931_v56 = vadd.f32 %v1857_v48, %v410_v34  ;;  %v1816_v21 = vpop.f32.mrb[46].mxu0  ;;  %v1859_v16 = vpop.f32.mrb[46].mxu1 }
 0x394   :  { %v4001_v60 = vmul.f32 -1.442695, %v1928_v2  ;;  %v1932_v37 = vadd.f32 %v1816_v21, %v253_v1  ;;  %v1934_v35 = vadd.f32 %v1859_v16, %v414_v61  ;;  %v1818_v52 = vpop.f32.mrb[47].mxu0  ;;  %v1861_v9 = vpop.f32.mrb[47].mxu1 }
 0x395   :  { %v4003_v3 = vmul.f32 -1.442695, %v1929_v38  ;;  %v1933_v39 = vadd.f32 %v1818_v52, %v255_v26  ;;  %v1935_v36 = vadd.f32 %v1861_v9, %v416_v29  ;;  %v4005_v46 = vmul.f32 -1.442695, %v1931_v56 }
 0x396   :  { %4390 = vpow2.f32 %v4001_v60  ;;  %v4002_v47 = vmul.f32 -1.442695, %v1932_v37 }
 0x397   :  { %4392 = vpow2.f32 %v4003_v3  ;;  %v4004_v57 = vmul.f32 -1.442695, %v1933_v39  ;;  %v4006_v34 = vmul.f32 -1.442695, %v1935_v36 }
 0x398   :  { %4394 = vpow2.f32 %v4002_v47 }
 0x399   :  { %4396 = vpow2.f32 %v4004_v57 }
 0x39a   :  { %4398 = vtanh.f32 %v1930_v31 }
 0x39b   :  { %4400 = vpow2.f32 %v4005_v46 }
 0x39c   :  { %4402 = vtanh.f32 %v1934_v35 }
 0x3a0   :  { %v4391_v19 = vpop.eup %4390 }
 0x3a1   :  { %v4393_v48 = vpop.eup %4392  ;;  %v1942_v55 = vadd.f32 1.0, %v4391_v19 }
 0x3a2   :  { %v1954_v21 = vadd.f32 1.0, %v4393_v48  ;;  %v4395_v16 = vpop.eup %4394 }
 0x3a3   :  { %4404 = vrcp.f32 %v1942_v55  ;;  %v1943_v26 = vadd.f32 1.0, %v4395_v16  ;;  %v4397_v29 = vpop.eup %4396  ;;  %v7582_v16 = vld [vmem:[#allocation103_spill] sm:$0xff] }
 0x3a4   :  { %4406 = vrcp.f32 %v1954_v21  ;;  %v1955_v38 = vadd.f32 1.0, %v4397_v29  ;;  %v4399_v9 = vpop.eup %4398  ;;  %v7584_v29 = vld [vmem:[#allocation105_spill] sm:$0xff] }
 0x3a5   :  { %4408 = vpow2.f32 %v4006_v34  ;;  %v4401_v37 = vpop.eup %4400 }
 0x3a6   :  { %4410 = vrcp.f32 %v1943_v26  ;;  %v4403_v60 = vpop.eup %4402  ;;  %v1968_v56 = vadd.f32 1.0, %v4401_v37  ;;  %v7583_v26 = vld [vmem:[#allocation104_spill] sm:$0xff] }
 0x3a7   :  { %4412 = vrcp.f32 %v1955_v38  ;;  %v7585_v38 = vld [vmem:[#allocation106_spill] sm:$0xff]  ;;  %v7587_v37 = vld [vmem:[#allocation108_spill] sm:$0xff] }
 0x3a8   :  { %4414 = vrcp.f32 %v1968_v56  ;;  %v7595_v56 = vld [vmem:[#allocation116_spill] sm:$0xff] }
 0x3ad   :  { %v4405_v52 = vpop.eup %4404 }
 0x3ae   :  { %v4407_v31 = vpop.eup %4406  ;;  %v1976_v1 = vmul.f32 %v4405_v52, %v4399_v9  ;;  %v7586_v9 = vld [vmem:[#allocation107_spill] sm:$0xff]  ;;  %v7589_v52 = vld [vmem:[#allocation110_spill] sm:$0xff] }
 0x3af   :  { %v4409_v61 = vpop.eup %4408  ;;  %v1974_v2 = vmul.f32 %v4407_v31, %v5733_v62  ;;  %v7590_v31 = vld [vmem:[#allocation111_spill] sm:$0xff] }
 0x3b0   :  { %v4411_v43 = vpop.eup %4410  ;;  %v1969_v36 = vadd.f32 1.0, %v4409_v61  ;;  %v7592_v61 = vld [vmem:[#allocation113_spill] sm:$0xff] }
 0x3b1   :  { %v5913_v35 = vadd.f32 %v1976_v1, %v1974_v2  ;;  %v1977_v3 = vmul.f32 %v4411_v43, %v4403_v60  ;;  %v4413_v39 = vpop.eup %4412  ;;  %v7588_v60 = vld [vmem:[#allocation109_spill] sm:$0xff]  ;;  %v7591_v1 = vld [vmem:[#allocation112_spill] sm:$0xff]  ;;  %v7593_v2 = vld [vmem:[#allocation114_spill] sm:$0xff] }
 0x3b2   :  { %v1975_v47 = vmul.f32 %v4413_v39, %v5737_v50  ;;  %v4415_v46 = vpop.eup %4414  ;;  %v7580_v50 = vld [vmem:[#allocation101_spill] sm:$0xff]  ;;  %v7594_v43 = vld [vmem:[#allocation115_spill] sm:$0xff]  ;;  %v7597_v39 = vld [vmem:[#allocation118_spill] sm:$0xff] }
 0x3b3   :  { %4416 = vtanh.f32 %v5913_v35 }
 0x3b4   :  { %v5917_v57 = vadd.f32 %v1977_v3, %v1975_v47  ;;  %4418 = vrcp.f32 %v1969_v36  ;;  %v7596_v3 = vld [vmem:[#allocation117_spill] sm:$0xff]  ;;  %v7598_v36 = vld [vmem:[#allocation119_spill] sm:$0xff]  ;;  %v7599_v47 = vld [vmem:[#allocation120_spill] sm:$0xff] }
 0x3b6   :  { %4420 = vtanh.f32 %v5917_v57 }
 0x3bd   :  { %v4417_v19 = vpop.eup %4416 }
 0x3be   :  { %v4419_v62 = vpop.eup %4418  ;;  %v1982_v55 = vmul.f32 %v4417_v19, %v4415_v46  ;;  %v7600_v46 = vld [vmem:[#allocation121_spill] sm:$0xff]  ;;  %v7601_v19 = vld [vmem:[#allocation122_spill] sm:$0xff] }
 0x3c0   :  { %v4421_v48 = vpop.eup %4420 }
 0x3c1   :  { %v1983_v34 = vmul.f32 %v4421_v48, %v4419_v62  ;;  %v7602_v62 = vld [vmem:[#allocation123_spill] sm:$0xff]  ;;  %v7603_v48 = vld [vmem:[#allocation128_spill] sm:$0xff] }
 0x3c3   :  { %v5920_v21 = vpack.c.bf16 %v1983_v34, %v1982_v55  ;;  %v7604_v55 = vld [vmem:[#allocation129_spill] sm:$0xff]  ;;  %v7605_v34 = vld [vmem:[#allocation136_spill] sm:$0xff] }
 0x3c5   :  { %2019 = vmatmul.mubr.bf16.vlgmr.msra.gmra.mrb[48].mxu0 %v5920_v21  ;;  %2062 = vmatmul.mubr.bf16.vlgmr.msra.gmra.mrb[48].mxu1 %v5920_v21 }
 0x3c6   :  { %2073 = vmatpush1.bf16.msra.mxu0 %v7469_v7  ;;  %2116 = vmatpush1.bf16.msra.mxu1 %v7470_v10 }
 0x3c7   :  { %2104 = vmatprep.mubr.bf16.mxu0 %v5892_v25  ;;  %2147 = vmatprep.mubr.bf16.mxu1 %v5892_v25  ;;  %v7581_v25 = vld [vmem:[#allocation102_spill] sm:$0xff] }
 0x3c8   :  { %2074 = vmatprep.subr.bf16.mxu0 %v7471_v22  ;;  %2117 = vmatprep.subr.bf16.mxu1 %v7472_v53 }
 0x3ca   :  { %2075 = vmatpush1.bf16.msra.mxu0 %v7473_v8  ;;  %2118 = vmatpush1.bf16.msra.mxu1 %v7474_v23 }
 0x3cb   :  { %2076 = vmatprep.subr.bf16.mxu0 %v7475_v41  ;;  %2119 = vmatprep.subr.bf16.mxu1 %v7476_v44 }
 0x3ce   :  { %2077 = vmatpush1.bf16.msra.mxu0 %v7477_v15  ;;  %2120 = vmatpush1.bf16.msra.mxu1 %v7478_v58 }
 0x3cf   :  { %2078 = vmatprep.subr.bf16.mxu0 %v7479_v28  ;;  %2121 = vmatprep.subr.bf16.mxu1 %v7480_v4 }
 0x3d2   :  { %2079 = vmatpush1.bf16.msra.mxu0 %v7481_v49  ;;  %2122 = vmatpush1.bf16.msra.mxu1 %v7580_v50 }
 0x3d3   :  { %2080 = vmatprep.subr.bf16.mxu0 %v7581_v25  ;;  %2123 = vmatprep.subr.bf16.mxu1 %v7582_v16 }
 0x3d6   :  { %2081 = vmatpush1.bf16.msra.mxu0 %v7583_v26  ;;  %2124 = vmatpush1.bf16.msra.mxu1 %v7584_v29 }
 0x3d7   :  { %2082 = vmatprep.subr.bf16.mxu0 %v7585_v38  ;;  %2125 = vmatprep.subr.bf16.mxu1 %v7586_v9 }
 0x3da   :  { %2083 = vmatpush1.bf16.msra.mxu0 %v7587_v37  ;;  %2126 = vmatpush1.bf16.msra.mxu1 %v7588_v60 }
 0x3db   :  { %2084 = vmatprep.subr.bf16.mxu0 %v7589_v52  ;;  %2127 = vmatprep.subr.bf16.mxu1 %v7590_v31 }
 0x3de   :  { %2085 = vmatpush1.bf16.msra.mxu0 %v7591_v1  ;;  %2128 = vmatpush1.bf16.msra.mxu1 %v7592_v61 }
 0x3df   :  { %2086 = vmatprep.subr.bf16.mxu0 %v7593_v2  ;;  %2129 = vmatprep.subr.bf16.mxu1 %v7594_v43 }
 0x3e2   :  { %2087 = vmatpush1.bf16.msra.mxu0 %v7595_v56  ;;  %2130 = vmatpush1.bf16.msra.mxu1 %v7596_v3 }
 0x3e3   :  { %2088 = vmatprep.subr.bf16.mxu0 %v7597_v39  ;;  %2131 = vmatprep.subr.bf16.mxu1 %v7598_v36  ;;  %v7606_v39 = vld [vmem:[#allocation137_spill] sm:$0xff] }
 0x3e6   :  { %2089 = vmatpush1.bf16.msra.mxu0 %v7599_v47  ;;  %2132 = vmatpush1.bf16.msra.mxu1 %v7600_v46 }
 0x3e7   :  { %2090 = vmatprep.subr.bf16.mxu0 %v7601_v19  ;;  %2133 = vmatprep.subr.bf16.mxu1 %v7602_v62 }
 0x3ea   :  { %2091 = vmatpush1.bf16.msra.mxu0 %v7603_v48  ;;  %2134 = vmatpush1.bf16.msra.mxu1 %v7604_v55 }
 0x3eb   :  { %2092 = vmatprep.subr.bf16.mxu0 %v7507_v24  ;;  %2135 = vmatprep.subr.bf16.mxu1 %v7508_v5 }
 0x3ee   :  { %2093 = vmatpush1.bf16.msra.mxu0 %v7605_v34  ;;  %2136 = vmatpush1.bf16.msra.mxu1 %v7606_v39  ;;  %v7678_v39 = vld [vmem:[#allocation204_spill] sm:$0xff]  ;;  %v7679_v34 = vld [vmem:[#allocation205_spill] sm:$0xff] }
 0x3ef   :  { %2094 = vmatprep.subr.bf16.mxu0 %v7511_v33  ;;  %2137 = vmatprep.subr.bf16.mxu1 %v7512_v12 }
 0x3f2   :  { %2095 = vmatpush1.bf16.msra.mxu0 %v7513_v11  ;;  %2138 = vmatpush1.bf16.msra.mxu1 %v7514_v17 }
 0x3f3   :  { %2096 = vmatprep.subr.bf16.mxu0 %v7515_v30  ;;  %2139 = vmatprep.subr.bf16.mxu1 %v7516_v40  ;;  %v7677_v30 = vld [vmem:[#allocation203_spill] sm:$0xff] }
 0x3f6   :  { %2097 = vmatpush1.bf16.msra.mxu0 %v7517_v0  ;;  %2140 = vmatpush1.bf16.msra.mxu1 %v5497_v20  ;;  %v7607_v0 = vld [vmem:[#allocation171_spill] sm:$0xff]  ;;  %v7608_v20 = vld [vmem:[#allocation176_spill] sm:$0xff] }
 0x3f7   :  { %2098 = vmatprep.subr.bf16.mxu0 %v5501_v51  ;;  %2141 = vmatprep.subr.bf16.mxu1 %v7518_v27  ;;  %v7609_v51 = vld [vmem:[#allocation177_spill] sm:$0xff]  ;;  %v7610_v27 = vld [vmem:[#allocation12_spill] sm:$0xff] }
 0x3fa   :  { %2099 = vmatpush1.bf16.msra.mxu0 %v7519_v32  ;;  %2142 = vmatpush1.bf16.msra.mxu1 %v5517_v13  ;;  %v7611_v32 = vld [vmem:[#allocation14_spill] sm:$0xff] }
 0x3fb   :  { %2100 = vmatprep.subr.bf16.mxu0 %v5521_v18  ;;  %2143 = vmatprep.subr.bf16.mxu1 %v5523_v63  ;;  %v7612_v63 = vld [vmem:[#allocation13_spill] sm:$0xff]  ;;  %v7621_v18 = vld [vmem:[#allocation23_spill] sm:$0xff]  ;;  %v7676_v13 = vld [vmem:[#allocation202_spill] sm:$0xff] }
 0x3fe   :  { %2101 = vmatpush1.bf16.msra.mxu0 %v5535_v45  ;;  %2144 = vmatpush1.bf16.msra.mxu1 %v5537_v6  ;;  %v7613_v45 = vld [vmem:[#allocation15_spill] sm:$0xff]  ;;  %v7614_v6 = vld [vmem:[#allocation16_spill] sm:$0xff] }
 0x3ff   :  { %2102 = vmatprep.subr.bf16.mxu0 %v5541_v14  ;;  %2145 = vmatprep.subr.bf16.mxu1 %v7607_v0  ;;  %v7615_v14 = vld [vmem:[#allocation17_spill] sm:$0xff]  ;;  %v7616_v0 = vld [vmem:[#allocation18_spill] sm:$0xff] }
 0x402   :  { %2103 = vmatpush1.bf16.msra.mxu0 %v7608_v20  ;;  %2146 = vmatpush1.bf16.msra.mxu1 %v7609_v51  ;;  %v7617_v20 = vld [vmem:[#allocation20_spill] sm:$0xff]  ;;  %v7618_v51 = vld [vmem:[#allocation19_spill] sm:$0xff] }
 0x403   :  { %2280 = vmatprep.subr.bf16.mxu0 %v7610_v27  ;;  %2323 = vmatprep.subr.bf16.mxu1 %v7611_v32  ;;  %v7619_v27 = vld [vmem:[#allocation21_spill] sm:$0xff]  ;;  %v7620_v32 = vld [vmem:[#allocation22_spill] sm:$0xff] }
 0x405   :  { %2105 = vmatmul.mubr.bf16.vlgmr.msra.gmra.mrb[52].mxu0 %v5920_v21  ;;  %2148 = vmatmul.mubr.bf16.vlgmr.msra.gmra.mrb[52].mxu1 %v5920_v21  ;;  %v7622_v21 = vld [vmem:[#allocation24_spill] sm:$0xff] }
 0x406   :  { %2281 = vmatpush1.bf16.msra.mxu0 %v7612_v63  ;;  %2324 = vmatpush1.bf16.msra.mxu1 %v7613_v45  ;;  %v7623_v63 = vld [vmem:[#allocation25_spill] sm:$0xff]  ;;  %v7624_v45 = vld [vmem:[#allocation26_spill] sm:$0xff] }
 0x407   :  { %2282 = vmatprep.subr.bf16.mxu0 %v7614_v6  ;;  %2325 = vmatprep.subr.bf16.mxu1 %v7615_v14  ;;  %v7625_v6 = vld [vmem:[#allocation27_spill] sm:$0xff]  ;;  %v7626_v14 = vld [vmem:[#allocation28_spill] sm:$0xff] }
 0x40a   :  { %2283 = vmatpush1.bf16.msra.mxu0 %v7616_v0  ;;  %2326 = vmatpush1.bf16.msra.mxu1 %v7617_v20  ;;  %v7627_v0 = vld [vmem:[#allocation29_spill] sm:$0xff]  ;;  %v7628_v20 = vld [vmem:[#allocation30_spill] sm:$0xff] }
 0x40b   :  { %2284 = vmatprep.subr.bf16.mxu0 %v7618_v51  ;;  %2327 = vmatprep.subr.bf16.mxu1 %v7619_v27  ;;  %v7629_v51 = vld [vmem:[#allocation31_spill] sm:$0xff]  ;;  %v7630_v27 = vld [vmem:[#allocation32_spill] sm:$0xff] }
 0x40e   :  { %2285 = vmatpush1.bf16.msra.mxu0 %v7620_v32  ;;  %2328 = vmatpush1.bf16.msra.mxu1 %v7621_v18  ;;  %v7631_v32 = vld [vmem:[#allocation33_spill] sm:$0xff]  ;;  %v7632_v18 = vld [vmem:[#allocation34_spill] sm:$0xff] }
 0x40f   :  { %2286 = vmatprep.subr.bf16.mxu0 %v7622_v21  ;;  %2329 = vmatprep.subr.bf16.mxu1 %v7623_v63  ;;  %v7633_v21 = vld [vmem:[#allocation35_spill] sm:$0xff]  ;;  %v7634_v63 = vld [vmem:[#allocation36_spill] sm:$0xff] }
 0x412   :  { %2287 = vmatpush1.bf16.msra.mxu0 %v7624_v45  ;;  %2330 = vmatpush1.bf16.msra.mxu1 %v7625_v6  ;;  %v7635_v45 = vld [vmem:[#allocation37_spill] sm:$0xff]  ;;  %v7636_v6 = vld [vmem:[#allocation38_spill] sm:$0xff] }
 0x413   :  { %2288 = vmatprep.subr.bf16.mxu0 %v7626_v14  ;;  %2331 = vmatprep.subr.bf16.mxu1 %v7627_v0  ;;  %v7637_v14 = vld [vmem:[#allocation39_spill] sm:$0xff]  ;;  %v7638_v0 = vld [vmem:[#allocation40_spill] sm:$0xff] }
 0x416   :  { %2289 = vmatpush1.bf16.msra.mxu0 %v7628_v20  ;;  %2332 = vmatpush1.bf16.msra.mxu1 %v7629_v51  ;;  %v7639_v20 = vld [vmem:[#allocation41_spill] sm:$0xff]  ;;  %v7640_v51 = vld [vmem:[#allocation42_spill] sm:$0xff] }
 0x417   :  { %2290 = vmatprep.subr.bf16.mxu0 %v7630_v27  ;;  %2333 = vmatprep.subr.bf16.mxu1 %v7631_v32  ;;  %v7641_v27 = vld [vmem:[#allocation43_spill] sm:$0xff]  ;;  %v7642_v32 = vld [vmem:[#allocation44_spill] sm:$0xff] }
 0x41a   :  { %2291 = vmatpush1.bf16.msra.mxu0 %v7632_v18  ;;  %2334 = vmatpush1.bf16.msra.mxu1 %v7633_v21  ;;  %v7643_v18 = vld [vmem:[#allocation45_spill] sm:$0xff]  ;;  %v7644_v21 = vld [vmem:[#allocation46_spill] sm:$0xff] }
 0x41b   :  { %2292 = vmatprep.subr.bf16.mxu0 %v7634_v63  ;;  %2335 = vmatprep.subr.bf16.mxu1 %v7635_v45  ;;  %v7645_v63 = vld [vmem:[#allocation47_spill] sm:$0xff]  ;;  %v7646_v45 = vld [vmem:[#allocation48_spill] sm:$0xff] }
 0x41e   :  { %2293 = vmatpush1.bf16.msra.mxu0 %v7636_v6  ;;  %2336 = vmatpush1.bf16.msra.mxu1 %v7637_v14  ;;  %v7647_v6 = vld [vmem:[#allocation49_spill] sm:$0xff]  ;;  %v7648_v14 = vld [vmem:[#allocation50_spill] sm:$0xff] }
 0x41f   :  { %2294 = vmatprep.subr.bf16.mxu0 %v7638_v0  ;;  %2337 = vmatprep.subr.bf16.mxu1 %v7639_v20  ;;  %v7649_v0 = vld [vmem:[#allocation51_spill] sm:$0xff]  ;;  %v7650_v20 = vld [vmem:[#allocation52_spill] sm:$0xff] }
 0x422   :  { %2295 = vmatpush1.bf16.msra.mxu0 %v7640_v51  ;;  %2338 = vmatpush1.bf16.msra.mxu1 %v7641_v27  ;;  %v7651_v51 = vld [vmem:[#allocation53_spill] sm:$0xff]  ;;  %v7652_v27 = vld [vmem:[#allocation54_spill] sm:$0xff] }
 0x423   :  { %2296 = vmatprep.subr.bf16.mxu0 %v7642_v32  ;;  %2339 = vmatprep.subr.bf16.mxu1 %v7643_v18  ;;  %v7653_v32 = vld [vmem:[#allocation55_spill] sm:$0xff]  ;;  %v7654_v18 = vld [vmem:[#allocation56_spill] sm:$0xff] }
 0x426   :  { %2297 = vmatpush1.bf16.msra.mxu0 %v7644_v21  ;;  %2340 = vmatpush1.bf16.msra.mxu1 %v7645_v63  ;;  %v7655_v21 = vld [vmem:[#allocation57_spill] sm:$0xff]  ;;  %v7656_v63 = vld [vmem:[#allocation58_spill] sm:$0xff] }
 0x427   :  { %2298 = vmatprep.subr.bf16.mxu0 %v7646_v45  ;;  %2341 = vmatprep.subr.bf16.mxu1 %v7647_v6  ;;  %v7657_v45 = vld [vmem:[#allocation59_spill] sm:$0xff]  ;;  %v7658_v6 = vld [vmem:[#allocation60_spill] sm:$0xff] }
 0x42a   :  { %2299 = vmatpush1.bf16.msra.mxu0 %v7648_v14  ;;  %2342 = vmatpush1.bf16.msra.mxu1 %v7649_v0  ;;  %v7659_v14 = vld [vmem:[#allocation61_spill] sm:$0xff]  ;;  %v7660_v0 = vld [vmem:[#allocation62_spill] sm:$0xff] }
 0x42b   :  { %2300 = vmatprep.subr.bf16.mxu0 %v7650_v20  ;;  %2343 = vmatprep.subr.bf16.mxu1 %v7651_v51  ;;  %v7661_v20 = vld [vmem:[#allocation63_spill] sm:$0xff]  ;;  %v7662_v51 = vld [vmem:[#allocation64_spill] sm:$0xff] }
 0x42e   :  { %2301 = vmatpush1.bf16.msra.mxu0 %v7652_v27  ;;  %2344 = vmatpush1.bf16.msra.mxu1 %v7653_v32  ;;  %v7663_v27 = vld [vmem:[#allocation66_spill] sm:$0xff]  ;;  %v7664_v32 = vld [vmem:[#allocation65_spill] sm:$0xff] }
 0x42f   :  { %2302 = vmatprep.subr.bf16.mxu0 %v7654_v18  ;;  %2345 = vmatprep.subr.bf16.mxu1 %v7655_v21  ;;  %v7665_v18 = vld [vmem:[#allocation67_spill] sm:$0xff]  ;;  %v7666_v21 = vld [vmem:[#allocation68_spill] sm:$0xff] }
 0x432   :  { %2303 = vmatpush1.bf16.msra.mxu0 %v7656_v63  ;;  %2346 = vmatpush1.bf16.msra.mxu1 %v7657_v45  ;;  %v7667_v63 = vld [vmem:[#allocation69_spill] sm:$0xff]  ;;  %v7668_v45 = vld [vmem:[#allocation70_spill] sm:$0xff] }
 0x433   :  { %2304 = vmatprep.subr.bf16.mxu0 %v7658_v6  ;;  %2347 = vmatprep.subr.bf16.mxu1 %v7659_v14  ;;  %v7669_v6 = vld [vmem:[#allocation71_spill] sm:$0xff]  ;;  %v7670_v14 = vld [vmem:[#allocation72_spill] sm:$0xff] }
 0x436   :  { %2305 = vmatpush1.bf16.msra.mxu0 %v7660_v0  ;;  %2348 = vmatpush1.bf16.msra.mxu1 %v7661_v20  ;;  %v7671_v0 = vld [vmem:[#allocation73_spill] sm:$0xff]  ;;  %v7672_v20 = vld [vmem:[#allocation74_spill] sm:$0xff] }
 0x437   :  { %2306 = vmatprep.subr.bf16.mxu0 %v7662_v51  ;;  %2349 = vmatprep.subr.bf16.mxu1 %v7663_v27  ;;  %v7673_v51 = vld [vmem:[#allocation75_spill] sm:$0xff]  ;;  %v7674_v27 = vld [vmem:[#allocation76_spill] sm:$0xff] }
 0x43a   :  { %2307 = vmatpush1.bf16.msra.mxu0 %v7664_v32  ;;  %2350 = vmatpush1.bf16.msra.mxu1 %v7665_v18  ;;  %v7675_v32 = vld [vmem:[#allocation77_spill] sm:$0xff] }
 0x43b   :  { %2308 = vmatprep.subr.bf16.mxu0 %v7666_v21  ;;  %2351 = vmatprep.subr.bf16.mxu1 %v7667_v63 }
 0x43e   :  { %2309 = vmatpush1.bf16.msra.mxu0 %v7668_v45  ;;  %2352 = vmatpush1.bf16.msra.mxu1 %v7669_v6 }
 0x43f   :  { %2310 = vmatprep.subr.bf16.mxu0 %v7670_v14  ;;  %2353 = vmatprep.subr.bf16.mxu1 %v7671_v0 }
 0x442   :  { %2311 = vmatpush1.bf16.msra.mxu0 %v7672_v20  ;;  %2354 = vmatpush1.bf16.msra.mxu1 %v7673_v51 }
 0x443   :  { %2366 = vmatprep.subr.bf16.mxu0 %v7674_v27  ;;  %2409 = vmatprep.subr.bf16.mxu1 %v7675_v32 }
 0x498   :  { %v2020_v18 = vpop.f32.mrb[48].mxu0  ;;  %v2063_v21 = vpop.f32.mrb[48].mxu1 }
 0x499   :  { %v2158_v63 = vadd.f32 %v2020_v18, %v7676_v13  ;;  %v2022_v40 = vpop.f32.mrb[49].mxu0  ;;  %v2065_v45 = vpop.f32.mrb[49].mxu1 }
 0x49a   :  { %v2159_v6 = vadd.f32 %v2022_v40, %v7677_v30  ;;  %v2024_v17 = vpop.f32.mrb[50].mxu0  ;;  %v2067_v14 = vpop.f32.mrb[50].mxu1  ;;  %v2161_v18 = vadd.f32 %v2065_v45, %v7678_v39  ;;  %v2160_v40 = vadd.f32 %v2063_v21, %v7679_v34 }
 0x49b   :  { %v4007_v11 = vmul.f32 -1.442695, %v2158_v63  ;;  %v2162_v0 = vadd.f32 %v2024_v17, %v7676_v13  ;;  %v2026_v20 = vpop.f32.mrb[51].mxu0  ;;  %v2069_v12 = vpop.f32.mrb[51].mxu1  ;;  %v2164_v17 = vadd.f32 %v2067_v14, %v7679_v34 }
 0x49c   :  { %v4009_v51 = vmul.f32 -1.442695, %v2159_v6  ;;  %v2163_v27 = vadd.f32 %v2026_v20, %v7677_v30  ;;  %v4011_v5 = vmul.f32 -1.442695, %v2161_v18  ;;  %v2165_v63 = vadd.f32 %v2069_v12, %v7678_v39 }
 0x49d   :  { %4422 = vpow2.f32 %v4007_v11  ;;  %v4008_v32 = vmul.f32 -1.442695, %v2162_v0 }
 0x49e   :  { %4424 = vpow2.f32 %v4009_v51  ;;  %v4010_v33 = vmul.f32 -1.442695, %v2163_v27  ;;  %v4012_v20 = vmul.f32 -1.442695, %v2165_v63 }
 0x49f   :  { %4426 = vpow2.f32 %v4008_v32 }
 0x4a0   :  { %4428 = vpow2.f32 %v4010_v33 }
 0x4a1   :  { %4430 = vtanh.f32 %v2160_v40 }
 0x4a2   :  { %4432 = vpow2.f32 %v4011_v5  ;;  %v7680_v5 = vld [vmem:[#allocation84_spill] sm:$0xff] }
 0x4a3   :  { %4434 = vtanh.f32 %v2164_v17 }
 0x4a7   :  { %v4423_v13 = vpop.eup %4422 }
 0x4a8   :  { %v4425_v6 = vpop.eup %4424  ;;  %v2172_v24 = vadd.f32 1.0, %v4423_v13 }
 0x4a9   :  { %v2184_v0 = vadd.f32 1.0, %v4425_v6  ;;  %v4427_v51 = vpop.eup %4426 }
 0x4aa   :  { %4436 = vrcp.f32 %v2172_v24  ;;  %v2173_v45 = vadd.f32 1.0, %v4427_v51  ;;  %v4429_v27 = vpop.eup %4428 }
 0x4ab   :  { %4438 = vrcp.f32 %v2184_v0  ;;  %v2185_v32 = vadd.f32 1.0, %v4429_v27  ;;  %v4431_v33 = vpop.eup %4430 }
 0x4ac   :  { %4440 = vpow2.f32 %v4012_v20  ;;  %v4433_v12 = vpop.eup %4432  ;;  %v7682_v20 = vld [vmem:[#allocation83_spill] sm:$0xff] }
 0x4ad   :  { %4442 = vrcp.f32 %v2173_v45  ;;  %v4435_v14 = vpop.eup %4434  ;;  %v2198_v17 = vadd.f32 1.0, %v4433_v12 }
 0x4ae   :  { %4444 = vrcp.f32 %v2185_v32 }
 0x4af   :  { %4446 = vrcp.f32 %v2198_v17 }
 0x4b4   :  { %v4437_v11 = vpop.eup %4436 }
 0x4b5   :  { %v4439_v21 = vpop.eup %4438  ;;  %v2206_v18 = vmul.f32 %v4437_v11, %v4431_v33 }
 0x4b6   :  { %v4441_v13 = vpop.eup %4440  ;;  %v2204_v40 = vmul.f32 %v4439_v21, %v7680_v5 }
 0x4b7   :  { %v4443_v63 = vpop.eup %4442  ;;  %v2199_v51 = vadd.f32 1.0, %v4441_v13  ;;  %v7685_v13 = vld [vmem:[#allocation148_spill] sm:$0xff] }
 0x4b8   :  { %v6065_v6 = vadd.f32 %v2206_v18, %v2204_v40  ;;  %v2207_v24 = vmul.f32 %v4443_v63, %v4435_v14  ;;  %v4445_v0 = vpop.eup %4444  ;;  %v7684_v14 = vld [vmem:[#allocation80_spill] sm:$0xff]  ;;  %v7686_v63 = vld [vmem:[#allocation150_spill] sm:$0xff] }
 0x4b9   :  { %v2205_v45 = vmul.f32 %v4445_v0, %v7682_v20  ;;  %v4447_v32 = vpop.eup %4446  ;;  %v259_v40 = vadd.f32 %v7685_v13, %v7684_v14  ;;  %v420_v17 = vadd.f32 %v7686_v63, %v7457_v59  ;;  %v7691_v63 = vld [vmem:[#allocation157_spill] sm:$0xff] }
 0x4ba   :  { %7681 = vst [vmem:[#allocation86_spill] sm:$0xff] %v6065_v6  ;;  %4448 = vtanh.f32 %v6065_v6  ;;  %v267_v34 = vadd.f32 %v7691_v63, %v7459_v42 }
 0x4bb   :  { %v6069_v27 = vadd.f32 %v2207_v24, %v2205_v45  ;;  %4450 = vrcp.f32 %v2199_v51  ;;  %v7687_v24 = vld [vmem:[#allocation149_spill] sm:$0xff]  ;;  %v7688_v51 = vld [vmem:[#allocation151_spill] sm:$0xff] }
 0x4bc   :  { %v261_v0 = vadd.f32 %v7687_v24, %v7459_v42  ;;  %v422_v20 = vadd.f32 %v7688_v51, %v7461_v54  ;;  %v7692_v24 = vld [vmem:[#allocation159_spill] sm:$0xff] }
 0x4bd   :  { %7683 = vst [vmem:[#allocation81_spill] sm:$0xff] %v6069_v27  ;;  %4452 = vtanh.f32 %v6069_v27  ;;  %v428_v39 = vadd.f32 %v7692_v24, %v7461_v54 }
 0x4c4   :  { %v4449_v33 = vpop.eup %4448 }
 0x4c5   :  { %v4451_v11 = vpop.eup %4450  ;;  %v2212_v12 = vmul.f32 %v4449_v33, %v4447_v32  ;;  %v7689_v33 = vld [vmem:[#allocation156_spill] sm:$0xff] }
 0x4c7   :  { %v4453_v21 = vpop.eup %4452 }
 0x4c8   :  { %v2213_v18 = vmul.f32 %v4453_v21, %v4451_v11  ;;  %v265_v11 = vadd.f32 %v7689_v33, %v7684_v14  ;;  %v7690_v21 = vld [vmem:[#allocation158_spill] sm:$0xff] }
 0x4ca   :  { %v6072_v5 = vpack.c.bf16 %v2213_v18, %v2212_v12  ;;  %v426_v12 = vadd.f32 %v7690_v21, %v7457_v59 }
 0x4cc   :  { %2312 = vmatprep.mubr.bf16.mxu0 %v6072_v5  ;;  %2355 = vmatprep.mubr.bf16.mxu1 %v6072_v5 }
 0x4d8   :  { %v2106_v45 = vpop.f32.mrb[52].mxu0  ;;  %v2149_v32 = vpop.f32.mrb[52].mxu1 }
 0x4d9   :  { %v2222_v18 = vadd.f32 %v2106_v45, %v259_v40  ;;  %v2224_v27 = vadd.f32 %v2149_v32, %v420_v17  ;;  %v2108_v13 = vpop.f32.mrb[53].mxu0  ;;  %v2151_v6 = vpop.f32.mrb[53].mxu1 }
 0x4da   :  { %v2223_v30 = vadd.f32 %v2108_v13, %v261_v0  ;;  %v2225_v51 = vadd.f32 %v2151_v6, %v422_v20  ;;  %v2110_v55 = vpop.f32.mrb[54].mxu0  ;;  %v2153_v48 = vpop.f32.mrb[54].mxu1 }
 0x4db   :  { %v4013_v62 = vmul.f32 -1.442695, %v2222_v18  ;;  %v2226_v19 = vadd.f32 %v2110_v55, %v265_v11  ;;  %v2228_v33 = vadd.f32 %v2153_v48, %v426_v12  ;;  %v2112_v14 = vpop.f32.mrb[55].mxu0  ;;  %v2155_v46 = vpop.f32.mrb[55].mxu1 }
 0x4dc   :  { %v4015_v21 = vmul.f32 -1.442695, %v2223_v30  ;;  %v2227_v40 = vadd.f32 %v2112_v14, %v267_v34  ;;  %v2229_v17 = vadd.f32 %v2155_v46, %v428_v39  ;;  %v4017_v63 = vmul.f32 -1.442695, %v2225_v51 }
 0x4dd   :  { %4454 = vpow2.f32 %v4013_v62  ;;  %v4014_v45 = vmul.f32 -1.442695, %v2226_v19 }
 0x4de   :  { %4456 = vpow2.f32 %v4015_v21  ;;  %v4016_v32 = vmul.f32 -1.442695, %v2227_v40  ;;  %v4018_v20 = vmul.f32 -1.442695, %v2229_v17 }
 0x4df   :  { %4458 = vpow2.f32 %v4014_v45 }
 0x4e0   :  { %4460 = vpow2.f32 %v4016_v32 }
 0x4e1   :  { %4462 = vtanh.f32 %v2224_v27 }
 0x4e2   :  { %4464 = vpow2.f32 %v4017_v63 }
 0x4e3   :  { %4466 = vtanh.f32 %v2228_v33 }
 0x4e7   :  { %v4455_v24 = vpop.eup %4454 }
 0x4e8   :  { %v4457_v6 = vpop.eup %4456  ;;  %v2236_v0 = vadd.f32 1.0, %v4455_v24 }
 0x4e9   :  { %v2248_v55 = vadd.f32 1.0, %v4457_v6  ;;  %v4459_v48 = vpop.eup %4458 }
 0x4ea   :  { %4468 = vrcp.f32 %v2236_v0  ;;  %v2237_v30 = vadd.f32 1.0, %v4459_v48  ;;  %v4461_v39 = vpop.eup %4460  ;;  %v7695_v48 = vld [vmem:[#allocation122_spill] sm:$0xff] }
 0x4eb   :  { %4470 = vrcp.f32 %v2248_v55  ;;  %v2249_v46 = vadd.f32 1.0, %v4461_v39  ;;  %v4463_v19 = vpop.eup %4462  ;;  %v7697_v39 = vld [vmem:[#allocation128_spill] sm:$0xff] }
 0x4ec   :  { %4472 = vpow2.f32 %v4018_v20  ;;  %v4465_v62 = vpop.eup %4464 }
 0x4ed   :  { %4474 = vrcp.f32 %v2237_v30  ;;  %v4467_v34 = vpop.eup %4466  ;;  %v2262_v51 = vadd.f32 1.0, %v4465_v62  ;;  %v7696_v30 = vld [vmem:[#allocation123_spill] sm:$0xff] }
 0x4ee   :  { %4476 = vrcp.f32 %v2249_v46  ;;  %v7698_v46 = vld [vmem:[#allocation129_spill] sm:$0xff]  ;;  %v7700_v62 = vld [vmem:[#allocation131_spill] sm:$0xff] }
 0x4ef   :  { %4478 = vrcp.f32 %v2262_v51  ;;  %v7708_v51 = vld [vmem:[#allocation147_spill] sm:$0xff] }
 0x4f4   :  { %v4469_v14 = vpop.eup %4468 }
 0x4f5   :  { %v4471_v27 = vpop.eup %4470  ;;  %v2270_v11 = vmul.f32 %v4469_v14, %v4463_v19  ;;  %v7699_v19 = vld [vmem:[#allocation130_spill] sm:$0xff]  ;;  %v7702_v14 = vld [vmem:[#allocation137_spill] sm:$0xff] }
 0x4f6   :  { %v4473_v12 = vpop.eup %4472  ;;  %v2268_v18 = vmul.f32 %v4471_v27, %v5913_v35  ;;  %v7703_v27 = vld [vmem:[#allocation138_spill] sm:$0xff] }
 0x4f7   :  { %v4475_v13 = vpop.eup %4474  ;;  %v2263_v17 = vadd.f32 1.0, %v4473_v12  ;;  %v7705_v12 = vld [vmem:[#allocation144_spill] sm:$0xff] }
 0x4f8   :  { %v6093_v33 = vadd.f32 %v2270_v11, %v2268_v18  ;;  %v2271_v21 = vmul.f32 %v4475_v13, %v4467_v34  ;;  %v4477_v40 = vpop.eup %4476  ;;  %v7701_v34 = vld [vmem:[#allocation136_spill] sm:$0xff]  ;;  %v7704_v11 = vld [vmem:[#allocation139_spill] sm:$0xff]  ;;  %v7706_v18 = vld [vmem:[#allocation145_spill] sm:$0xff] }
 0x4f9   :  { %v2269_v45 = vmul.f32 %v4477_v40, %v5917_v57  ;;  %v4479_v63 = vpop.eup %4478  ;;  %v7693_v57 = vld [vmem:[#allocation118_spill] sm:$0xff]  ;;  %v7710_v40 = vld [vmem:[#allocation153_spill] sm:$0xff] }
 0x4fa   :  { %4480 = vtanh.f32 %v6093_v33  ;;  %v7707_v13 = vld [vmem:[#allocation146_spill] sm:$0xff] }
 0x4fb   :  { %v6097_v32 = vadd.f32 %v2271_v21, %v2269_v45  ;;  %4482 = vrcp.f32 %v2263_v17  ;;  %v7709_v21 = vld [vmem:[#allocation152_spill] sm:$0xff]  ;;  %v7711_v17 = vld [vmem:[#allocation154_spill] sm:$0xff]  ;;  %v7712_v45 = vld [vmem:[#allocation155_spill] sm:$0xff] }
 0x4fd   :  { %4484 = vtanh.f32 %v6097_v32 }
 0x504   :  { %v4481_v24 = vpop.eup %4480 }
 0x505   :  { %v4483_v35 = vpop.eup %4482  ;;  %v2276_v0 = vmul.f32 %v4481_v24, %v4479_v63  ;;  %v7713_v63 = vld [vmem:[#allocation160_spill] sm:$0xff]  ;;  %v7714_v24 = vld [vmem:[#allocation161_spill] sm:$0xff] }
 0x507   :  { %v4485_v6 = vpop.eup %4484 }
 0x508   :  { %v2277_v20 = vmul.f32 %v4485_v6, %v4483_v35  ;;  %v7715_v35 = vld [vmem:[#allocation162_spill] sm:$0xff]  ;;  %v7716_v6 = vld [vmem:[#allocation163_spill] sm:$0xff] }
 0x50a   :  { %v6100_v55 = vpack.c.bf16 %v2277_v20, %v2276_v0  ;;  %v7717_v0 = vld [vmem:[#allocation168_spill] sm:$0xff]  ;;  %v7718_v20 = vld [vmem:[#allocation169_spill] sm:$0xff] }
 0x50c   :  { %2313 = vmatmul.mubr.bf16.vlgmr.msra.gmra.mrb[56].mxu0 %v6100_v55  ;;  %2356 = vmatmul.mubr.bf16.vlgmr.msra.gmra.mrb[56].mxu1 %v6100_v55 }
 0x50d   :  { %2367 = vmatpush1.bf16.msra.mxu0 %v7469_v7  ;;  %2410 = vmatpush1.bf16.msra.mxu1 %v7470_v10 }
 0x50e   :  { %2398 = vmatprep.mubr.bf16.mxu0 %v6072_v5  ;;  %2441 = vmatprep.mubr.bf16.mxu1 %v6072_v5  ;;  %v7694_v5 = vld [vmem:[#allocation121_spill] sm:$0xff] }
 0x50f   :  { %2368 = vmatprep.subr.bf16.mxu0 %v7471_v22  ;;  %2411 = vmatprep.subr.bf16.mxu1 %v7472_v53 }
 0x511   :  { %2369 = vmatpush1.bf16.msra.mxu0 %v7473_v8  ;;  %2412 = vmatpush1.bf16.msra.mxu1 %v7474_v23 }
 0x512   :  { %2370 = vmatprep.subr.bf16.mxu0 %v7475_v41  ;;  %2413 = vmatprep.subr.bf16.mxu1 %v7476_v44 }
 0x515   :  { %2371 = vmatpush1.bf16.msra.mxu0 %v7477_v15  ;;  %2414 = vmatpush1.bf16.msra.mxu1 %v7478_v58 }
 0x516   :  { %2372 = vmatprep.subr.bf16.mxu0 %v7479_v28  ;;  %2415 = vmatprep.subr.bf16.mxu1 %v7480_v4 }
 0x519   :  { %2373 = vmatpush1.bf16.msra.mxu0 %v7481_v49  ;;  %2416 = vmatpush1.bf16.msra.mxu1 %v7580_v50 }
 0x51a   :  { %2374 = vmatprep.subr.bf16.mxu0 %v7581_v25  ;;  %2417 = vmatprep.subr.bf16.mxu1 %v7582_v16 }
 0x51d   :  { %2375 = vmatpush1.bf16.msra.mxu0 %v7583_v26  ;;  %2418 = vmatpush1.bf16.msra.mxu1 %v7584_v29 }
 0x51e   :  { %2376 = vmatprep.subr.bf16.mxu0 %v7585_v38  ;;  %2419 = vmatprep.subr.bf16.mxu1 %v7586_v9 }
 0x521   :  { %2377 = vmatpush1.bf16.msra.mxu0 %v7587_v37  ;;  %2420 = vmatpush1.bf16.msra.mxu1 %v7588_v60 }
 0x522   :  { %2378 = vmatprep.subr.bf16.mxu0 %v7589_v52  ;;  %2421 = vmatprep.subr.bf16.mxu1 %v7590_v31 }
 0x525   :  { %2379 = vmatpush1.bf16.msra.mxu0 %v7591_v1  ;;  %2422 = vmatpush1.bf16.msra.mxu1 %v7592_v61 }
 0x526   :  { %2380 = vmatprep.subr.bf16.mxu0 %v7593_v2  ;;  %2423 = vmatprep.subr.bf16.mxu1 %v7594_v43 }
 0x529   :  { %2381 = vmatpush1.bf16.msra.mxu0 %v7595_v56  ;;  %2424 = vmatpush1.bf16.msra.mxu1 %v7596_v3 }
 0x52a   :  { %2382 = vmatprep.subr.bf16.mxu0 %v7693_v57  ;;  %2425 = vmatprep.subr.bf16.mxu1 %v7598_v36 }
 0x52d   :  { %2383 = vmatpush1.bf16.msra.mxu0 %v7599_v47  ;;  %2426 = vmatpush1.bf16.msra.mxu1 %v7694_v5 }
 0x52e   :  { %2384 = vmatprep.subr.bf16.mxu0 %v7695_v48  ;;  %2427 = vmatprep.subr.bf16.mxu1 %v7696_v30 }
 0x531   :  { %2385 = vmatpush1.bf16.msra.mxu0 %v7697_v39  ;;  %2428 = vmatpush1.bf16.msra.mxu1 %v7698_v46 }
 0x532   :  { %2386 = vmatprep.subr.bf16.mxu0 %v7699_v19  ;;  %2429 = vmatprep.subr.bf16.mxu1 %v7700_v62  ;;  %v7792_v62 = vld [vmem:[#allocation205_spill] sm:$0xff] }
 0x535   :  { %2387 = vmatpush1.bf16.msra.mxu0 %v7701_v34  ;;  %2430 = vmatpush1.bf16.msra.mxu1 %v7702_v14  ;;  %v7791_v34 = vld [vmem:[#allocation204_spill] sm:$0xff] }
 0x536   :  { %2388 = vmatprep.subr.bf16.mxu0 %v7703_v27  ;;  %2431 = vmatprep.subr.bf16.mxu1 %v7704_v11 }
 0x539   :  { %2389 = vmatpush1.bf16.msra.mxu0 %v7705_v12  ;;  %2432 = vmatpush1.bf16.msra.mxu1 %v7706_v18  ;;  %v7790_v18 = vld [vmem:[#allocation203_spill] sm:$0xff] }
 0x53a   :  { %2390 = vmatprep.subr.bf16.mxu0 %v7707_v13  ;;  %2433 = vmatprep.subr.bf16.mxu1 %v7708_v51  ;;  %v7719_v51 = vld [vmem:[#allocation170_spill] sm:$0xff] }
 0x53d   :  { %2391 = vmatpush1.bf16.msra.mxu0 %v7709_v21  ;;  %2434 = vmatpush1.bf16.msra.mxu1 %v7710_v40  ;;  %v7720_v21 = vld [vmem:[#allocation171_spill] sm:$0xff]  ;;  %v7721_v40 = vld [vmem:[#allocation176_spill] sm:$0xff] }
 0x53e   :  { %2392 = vmatprep.subr.bf16.mxu0 %v7711_v17  ;;  %2435 = vmatprep.subr.bf16.mxu1 %v7712_v45  ;;  %v7722_v17 = vld [vmem:[#allocation177_spill] sm:$0xff]  ;;  %v7723_v45 = vld [vmem:[#allocation12_spill] sm:$0xff] }
 0x541   :  { %2393 = vmatpush1.bf16.msra.mxu0 %v7713_v63  ;;  %2436 = vmatpush1.bf16.msra.mxu1 %v7714_v24  ;;  %v7724_v63 = vld [vmem:[#allocation14_spill] sm:$0xff] }
 0x542   :  { %2394 = vmatprep.subr.bf16.mxu0 %v7715_v35  ;;  %2437 = vmatprep.subr.bf16.mxu1 %v7716_v6  ;;  %v7725_v6 = vld [vmem:[#allocation13_spill] sm:$0xff]  ;;  %v7734_v35 = vld [vmem:[#allocation23_spill] sm:$0xff]  ;;  %v7789_v24 = vld [vmem:[#allocation202_spill] sm:$0xff] }
 0x545   :  { %2395 = vmatpush1.bf16.msra.mxu0 %v7717_v0  ;;  %2438 = vmatpush1.bf16.msra.mxu1 %v7718_v20  ;;  %v7726_v0 = vld [vmem:[#allocation15_spill] sm:$0xff]  ;;  %v7727_v20 = vld [vmem:[#allocation16_spill] sm:$0xff] }
 0x546   :  { %2396 = vmatprep.subr.bf16.mxu0 %v7719_v51  ;;  %2439 = vmatprep.subr.bf16.mxu1 %v7720_v21  ;;  %v7728_v51 = vld [vmem:[#allocation17_spill] sm:$0xff]  ;;  %v7729_v21 = vld [vmem:[#allocation18_spill] sm:$0xff] }
 0x549   :  { %2397 = vmatpush1.bf16.msra.mxu0 %v7721_v40  ;;  %2440 = vmatpush1.bf16.msra.mxu1 %v7722_v17  ;;  %v7730_v40 = vld [vmem:[#allocation20_spill] sm:$0xff]  ;;  %v7731_v17 = vld [vmem:[#allocation19_spill] sm:$0xff] }
 0x54a   :  { %2574 = vmatprep.subr.bf16.mxu0 %v7723_v45  ;;  %2617 = vmatprep.subr.bf16.mxu1 %v7724_v63  ;;  %v7732_v45 = vld [vmem:[#allocation21_spill] sm:$0xff]  ;;  %v7733_v63 = vld [vmem:[#allocation22_spill] sm:$0xff] }
 0x54c   :  { %2399 = vmatmul.mubr.bf16.vlgmr.msra.gmra.mrb[60].mxu0 %v6100_v55  ;;  %2442 = vmatmul.mubr.bf16.vlgmr.msra.gmra.mrb[60].mxu1 %v6100_v55  ;;  %v7735_v55 = vld [vmem:[#allocation24_spill] sm:$0xff] }
 0x54d   :  { %2575 = vmatpush1.bf16.msra.mxu0 %v7725_v6  ;;  %2618 = vmatpush1.bf16.msra.mxu1 %v7726_v0  ;;  %v7736_v6 = vld [vmem:[#allocation25_spill] sm:$0xff]  ;;  %v7737_v0 = vld [vmem:[#allocation26_spill] sm:$0xff] }
 0x54e   :  { %2576 = vmatprep.subr.bf16.mxu0 %v7727_v20  ;;  %2619 = vmatprep.subr.bf16.mxu1 %v7728_v51  ;;  %v7738_v20 = vld [vmem:[#allocation27_spill] sm:$0xff]  ;;  %v7739_v51 = vld [vmem:[#allocation28_spill] sm:$0xff] }
 0x551   :  { %2577 = vmatpush1.bf16.msra.mxu0 %v7729_v21  ;;  %2620 = vmatpush1.bf16.msra.mxu1 %v7730_v40  ;;  %v7740_v21 = vld [vmem:[#allocation29_spill] sm:$0xff]  ;;  %v7741_v40 = vld [vmem:[#allocation30_spill] sm:$0xff] }
 0x552   :  { %2578 = vmatprep.subr.bf16.mxu0 %v7731_v17  ;;  %2621 = vmatprep.subr.bf16.mxu1 %v7732_v45  ;;  %v7742_v17 = vld [vmem:[#allocation31_spill] sm:$0xff]  ;;  %v7743_v45 = vld [vmem:[#allocation32_spill] sm:$0xff] }
 0x555   :  { %2579 = vmatpush1.bf16.msra.mxu0 %v7733_v63  ;;  %2622 = vmatpush1.bf16.msra.mxu1 %v7734_v35  ;;  %v7744_v63 = vld [vmem:[#allocation33_spill] sm:$0xff]  ;;  %v7745_v35 = vld [vmem:[#allocation34_spill] sm:$0xff] }
 0x556   :  { %2580 = vmatprep.subr.bf16.mxu0 %v7735_v55  ;;  %2623 = vmatprep.subr.bf16.mxu1 %v7736_v6  ;;  %v7746_v55 = vld [vmem:[#allocation35_spill] sm:$0xff]  ;;  %v7747_v6 = vld [vmem:[#allocation36_spill] sm:$0xff] }
 0x559   :  { %2581 = vmatpush1.bf16.msra.mxu0 %v7737_v0  ;;  %2624 = vmatpush1.bf16.msra.mxu1 %v7738_v20  ;;  %v7748_v0 = vld [vmem:[#allocation37_spill] sm:$0xff]  ;;  %v7749_v20 = vld [vmem:[#allocation38_spill] sm:$0xff] }
 0x55a   :  { %2582 = vmatprep.subr.bf16.mxu0 %v7739_v51  ;;  %2625 = vmatprep.subr.bf16.mxu1 %v7740_v21  ;;  %v7750_v51 = vld [vmem:[#allocation39_spill] sm:$0xff]  ;;  %v7751_v21 = vld [vmem:[#allocation40_spill] sm:$0xff] }
 0x55d   :  { %2583 = vmatpush1.bf16.msra.mxu0 %v7741_v40  ;;  %2626 = vmatpush1.bf16.msra.mxu1 %v7742_v17  ;;  %v7752_v40 = vld [vmem:[#allocation41_spill] sm:$0xff]  ;;  %v7753_v17 = vld [vmem:[#allocation42_spill] sm:$0xff] }
 0x55e   :  { %2584 = vmatprep.subr.bf16.mxu0 %v7743_v45  ;;  %2627 = vmatprep.subr.bf16.mxu1 %v7744_v63  ;;  %v7754_v45 = vld [vmem:[#allocation43_spill] sm:$0xff]  ;;  %v7755_v63 = vld [vmem:[#allocation44_spill] sm:$0xff] }
 0x561   :  { %2585 = vmatpush1.bf16.msra.mxu0 %v7745_v35  ;;  %2628 = vmatpush1.bf16.msra.mxu1 %v7746_v55  ;;  %v7756_v35 = vld [vmem:[#allocation45_spill] sm:$0xff]  ;;  %v7757_v55 = vld [vmem:[#allocation46_spill] sm:$0xff] }
 0x562   :  { %2586 = vmatprep.subr.bf16.mxu0 %v7747_v6  ;;  %2629 = vmatprep.subr.bf16.mxu1 %v7748_v0  ;;  %v7758_v6 = vld [vmem:[#allocation47_spill] sm:$0xff]  ;;  %v7759_v0 = vld [vmem:[#allocation48_spill] sm:$0xff] }
 0x565   :  { %2587 = vmatpush1.bf16.msra.mxu0 %v7749_v20  ;;  %2630 = vmatpush1.bf16.msra.mxu1 %v7750_v51  ;;  %v7760_v20 = vld [vmem:[#allocation49_spill] sm:$0xff]  ;;  %v7761_v51 = vld [vmem:[#allocation50_spill] sm:$0xff] }
 0x566   :  { %2588 = vmatprep.subr.bf16.mxu0 %v7751_v21  ;;  %2631 = vmatprep.subr.bf16.mxu1 %v7752_v40  ;;  %v7762_v21 = vld [vmem:[#allocation51_spill] sm:$0xff]  ;;  %v7763_v40 = vld [vmem:[#allocation52_spill] sm:$0xff] }
 0x569   :  { %2589 = vmatpush1.bf16.msra.mxu0 %v7753_v17  ;;  %2632 = vmatpush1.bf16.msra.mxu1 %v7754_v45  ;;  %v7764_v17 = vld [vmem:[#allocation53_spill] sm:$0xff]  ;;  %v7765_v45 = vld [vmem:[#allocation54_spill] sm:$0xff] }
 0x56a   :  { %2590 = vmatprep.subr.bf16.mxu0 %v7755_v63  ;;  %2633 = vmatprep.subr.bf16.mxu1 %v7756_v35  ;;  %v7766_v63 = vld [vmem:[#allocation55_spill] sm:$0xff]  ;;  %v7767_v35 = vld [vmem:[#allocation56_spill] sm:$0xff] }
 0x56d   :  { %2591 = vmatpush1.bf16.msra.mxu0 %v7757_v55  ;;  %2634 = vmatpush1.bf16.msra.mxu1 %v7758_v6  ;;  %v7768_v55 = vld [vmem:[#allocation57_spill] sm:$0xff]  ;;  %v7769_v6 = vld [vmem:[#allocation58_spill] sm:$0xff] }
 0x56e   :  { %2592 = vmatprep.subr.bf16.mxu0 %v7759_v0  ;;  %2635 = vmatprep.subr.bf16.mxu1 %v7760_v20  ;;  %v7770_v0 = vld [vmem:[#allocation59_spill] sm:$0xff]  ;;  %v7771_v20 = vld [vmem:[#allocation60_spill] sm:$0xff] }
 0x571   :  { %2593 = vmatpush1.bf16.msra.mxu0 %v7761_v51  ;;  %2636 = vmatpush1.bf16.msra.mxu1 %v7762_v21  ;;  %v7772_v51 = vld [vmem:[#allocation61_spill] sm:$0xff]  ;;  %v7773_v21 = vld [vmem:[#allocation62_spill] sm:$0xff] }
 0x572   :  { %2594 = vmatprep.subr.bf16.mxu0 %v7763_v40  ;;  %2637 = vmatprep.subr.bf16.mxu1 %v7764_v17  ;;  %v7774_v40 = vld [vmem:[#allocation63_spill] sm:$0xff]  ;;  %v7775_v17 = vld [vmem:[#allocation64_spill] sm:$0xff] }
 0x575   :  { %2595 = vmatpush1.bf16.msra.mxu0 %v7765_v45  ;;  %2638 = vmatpush1.bf16.msra.mxu1 %v7766_v63  ;;  %v7776_v45 = vld [vmem:[#allocation66_spill] sm:$0xff]  ;;  %v7777_v63 = vld [vmem:[#allocation65_spill] sm:$0xff] }
 0x576   :  { %2596 = vmatprep.subr.bf16.mxu0 %v7767_v35  ;;  %2639 = vmatprep.subr.bf16.mxu1 %v7768_v55  ;;  %v7778_v35 = vld [vmem:[#allocation67_spill] sm:$0xff]  ;;  %v7779_v55 = vld [vmem:[#allocation68_spill] sm:$0xff] }
 0x579   :  { %2597 = vmatpush1.bf16.msra.mxu0 %v7769_v6  ;;  %2640 = vmatpush1.bf16.msra.mxu1 %v7770_v0  ;;  %v7780_v6 = vld [vmem:[#allocation69_spill] sm:$0xff]  ;;  %v7781_v0 = vld [vmem:[#allocation70_spill] sm:$0xff] }
 0x57a   :  { %2598 = vmatprep.subr.bf16.mxu0 %v7771_v20  ;;  %2641 = vmatprep.subr.bf16.mxu1 %v7772_v51  ;;  %v7782_v20 = vld [vmem:[#allocation71_spill] sm:$0xff]  ;;  %v7783_v51 = vld [vmem:[#allocation72_spill] sm:$0xff] }
 0x57d   :  { %2599 = vmatpush1.bf16.msra.mxu0 %v7773_v21  ;;  %2642 = vmatpush1.bf16.msra.mxu1 %v7774_v40  ;;  %v7784_v21 = vld [vmem:[#allocation73_spill] sm:$0xff]  ;;  %v7785_v40 = vld [vmem:[#allocation74_spill] sm:$0xff] }
 0x57e   :  { %2600 = vmatprep.subr.bf16.mxu0 %v7775_v17  ;;  %2643 = vmatprep.subr.bf16.mxu1 %v7776_v45  ;;  %v7786_v17 = vld [vmem:[#allocation75_spill] sm:$0xff]  ;;  %v7787_v45 = vld [vmem:[#allocation76_spill] sm:$0xff] }
 0x581   :  { %2601 = vmatpush1.bf16.msra.mxu0 %v7777_v63  ;;  %2644 = vmatpush1.bf16.msra.mxu1 %v7778_v35  ;;  %v7788_v63 = vld [vmem:[#allocation77_spill] sm:$0xff] }
 0x582   :  { %2602 = vmatprep.subr.bf16.mxu0 %v7779_v55  ;;  %2645 = vmatprep.subr.bf16.mxu1 %v7780_v6 }
 0x585   :  { %2603 = vmatpush1.bf16.msra.mxu0 %v7781_v0  ;;  %2646 = vmatpush1.bf16.msra.mxu1 %v7782_v20 }
 0x586   :  { %2604 = vmatprep.subr.bf16.mxu0 %v7783_v51  ;;  %2647 = vmatprep.subr.bf16.mxu1 %v7784_v21 }
 0x589   :  { %2605 = vmatpush1.bf16.msra.mxu0 %v7785_v40  ;;  %2648 = vmatpush1.bf16.msra.mxu1 %v7786_v17 }
 0x58a   :  { %2660 = vmatprep.subr.bf16.mxu0 %v7787_v45  ;;  %2703 = vmatprep.subr.bf16.mxu1 %v7788_v63 }
 0x5df   :  { %v2314_v35 = vpop.f32.mrb[56].mxu0  ;;  %v2357_v55 = vpop.f32.mrb[56].mxu1 }
 0x5e0   :  { %v2452_v6 = vadd.f32 %v2314_v35, %v7789_v24  ;;  %v2316_v13 = vpop.f32.mrb[57].mxu0  ;;  %v2359_v0 = vpop.f32.mrb[57].mxu1 }
 0x5e1   :  { %v2453_v20 = vadd.f32 %v2316_v13, %v7790_v18  ;;  %v2318_v12 = vpop.f32.mrb[58].mxu0  ;;  %v2361_v51 = vpop.f32.mrb[58].mxu1  ;;  %v2455_v35 = vadd.f32 %v2359_v0, %v7791_v34  ;;  %v2454_v13 = vadd.f32 %v2357_v55, %v7792_v62 }
 0x5e2   :  { %v4019_v11 = vmul.f32 -1.442695, %v2452_v6  ;;  %v2456_v21 = vadd.f32 %v2318_v12, %v7789_v24  ;;  %v2320_v40 = vpop.f32.mrb[59].mxu0  ;;  %v2363_v27 = vpop.f32.mrb[59].mxu1  ;;  %v2458_v12 = vadd.f32 %v2361_v51, %v7792_v62 }
 0x5e3   :  { %v4021_v17 = vmul.f32 -1.442695, %v2453_v20  ;;  %v2457_v45 = vadd.f32 %v2320_v40, %v7790_v18  ;;  %v4023_v19 = vmul.f32 -1.442695, %v2455_v35  ;;  %v2459_v6 = vadd.f32 %v2363_v27, %v7791_v34 }
 0x5e4   :  { %4486 = vpow2.f32 %v4019_v11  ;;  %v4020_v63 = vmul.f32 -1.442695, %v2456_v21 }
 0x5e5   :  { %4488 = vpow2.f32 %v4021_v17  ;;  %v4022_v14 = vmul.f32 -1.442695, %v2457_v45  ;;  %v4024_v11 = vmul.f32 -1.442695, %v2459_v6 }
 0x5e6   :  { %4490 = vpow2.f32 %v4020_v63 }
 0x5e7   :  { %4492 = vpow2.f32 %v4022_v14 }
 0x5e8   :  { %4494 = vtanh.f32 %v2454_v13 }
 0x5e9   :  { %4496 = vpow2.f32 %v4023_v19  ;;  %v7793_v19 = vld [vmem:[#allocation86_spill] sm:$0xff] }
 0x5ea   :  { %4498 = vtanh.f32 %v2458_v12 }
 0x5ee   :  { %v4487_v24 = vpop.eup %4486 }
 0x5ef   :  { %v4489_v20 = vpop.eup %4488  ;;  %v2466_v46 = vadd.f32 1.0, %v4487_v24 }
 0x5f0   :  { %v2478_v21 = vadd.f32 1.0, %v4489_v20  ;;  %v4491_v40 = vpop.eup %4490 }
 0x5f1   :  { %4500 = vrcp.f32 %v2466_v46  ;;  %v2467_v17 = vadd.f32 1.0, %v4491_v40  ;;  %v4493_v14 = vpop.eup %4492 }
 0x5f2   :  { %4502 = vrcp.f32 %v2478_v21  ;;  %v2479_v45 = vadd.f32 1.0, %v4493_v14  ;;  %v4495_v27 = vpop.eup %4494 }
 0x5f3   :  { %4504 = vpow2.f32 %v4024_v11  ;;  %v4497_v63 = vpop.eup %4496  ;;  %v7795_v11 = vld [vmem:[#allocation81_spill] sm:$0xff] }
 0x5f4   :  { %4506 = vrcp.f32 %v2467_v17  ;;  %v4499_v51 = vpop.eup %4498  ;;  %v2492_v12 = vadd.f32 1.0, %v4497_v63 }
 0x5f5   :  { %4508 = vrcp.f32 %v2479_v45 }
 0x5f6   :  { %4510 = vrcp.f32 %v2492_v12 }
 0x5fb   :  { %v4501_v0 = vpop.eup %4500 }
 0x5fc   :  { %v4503_v55 = vpop.eup %4502  ;;  %v2500_v35 = vmul.f32 %v4501_v0, %v4495_v27 }
 0x5fd   :  { %v4505_v24 = vpop.eup %4504  ;;  %v2498_v13 = vmul.f32 %v4503_v55, %v7793_v19 }
 0x5fe   :  { %v4507_v6 = vpop.eup %4506  ;;  %v2493_v40 = vadd.f32 1.0, %v4505_v24  ;;  %v7798_v24 = vld [vmem:[#allocation164_spill] sm:$0xff] }
 0x5ff   :  { %v6245_v20 = vadd.f32 %v2500_v35, %v2498_v13  ;;  %v2501_v46 = vmul.f32 %v4507_v6, %v4499_v51  ;;  %v4509_v21 = vpop.eup %4508  ;;  %v7797_v51 = vld [vmem:[#allocation80_spill] sm:$0xff]  ;;  %v7799_v6 = vld [vmem:[#allocation166_spill] sm:$0xff] }
 0x600   :  { %v2499_v17 = vmul.f32 %v4509_v21, %v7795_v11  ;;  %v4511_v45 = vpop.eup %4510  ;;  %v271_v13 = vadd.f32 %v7798_v24, %v7797_v51  ;;  %v432_v12 = vadd.f32 %v7799_v6, %v7457_v59  ;;  %v7804_v6 = vld [vmem:[#allocation173_spill] sm:$0xff] }
 0x601   :  { %7794 = vst [vmem:[#allocation85_spill] sm:$0xff] %v6245_v20  ;;  %4512 = vtanh.f32 %v6245_v20  ;;  %v279_v62 = vadd.f32 %v7804_v6, %v7459_v42 }
 0x602   :  { %v6249_v14 = vadd.f32 %v2501_v46, %v2499_v17  ;;  %4514 = vrcp.f32 %v2493_v40  ;;  %v7800_v46 = vld [vmem:[#allocation165_spill] sm:$0xff]  ;;  %v7801_v40 = vld [vmem:[#allocation167_spill] sm:$0xff] }
 0x603   :  { %v273_v21 = vadd.f32 %v7800_v46, %v7459_v42  ;;  %v434_v11 = vadd.f32 %v7801_v40, %v7461_v54  ;;  %v7805_v46 = vld [vmem:[#allocation175_spill] sm:$0xff] }
 0x604   :  { %7796 = vst [vmem:[#allocation82_spill] sm:$0xff] %v6249_v14  ;;  %4516 = vtanh.f32 %v6249_v14  ;;  %v440_v34 = vadd.f32 %v7805_v46, %v7461_v54 }
 0x60b   :  { %v4513_v27 = vpop.eup %4512 }
 0x60c   :  { %v4515_v0 = vpop.eup %4514  ;;  %v2506_v63 = vmul.f32 %v4513_v27, %v4511_v45  ;;  %v7802_v27 = vld [vmem:[#allocation172_spill] sm:$0xff] }
 0x60e   :  { %v4517_v55 = vpop.eup %4516 }
 0x60f   :  { %v2507_v35 = vmul.f32 %v4517_v55, %v4515_v0  ;;  %v277_v0 = vadd.f32 %v7802_v27, %v7797_v51  ;;  %v7803_v55 = vld [vmem:[#allocation174_spill] sm:$0xff] }
 0x611   :  { %v6252_v19 = vpack.c.bf16 %v2507_v35, %v2506_v63  ;;  %v438_v63 = vadd.f32 %v7803_v55, %v7457_v59 }
 0x613   :  { %2606 = vmatprep.mubr.bf16.mxu0 %v6252_v19  ;;  %2649 = vmatprep.mubr.bf16.mxu1 %v6252_v19 }
 0x61f   :  { %v2400_v17 = vpop.f32.mrb[60].mxu0  ;;  %v2443_v45 = vpop.f32.mrb[60].mxu1 }
 0x620   :  { %v2516_v35 = vadd.f32 %v2400_v17, %v271_v13  ;;  %v2518_v14 = vadd.f32 %v2443_v45, %v432_v12  ;;  %v2402_v24 = vpop.f32.mrb[61].mxu0  ;;  %v2445_v20 = vpop.f32.mrb[61].mxu1 }
 0x621   :  { %v2517_v18 = vadd.f32 %v2402_v24, %v273_v21  ;;  %v2519_v40 = vadd.f32 %v2445_v20, %v434_v11  ;;  %v2404_v39 = vpop.f32.mrb[62].mxu0  ;;  %v2447_v30 = vpop.f32.mrb[62].mxu1 }
 0x622   :  { %v4025_v48 = vmul.f32 -1.442695, %v2516_v35  ;;  %v2520_v5 = vadd.f32 %v2404_v39, %v277_v0  ;;  %v2522_v27 = vadd.f32 %v2447_v30, %v438_v63  ;;  %v2406_v51 = vpop.f32.mrb[63].mxu0  ;;  %v2449_v47 = vpop.f32.mrb[63].mxu1 }
 0x623   :  { %v4027_v55 = vmul.f32 -1.442695, %v2517_v18  ;;  %v2521_v13 = vadd.f32 %v2406_v51, %v279_v62  ;;  %v2523_v12 = vadd.f32 %v2449_v47, %v440_v34  ;;  %v4029_v6 = vmul.f32 -1.442695, %v2519_v40 }
 0x624   :  { %4518 = vpow2.f32 %v4025_v48  ;;  %v4026_v17 = vmul.f32 -1.442695, %v2520_v5 }
 0x625   :  { %4520 = vpow2.f32 %v4027_v55  ;;  %v4028_v45 = vmul.f32 -1.442695, %v2521_v13  ;;  %v4030_v11 = vmul.f32 -1.442695, %v2523_v12 }
 0x626   :  { %4522 = vpow2.f32 %v4026_v17 }
 0x627   :  { %4524 = vpow2.f32 %v4028_v45 }
 0x628   :  { %4526 = vtanh.f32 %v2518_v14 }
 0x629   :  { %4528 = vpow2.f32 %v4029_v6 }
 0x62a   :  { %4530 = vtanh.f32 %v2522_v27 }
 0x62e   :  { %v4519_v46 = vpop.eup %4518 }
 0x62f   :  { %v4521_v20 = vpop.eup %4520  ;;  %v2530_v21 = vadd.f32 1.0, %v4519_v46 }
 0x630   :  { %v2542_v39 = vadd.f32 1.0, %v4521_v20  ;;  %v4523_v30 = vpop.eup %4522 }
 0x631   :  { %4532 = vrcp.f32 %v2530_v21  ;;  %v2531_v62 = vadd.f32 1.0, %v4523_v30  ;;  %v4525_v47 = vpop.eup %4524  ;;  %v7808_v30 = vld [vmem:[#allocation122_spill] sm:$0xff] }
 0x632   :  { %4534 = vrcp.f32 %v2542_v39  ;;  %v2543_v5 = vadd.f32 1.0, %v4525_v47  ;;  %v4527_v48 = vpop.eup %4526  ;;  %v7810_v47 = vld [vmem:[#allocation128_spill] sm:$0xff] }
 0x633   :  { %4536 = vpow2.f32 %v4030_v11  ;;  %v4529_v34 = vpop.eup %4528 }
 0x634   :  { %4538 = vrcp.f32 %v2531_v62  ;;  %v4531_v18 = vpop.eup %4530  ;;  %v2556_v40 = vadd.f32 1.0, %v4529_v34  ;;  %v7809_v62 = vld [vmem:[#allocation123_spill] sm:$0xff] }
 0x635   :  { %4540 = vrcp.f32 %v2543_v5  ;;  %v7811_v5 = vld [vmem:[#allocation129_spill] sm:$0xff]  ;;  %v7813_v34 = vld [vmem:[#allocation131_spill] sm:$0xff] }
 0x636   :  { %4542 = vrcp.f32 %v2556_v40  ;;  %v7821_v40 = vld [vmem:[#allocation147_spill] sm:$0xff] }
 0x63b   :  { %v4533_v51 = vpop.eup %4532 }
 0x63c   :  { %v4535_v14 = vpop.eup %4534  ;;  %v2564_v0 = vmul.f32 %v4533_v51, %v4527_v48  ;;  %v7812_v48 = vld [vmem:[#allocation130_spill] sm:$0xff]  ;;  %v7815_v51 = vld [vmem:[#allocation137_spill] sm:$0xff] }
 0x63d   :  { %v4537_v63 = vpop.eup %4536  ;;  %v2562_v35 = vmul.f32 %v4535_v14, %v6093_v33  ;;  %v7816_v14 = vld [vmem:[#allocation138_spill] sm:$0xff] }
 0x63e   :  { %v4539_v24 = vpop.eup %4538  ;;  %v2557_v12 = vadd.f32 1.0, %v4537_v63  ;;  %v7818_v63 = vld [vmem:[#allocation144_spill] sm:$0xff] }
 0x63f   :  { %v6273_v27 = vadd.f32 %v2564_v0, %v2562_v35  ;;  %v2565_v55 = vmul.f32 %v4539_v24, %v4531_v18  ;;  %v4541_v13 = vpop.eup %4540  ;;  %v7814_v18 = vld [vmem:[#allocation136_spill] sm:$0xff]  ;;  %v7817_v0 = vld [vmem:[#allocation139_spill] sm:$0xff]  ;;  %v7819_v35 = vld [vmem:[#allocation145_spill] sm:$0xff] }
 0x640   :  { %v2563_v17 = vmul.f32 %v4541_v13, %v6097_v32  ;;  %v4543_v6 = vpop.eup %4542  ;;  %v7806_v32 = vld [vmem:[#allocation120_spill] sm:$0xff]  ;;  %v7820_v24 = vld [vmem:[#allocation146_spill] sm:$0xff]  ;;  %v7823_v13 = vld [vmem:[#allocation153_spill] sm:$0xff] }
 0x641   :  { %4544 = vtanh.f32 %v6273_v27 }
 0x642   :  { %v6277_v45 = vadd.f32 %v2565_v55, %v2563_v17  ;;  %4546 = vrcp.f32 %v2557_v12  ;;  %v7822_v55 = vld [vmem:[#allocation152_spill] sm:$0xff]  ;;  %v7824_v12 = vld [vmem:[#allocation154_spill] sm:$0xff]  ;;  %v7825_v17 = vld [vmem:[#allocation155_spill] sm:$0xff] }
 0x644   :  { %4548 = vtanh.f32 %v6277_v45 }
 0x64b   :  { %v4545_v46 = vpop.eup %4544 }
 0x64c   :  { %v4547_v33 = vpop.eup %4546  ;;  %v2570_v21 = vmul.f32 %v4545_v46, %v4543_v6  ;;  %v7826_v6 = vld [vmem:[#allocation160_spill] sm:$0xff]  ;;  %v7827_v46 = vld [vmem:[#allocation161_spill] sm:$0xff] }
 0x64e   :  { %v4549_v20 = vpop.eup %4548 }
 0x64f   :  { %v2571_v11 = vmul.f32 %v4549_v20, %v4547_v33  ;;  %v7828_v33 = vld [vmem:[#allocation162_spill] sm:$0xff]  ;;  %v7829_v20 = vld [vmem:[#allocation163_spill] sm:$0xff] }
 0x651   :  { %v6280_v39 = vpack.c.bf16 %v2571_v11, %v2570_v21  ;;  %v7830_v21 = vld [vmem:[#allocation168_spill] sm:$0xff]  ;;  %v7831_v11 = vld [vmem:[#allocation169_spill] sm:$0xff] }
 0x653   :  { %2607 = vmatmul.mubr.bf16.vlgmr.msra.gmra.mrb[64].mxu0 %v6280_v39  ;;  %2650 = vmatmul.mubr.bf16.vlgmr.msra.gmra.mrb[64].mxu1 %v6280_v39 }
 0x654   :  { %2661 = vmatpush1.bf16.msra.mxu0 %v7469_v7  ;;  %2704 = vmatpush1.bf16.msra.mxu1 %v7470_v10 }
 0x655   :  { %2692 = vmatprep.mubr.bf16.mxu0 %v6252_v19  ;;  %2735 = vmatprep.mubr.bf16.mxu1 %v6252_v19  ;;  %v7807_v19 = vld [vmem:[#allocation121_spill] sm:$0xff] }
 0x656   :  { %2662 = vmatprep.subr.bf16.mxu0 %v7471_v22  ;;  %2705 = vmatprep.subr.bf16.mxu1 %v7472_v53 }
 0x658   :  { %2663 = vmatpush1.bf16.msra.mxu0 %v7473_v8  ;;  %2706 = vmatpush1.bf16.msra.mxu1 %v7474_v23 }
 0x659   :  { %2664 = vmatprep.subr.bf16.mxu0 %v7475_v41  ;;  %2707 = vmatprep.subr.bf16.mxu1 %v7476_v44 }
 0x65c   :  { %2665 = vmatpush1.bf16.msra.mxu0 %v7477_v15  ;;  %2708 = vmatpush1.bf16.msra.mxu1 %v7478_v58 }
 0x65d   :  { %2666 = vmatprep.subr.bf16.mxu0 %v7479_v28  ;;  %2709 = vmatprep.subr.bf16.mxu1 %v7480_v4 }
 0x660   :  { %2667 = vmatpush1.bf16.msra.mxu0 %v7481_v49  ;;  %2710 = vmatpush1.bf16.msra.mxu1 %v7580_v50 }
 0x661   :  { %2668 = vmatprep.subr.bf16.mxu0 %v7581_v25  ;;  %2711 = vmatprep.subr.bf16.mxu1 %v7582_v16 }
 0x664   :  { %2669 = vmatpush1.bf16.msra.mxu0 %v7583_v26  ;;  %2712 = vmatpush1.bf16.msra.mxu1 %v7584_v29 }
 0x665   :  { %2670 = vmatprep.subr.bf16.mxu0 %v7585_v38  ;;  %2713 = vmatprep.subr.bf16.mxu1 %v7586_v9 }
 0x668   :  { %2671 = vmatpush1.bf16.msra.mxu0 %v7587_v37  ;;  %2714 = vmatpush1.bf16.msra.mxu1 %v7588_v60 }
 0x669   :  { %2672 = vmatprep.subr.bf16.mxu0 %v7589_v52  ;;  %2715 = vmatprep.subr.bf16.mxu1 %v7590_v31 }
 0x66c   :  { %2673 = vmatpush1.bf16.msra.mxu0 %v7591_v1  ;;  %2716 = vmatpush1.bf16.msra.mxu1 %v7592_v61 }
 0x66d   :  { %2674 = vmatprep.subr.bf16.mxu0 %v7593_v2  ;;  %2717 = vmatprep.subr.bf16.mxu1 %v7594_v43 }
 0x670   :  { %2675 = vmatpush1.bf16.msra.mxu0 %v7595_v56  ;;  %2718 = vmatpush1.bf16.msra.mxu1 %v7596_v3 }
 0x671   :  { %2676 = vmatprep.subr.bf16.mxu0 %v7693_v57  ;;  %2719 = vmatprep.subr.bf16.mxu1 %v7598_v36 }
 0x674   :  { %2677 = vmatpush1.bf16.msra.mxu0 %v7806_v32  ;;  %2720 = vmatpush1.bf16.msra.mxu1 %v7807_v19 }
 0x675   :  { %2678 = vmatprep.subr.bf16.mxu0 %v7808_v30  ;;  %2721 = vmatprep.subr.bf16.mxu1 %v7809_v62 }
 0x678   :  { %2679 = vmatpush1.bf16.msra.mxu0 %v7810_v47  ;;  %2722 = vmatpush1.bf16.msra.mxu1 %v7811_v5 }
 0x679   :  { %2680 = vmatprep.subr.bf16.mxu0 %v7812_v48  ;;  %2723 = vmatprep.subr.bf16.mxu1 %v7813_v34  ;;  %v7905_v34 = vld [vmem:[#allocation205_spill] sm:$0xff] }
 0x67c   :  { %2681 = vmatpush1.bf16.msra.mxu0 %v7814_v18  ;;  %2724 = vmatpush1.bf16.msra.mxu1 %v7815_v51  ;;  %v7904_v18 = vld [vmem:[#allocation204_spill] sm:$0xff] }
 0x67d   :  { %2682 = vmatprep.subr.bf16.mxu0 %v7816_v14  ;;  %2725 = vmatprep.subr.bf16.mxu1 %v7817_v0 }
 0x680   :  { %2683 = vmatpush1.bf16.msra.mxu0 %v7818_v63  ;;  %2726 = vmatpush1.bf16.msra.mxu1 %v7819_v35  ;;  %v7903_v35 = vld [vmem:[#allocation203_spill] sm:$0xff] }
 0x681   :  { %2684 = vmatprep.subr.bf16.mxu0 %v7820_v24  ;;  %2727 = vmatprep.subr.bf16.mxu1 %v7821_v40  ;;  %v7832_v40 = vld [vmem:[#allocation170_spill] sm:$0xff] }
 0x684   :  { %2685 = vmatpush1.bf16.msra.mxu0 %v7822_v55  ;;  %2728 = vmatpush1.bf16.msra.mxu1 %v7823_v13  ;;  %v7833_v55 = vld [vmem:[#allocation171_spill] sm:$0xff]  ;;  %v7834_v13 = vld [vmem:[#allocation176_spill] sm:$0xff] }
 0x685   :  { %2686 = vmatprep.subr.bf16.mxu0 %v7824_v12  ;;  %2729 = vmatprep.subr.bf16.mxu1 %v7825_v17  ;;  %v7835_v12 = vld [vmem:[#allocation177_spill] sm:$0xff]  ;;  %v7836_v17 = vld [vmem:[#allocation12_spill] sm:$0xff] }
 0x688   :  { %2687 = vmatpush1.bf16.msra.mxu0 %v7826_v6  ;;  %2730 = vmatpush1.bf16.msra.mxu1 %v7827_v46  ;;  %v7837_v6 = vld [vmem:[#allocation14_spill] sm:$0xff] }
 0x689   :  { %2688 = vmatprep.subr.bf16.mxu0 %v7828_v33  ;;  %2731 = vmatprep.subr.bf16.mxu1 %v7829_v20  ;;  %v7838_v20 = vld [vmem:[#allocation13_spill] sm:$0xff]  ;;  %v7847_v33 = vld [vmem:[#allocation23_spill] sm:$0xff]  ;;  %v7902_v46 = vld [vmem:[#allocation202_spill] sm:$0xff] }
 0x68c   :  { %2689 = vmatpush1.bf16.msra.mxu0 %v7830_v21  ;;  %2732 = vmatpush1.bf16.msra.mxu1 %v7831_v11  ;;  %v7839_v21 = vld [vmem:[#allocation15_spill] sm:$0xff]  ;;  %v7840_v11 = vld [vmem:[#allocation16_spill] sm:$0xff] }
 0x68d   :  { %2690 = vmatprep.subr.bf16.mxu0 %v7832_v40  ;;  %2733 = vmatprep.subr.bf16.mxu1 %v7833_v55  ;;  %v7841_v40 = vld [vmem:[#allocation17_spill] sm:$0xff]  ;;  %v7842_v55 = vld [vmem:[#allocation18_spill] sm:$0xff] }
 0x690   :  { %2691 = vmatpush1.bf16.msra.mxu0 %v7834_v13  ;;  %2734 = vmatpush1.bf16.msra.mxu1 %v7835_v12  ;;  %v7843_v13 = vld [vmem:[#allocation20_spill] sm:$0xff]  ;;  %v7844_v12 = vld [vmem:[#allocation19_spill] sm:$0xff] }
 0x691   :  { %2868 = vmatprep.subr.bf16.mxu0 %v7836_v17  ;;  %2911 = vmatprep.subr.bf16.mxu1 %v7837_v6  ;;  %v7845_v17 = vld [vmem:[#allocation21_spill] sm:$0xff]  ;;  %v7846_v6 = vld [vmem:[#allocation22_spill] sm:$0xff] }
 0x693   :  { %2693 = vmatmul.mubr.bf16.vlgmr.msra.gmra.mrb[68].mxu0 %v6280_v39  ;;  %2736 = vmatmul.mubr.bf16.vlgmr.msra.gmra.mrb[68].mxu1 %v6280_v39  ;;  %v7848_v39 = vld [vmem:[#allocation24_spill] sm:$0xff] }
 0x694   :  { %2869 = vmatpush1.bf16.msra.mxu0 %v7838_v20  ;;  %2912 = vmatpush1.bf16.msra.mxu1 %v7839_v21  ;;  %v7849_v20 = vld [vmem:[#allocation25_spill] sm:$0xff]  ;;  %v7850_v21 = vld [vmem:[#allocation26_spill] sm:$0xff] }
 0x695   :  { %2870 = vmatprep.subr.bf16.mxu0 %v7840_v11  ;;  %2913 = vmatprep.subr.bf16.mxu1 %v7841_v40  ;;  %v7851_v11 = vld [vmem:[#allocation27_spill] sm:$0xff]  ;;  %v7852_v40 = vld [vmem:[#allocation28_spill] sm:$0xff] }
 0x698   :  { %2871 = vmatpush1.bf16.msra.mxu0 %v7842_v55  ;;  %2914 = vmatpush1.bf16.msra.mxu1 %v7843_v13  ;;  %v7853_v55 = vld [vmem:[#allocation29_spill] sm:$0xff]  ;;  %v7854_v13 = vld [vmem:[#allocation30_spill] sm:$0xff] }
 0x699   :  { %2872 = vmatprep.subr.bf16.mxu0 %v7844_v12  ;;  %2915 = vmatprep.subr.bf16.mxu1 %v7845_v17  ;;  %v7855_v12 = vld [vmem:[#allocation31_spill] sm:$0xff]  ;;  %v7856_v17 = vld [vmem:[#allocation32_spill] sm:$0xff] }
 0x69c   :  { %2873 = vmatpush1.bf16.msra.mxu0 %v7846_v6  ;;  %2916 = vmatpush1.bf16.msra.mxu1 %v7847_v33  ;;  %v7857_v6 = vld [vmem:[#allocation33_spill] sm:$0xff]  ;;  %v7858_v33 = vld [vmem:[#allocation34_spill] sm:$0xff] }
 0x69d   :  { %2874 = vmatprep.subr.bf16.mxu0 %v7848_v39  ;;  %2917 = vmatprep.subr.bf16.mxu1 %v7849_v20  ;;  %v7859_v39 = vld [vmem:[#allocation35_spill] sm:$0xff]  ;;  %v7860_v20 = vld [vmem:[#allocation36_spill] sm:$0xff] }
 0x6a0   :  { %2875 = vmatpush1.bf16.msra.mxu0 %v7850_v21  ;;  %2918 = vmatpush1.bf16.msra.mxu1 %v7851_v11  ;;  %v7861_v21 = vld [vmem:[#allocation37_spill] sm:$0xff]  ;;  %v7862_v11 = vld [vmem:[#allocation38_spill] sm:$0xff] }
 0x6a1   :  { %2876 = vmatprep.subr.bf16.mxu0 %v7852_v40  ;;  %2919 = vmatprep.subr.bf16.mxu1 %v7853_v55  ;;  %v7863_v40 = vld [vmem:[#allocation39_spill] sm:$0xff]  ;;  %v7864_v55 = vld [vmem:[#allocation40_spill] sm:$0xff] }
 0x6a4   :  { %2877 = vmatpush1.bf16.msra.mxu0 %v7854_v13  ;;  %2920 = vmatpush1.bf16.msra.mxu1 %v7855_v12  ;;  %v7865_v13 = vld [vmem:[#allocation41_spill] sm:$0xff]  ;;  %v7866_v12 = vld [vmem:[#allocation42_spill] sm:$0xff] }
 0x6a5   :  { %2878 = vmatprep.subr.bf16.mxu0 %v7856_v17  ;;  %2921 = vmatprep.subr.bf16.mxu1 %v7857_v6  ;;  %v7867_v17 = vld [vmem:[#allocation43_spill] sm:$0xff]  ;;  %v7868_v6 = vld [vmem:[#allocation44_spill] sm:$0xff] }
 0x6a8   :  { %2879 = vmatpush1.bf16.msra.mxu0 %v7858_v33  ;;  %2922 = vmatpush1.bf16.msra.mxu1 %v7859_v39  ;;  %v7869_v33 = vld [vmem:[#allocation45_spill] sm:$0xff]  ;;  %v7870_v39 = vld [vmem:[#allocation46_spill] sm:$0xff] }
 0x6a9   :  { %2880 = vmatprep.subr.bf16.mxu0 %v7860_v20  ;;  %2923 = vmatprep.subr.bf16.mxu1 %v7861_v21  ;;  %v7871_v20 = vld [vmem:[#allocation47_spill] sm:$0xff]  ;;  %v7872_v21 = vld [vmem:[#allocation48_spill] sm:$0xff] }
 0x6ac   :  { %2881 = vmatpush1.bf16.msra.mxu0 %v7862_v11  ;;  %2924 = vmatpush1.bf16.msra.mxu1 %v7863_v40  ;;  %v7873_v11 = vld [vmem:[#allocation49_spill] sm:$0xff]  ;;  %v7874_v40 = vld [vmem:[#allocation50_spill] sm:$0xff] }
 0x6ad   :  { %2882 = vmatprep.subr.bf16.mxu0 %v7864_v55  ;;  %2925 = vmatprep.subr.bf16.mxu1 %v7865_v13  ;;  %v7875_v55 = vld [vmem:[#allocation51_spill] sm:$0xff]  ;;  %v7876_v13 = vld [vmem:[#allocation52_spill] sm:$0xff] }
 0x6b0   :  { %2883 = vmatpush1.bf16.msra.mxu0 %v7866_v12  ;;  %2926 = vmatpush1.bf16.msra.mxu1 %v7867_v17  ;;  %v7877_v12 = vld [vmem:[#allocation53_spill] sm:$0xff]  ;;  %v7878_v17 = vld [vmem:[#allocation54_spill] sm:$0xff] }
 0x6b1   :  { %2884 = vmatprep.subr.bf16.mxu0 %v7868_v6  ;;  %2927 = vmatprep.subr.bf16.mxu1 %v7869_v33  ;;  %v7879_v6 = vld [vmem:[#allocation55_spill] sm:$0xff]  ;;  %v7880_v33 = vld [vmem:[#allocation56_spill] sm:$0xff] }
 0x6b4   :  { %2885 = vmatpush1.bf16.msra.mxu0 %v7870_v39  ;;  %2928 = vmatpush1.bf16.msra.mxu1 %v7871_v20  ;;  %v7881_v39 = vld [vmem:[#allocation57_spill] sm:$0xff]  ;;  %v7882_v20 = vld [vmem:[#allocation58_spill] sm:$0xff] }
 0x6b5   :  { %2886 = vmatprep.subr.bf16.mxu0 %v7872_v21  ;;  %2929 = vmatprep.subr.bf16.mxu1 %v7873_v11  ;;  %v7883_v21 = vld [vmem:[#allocation59_spill] sm:$0xff]  ;;  %v7884_v11 = vld [vmem:[#allocation60_spill] sm:$0xff] }
 0x6b8   :  { %2887 = vmatpush1.bf16.msra.mxu0 %v7874_v40  ;;  %2930 = vmatpush1.bf16.msra.mxu1 %v7875_v55  ;;  %v7885_v40 = vld [vmem:[#allocation61_spill] sm:$0xff]  ;;  %v7886_v55 = vld [vmem:[#allocation62_spill] sm:$0xff] }
 0x6b9   :  { %2888 = vmatprep.subr.bf16.mxu0 %v7876_v13  ;;  %2931 = vmatprep.subr.bf16.mxu1 %v7877_v12  ;;  %v7887_v13 = vld [vmem:[#allocation63_spill] sm:$0xff]  ;;  %v7888_v12 = vld [vmem:[#allocation64_spill] sm:$0xff] }
 0x6bc   :  { %2889 = vmatpush1.bf16.msra.mxu0 %v7878_v17  ;;  %2932 = vmatpush1.bf16.msra.mxu1 %v7879_v6  ;;  %v7889_v17 = vld [vmem:[#allocation66_spill] sm:$0xff]  ;;  %v7890_v6 = vld [vmem:[#allocation65_spill] sm:$0xff] }
 0x6bd   :  { %2890 = vmatprep.subr.bf16.mxu0 %v7880_v33  ;;  %2933 = vmatprep.subr.bf16.mxu1 %v7881_v39  ;;  %v7891_v33 = vld [vmem:[#allocation67_spill] sm:$0xff]  ;;  %v7892_v39 = vld [vmem:[#allocation68_spill] sm:$0xff] }
 0x6c0   :  { %2891 = vmatpush1.bf16.msra.mxu0 %v7882_v20  ;;  %2934 = vmatpush1.bf16.msra.mxu1 %v7883_v21  ;;  %v7893_v20 = vld [vmem:[#allocation69_spill] sm:$0xff]  ;;  %v7894_v21 = vld [vmem:[#allocation70_spill] sm:$0xff] }
 0x6c1   :  { %2892 = vmatprep.subr.bf16.mxu0 %v7884_v11  ;;  %2935 = vmatprep.subr.bf16.mxu1 %v7885_v40  ;;  %v7895_v11 = vld [vmem:[#allocation71_spill] sm:$0xff]  ;;  %v7896_v40 = vld [vmem:[#allocation72_spill] sm:$0xff] }
 0x6c4   :  { %2893 = vmatpush1.bf16.msra.mxu0 %v7886_v55  ;;  %2936 = vmatpush1.bf16.msra.mxu1 %v7887_v13  ;;  %v7897_v55 = vld [vmem:[#allocation73_spill] sm:$0xff]  ;;  %v7898_v13 = vld [vmem:[#allocation74_spill] sm:$0xff] }
 0x6c5   :  { %2894 = vmatprep.subr.bf16.mxu0 %v7888_v12  ;;  %2937 = vmatprep.subr.bf16.mxu1 %v7889_v17  ;;  %v7899_v12 = vld [vmem:[#allocation75_spill] sm:$0xff]  ;;  %v7900_v17 = vld [vmem:[#allocation76_spill] sm:$0xff] }
 0x6c8   :  { %2895 = vmatpush1.bf16.msra.mxu0 %v7890_v6  ;;  %2938 = vmatpush1.bf16.msra.mxu1 %v7891_v33  ;;  %v7901_v6 = vld [vmem:[#allocation77_spill] sm:$0xff] }
 0x6c9   :  { %2896 = vmatprep.subr.bf16.mxu0 %v7892_v39  ;;  %2939 = vmatprep.subr.bf16.mxu1 %v7893_v20 }
 0x6cc   :  { %2897 = vmatpush1.bf16.msra.mxu0 %v7894_v21  ;;  %2940 = vmatpush1.bf16.msra.mxu1 %v7895_v11 }
 0x6cd   :  { %2898 = vmatprep.subr.bf16.mxu0 %v7896_v40  ;;  %2941 = vmatprep.subr.bf16.mxu1 %v7897_v55 }
 0x6d0   :  { %2899 = vmatpush1.bf16.msra.mxu0 %v7898_v13  ;;  %2942 = vmatpush1.bf16.msra.mxu1 %v7899_v12 }
 0x6d1   :  { %2954 = vmatprep.subr.bf16.mxu0 %v7900_v17  ;;  %2997 = vmatprep.subr.bf16.mxu1 %v7901_v6 }
 0x726   :  { %v2608_v33 = vpop.f32.mrb[64].mxu0  ;;  %v2651_v39 = vpop.f32.mrb[64].mxu1 }
 0x727   :  { %v2746_v20 = vadd.f32 %v2608_v33, %v7902_v46  ;;  %v2610_v24 = vpop.f32.mrb[65].mxu0  ;;  %v2653_v21 = vpop.f32.mrb[65].mxu1 }
 0x728   :  { %v2747_v11 = vadd.f32 %v2610_v24, %v7903_v35  ;;  %v2612_v63 = vpop.f32.mrb[66].mxu0  ;;  %v2655_v40 = vpop.f32.mrb[66].mxu1  ;;  %v2749_v33 = vadd.f32 %v2653_v21, %v7904_v18  ;;  %v2748_v24 = vadd.f32 %v2651_v39, %v7905_v34 }
 0x729   :  { %v4031_v0 = vmul.f32 -1.442695, %v2746_v20  ;;  %v2750_v55 = vadd.f32 %v2612_v63, %v7902_v46  ;;  %v2614_v13 = vpop.f32.mrb[67].mxu0  ;;  %v2657_v14 = vpop.f32.mrb[67].mxu1  ;;  %v2752_v63 = vadd.f32 %v2655_v40, %v7905_v34 }
 0x72a   :  { %v4033_v12 = vmul.f32 -1.442695, %v2747_v11  ;;  %v2751_v17 = vadd.f32 %v2614_v13, %v7903_v35  ;;  %v4035_v48 = vmul.f32 -1.442695, %v2749_v33  ;;  %v2753_v20 = vadd.f32 %v2657_v14, %v7904_v18 }
 0x72b   :  { %4550 = vpow2.f32 %v4031_v0  ;;  %v4032_v6 = vmul.f32 -1.442695, %v2750_v55 }
 0x72c   :  { %4552 = vpow2.f32 %v4033_v12  ;;  %v4034_v51 = vmul.f32 -1.442695, %v2751_v17  ;;  %v4036_v0 = vmul.f32 -1.442695, %v2753_v20 }
 0x72d   :  { %4554 = vpow2.f32 %v4032_v6 }
 0x72e   :  { %4556 = vpow2.f32 %v4034_v51 }
 0x72f   :  { %4558 = vtanh.f32 %v2748_v24 }
 0x730   :  { %4560 = vpow2.f32 %v4035_v48  ;;  %v7906_v48 = vld [vmem:[#allocation85_spill] sm:$0xff] }
 0x731   :  { %4562 = vtanh.f32 %v2752_v63 }
 0x735   :  { %v4551_v46 = vpop.eup %4550 }
 0x736   :  { %v4553_v11 = vpop.eup %4552  ;;  %v2760_v5 = vadd.f32 1.0, %v4551_v46 }
 0x737   :  { %v2772_v55 = vadd.f32 1.0, %v4553_v11  ;;  %v4555_v13 = vpop.eup %4554 }
 0x738   :  { %4564 = vrcp.f32 %v2760_v5  ;;  %v2761_v12 = vadd.f32 1.0, %v4555_v13  ;;  %v4557_v51 = vpop.eup %4556 }
 0x739   :  { %4566 = vrcp.f32 %v2772_v55  ;;  %v2773_v17 = vadd.f32 1.0, %v4557_v51  ;;  %v4559_v14 = vpop.eup %4558 }
 0x73a   :  { %4568 = vpow2.f32 %v4036_v0  ;;  %v4561_v6 = vpop.eup %4560  ;;  %v7908_v0 = vld [vmem:[#allocation82_spill] sm:$0xff] }
 0x73b   :  { %4570 = vrcp.f32 %v2761_v12  ;;  %v4563_v40 = vpop.eup %4562  ;;  %v2786_v63 = vadd.f32 1.0, %v4561_v6 }
 0x73c   :  { %4572 = vrcp.f32 %v2773_v17 }
 0x73d   :  { %4574 = vrcp.f32 %v2786_v63 }
 0x742   :  { %v4565_v21 = vpop.eup %4564 }
 0x743   :  { %v4567_v39 = vpop.eup %4566  ;;  %v2794_v33 = vmul.f32 %v4565_v21, %v4559_v14 }
 0x744   :  { %v4569_v46 = vpop.eup %4568  ;;  %v2792_v24 = vmul.f32 %v4567_v39, %v7906_v48 }
 0x745   :  { %v4571_v20 = vpop.eup %4570  ;;  %v2787_v13 = vadd.f32 1.0, %v4569_v46  ;;  %v7911_v46 = vld [vmem:[#allocation178_spill] sm:$0xff] }
 0x746   :  { %v6425_v11 = vadd.f32 %v2794_v33, %v2792_v24  ;;  %v2795_v5 = vmul.f32 %v4571_v20, %v4563_v40  ;;  %v4573_v55 = vpop.eup %4572  ;;  %v7910_v40 = vld [vmem:[#allocation80_spill] sm:$0xff] }
 0x747   :  { %v2793_v12 = vmul.f32 %v4573_v55, %v7908_v0  ;;  %v4575_v17 = vpop.eup %4574  ;;  %v283_v24 = vadd.f32 %v7911_v46, %v7910_v40  ;;  %v7912_v20 = vld [vmem:[#allocation180_spill] sm:$0xff] }
 0x748   :  { %7907 = vst [vmem:[#allocation87_spill] sm:$0xff] %v6425_v11  ;;  %4576 = vtanh.f32 %v6425_v11  ;;  %v444_v63 = vadd.f32 %v7912_v20, %v7457_v59  ;;  %v7917_v20 = vld [vmem:[#allocation183_spill] sm:$0xff] }
 0x749   :  { %v6429_v51 = vadd.f32 %v2795_v5, %v2793_v12  ;;  %4578 = vrcp.f32 %v2787_v13  ;;  %v7913_v5 = vld [vmem:[#allocation179_spill] sm:$0xff]  ;;  %v7914_v13 = vld [vmem:[#allocation181_spill] sm:$0xff]  ;;  %v291_v34 = vadd.f32 %v7917_v20, %v7459_v42 }
 0x74a   :  { %v285_v55 = vadd.f32 %v7913_v5, %v7459_v42  ;;  %v446_v0 = vadd.f32 %v7914_v13, %v7461_v54  ;;  %v7918_v5 = vld [vmem:[#allocation185_spill] sm:$0xff] }
 0x74b   :  { %7909 = vst [vmem:[#allocation124_spill] sm:$0xff] %v6429_v51  ;;  %4580 = vtanh.f32 %v6429_v51  ;;  %v452_v18 = vadd.f32 %v7918_v5, %v7461_v54 }
 0x752   :  { %v4577_v14 = vpop.eup %4576 }
 0x753   :  { %v4579_v21 = vpop.eup %4578  ;;  %v2800_v6 = vmul.f32 %v4577_v14, %v4575_v17  ;;  %v7915_v14 = vld [vmem:[#allocation182_spill] sm:$0xff] }
 0x755   :  { %v4581_v39 = vpop.eup %4580 }
 0x756   :  { %v2801_v33 = vmul.f32 %v4581_v39, %v4579_v21  ;;  %v289_v21 = vadd.f32 %v7915_v14, %v7910_v40  ;;  %v7916_v39 = vld [vmem:[#allocation184_spill] sm:$0xff] }
 0x758   :  { %v6432_v48 = vpack.c.bf16 %v2801_v33, %v2800_v6  ;;  %v450_v6 = vadd.f32 %v7916_v39, %v7457_v59 }
 0x75a   :  { %2900 = vmatprep.mubr.bf16.mxu0 %v6432_v48  ;;  %2943 = vmatprep.mubr.bf16.mxu1 %v6432_v48 }
 0x766   :  { %v2694_v12 = vpop.f32.mrb[68].mxu0  ;;  %v2737_v17 = vpop.f32.mrb[68].mxu1 }
 0x767   :  { %v2810_v33 = vadd.f32 %v2694_v12, %v283_v24  ;;  %v2812_v51 = vadd.f32 %v2737_v17, %v444_v63  ;;  %v2696_v46 = vpop.f32.mrb[69].mxu0  ;;  %v2739_v11 = vpop.f32.mrb[69].mxu1 }
 0x768   :  { %v2811_v35 = vadd.f32 %v2696_v46, %v285_v55  ;;  %v2813_v13 = vadd.f32 %v2739_v11, %v446_v0  ;;  %v2698_v47 = vpop.f32.mrb[70].mxu0  ;;  %v2741_v62 = vpop.f32.mrb[70].mxu1 }
 0x769   :  { %v4037_v30 = vmul.f32 -1.442695, %v2810_v33  ;;  %v2814_v19 = vadd.f32 %v2698_v47, %v289_v21  ;;  %v2816_v14 = vadd.f32 %v2741_v62, %v450_v6  ;;  %v2700_v40 = vpop.f32.mrb[71].mxu0  ;;  %v2743_v32 = vpop.f32.mrb[71].mxu1 }
 0x76a   :  { %v4039_v39 = vmul.f32 -1.442695, %v2811_v35  ;;  %v2815_v24 = vadd.f32 %v2700_v40, %v291_v34  ;;  %v2817_v63 = vadd.f32 %v2743_v32, %v452_v18  ;;  %v4041_v20 = vmul.f32 -1.442695, %v2813_v13 }
 0x76b   :  { %4582 = vpow2.f32 %v4037_v30  ;;  %v4038_v12 = vmul.f32 -1.442695, %v2814_v19 }
 0x76c   :  { %4584 = vpow2.f32 %v4039_v39  ;;  %v4040_v17 = vmul.f32 -1.442695, %v2815_v24  ;;  %v4042_v0 = vmul.f32 -1.442695, %v2817_v63 }
 0x76d   :  { %4586 = vpow2.f32 %v4038_v12 }
 0x76e   :  { %4588 = vpow2.f32 %v4040_v17 }
 0x76f   :  { %4590 = vtanh.f32 %v2812_v51 }
 0x770   :  { %4592 = vpow2.f32 %v4041_v20 }
 0x771   :  { %4594 = vtanh.f32 %v2816_v14 }
 0x775   :  { %v4583_v5 = vpop.eup %4582 }
 0x776   :  { %v4585_v11 = vpop.eup %4584  ;;  %v2824_v55 = vadd.f32 1.0, %v4583_v5 }
 0x777   :  { %v2836_v47 = vadd.f32 1.0, %v4585_v11  ;;  %v4587_v62 = vpop.eup %4586 }
 0x778   :  { %4596 = vrcp.f32 %v2824_v55  ;;  %v2825_v34 = vadd.f32 1.0, %v4587_v62  ;;  %v4589_v32 = vpop.eup %4588  ;;  %v7921_v62 = vld [vmem:[#allocation122_spill] sm:$0xff] }
 0x779   :  { %4598 = vrcp.f32 %v2836_v47  ;;  %v2837_v19 = vadd.f32 1.0, %v4589_v32  ;;  %v4591_v30 = vpop.eup %4590  ;;  %v7923_v32 = vld [vmem:[#allocation128_spill] sm:$0xff] }
 0x77a   :  { %4600 = vpow2.f32 %v4042_v0  ;;  %v4593_v18 = vpop.eup %4592 }
 0x77b   :  { %4602 = vrcp.f32 %v2825_v34  ;;  %v4595_v35 = vpop.eup %4594  ;;  %v2850_v13 = vadd.f32 1.0, %v4593_v18  ;;  %v7922_v34 = vld [vmem:[#allocation123_spill] sm:$0xff] }
 0x77c   :  { %4604 = vrcp.f32 %v2837_v19  ;;  %v7924_v19 = vld [vmem:[#allocation129_spill] sm:$0xff]  ;;  %v7926_v18 = vld [vmem:[#allocation131_spill] sm:$0xff] }
 0x77d   :  { %4606 = vrcp.f32 %v2850_v13  ;;  %v7934_v13 = vld [vmem:[#allocation147_spill] sm:$0xff] }
 0x782   :  { %v4597_v40 = vpop.eup %4596 }
 0x783   :  { %v4599_v51 = vpop.eup %4598  ;;  %v2858_v21 = vmul.f32 %v4597_v40, %v4591_v30  ;;  %v7925_v30 = vld [vmem:[#allocation130_spill] sm:$0xff]  ;;  %v7928_v40 = vld [vmem:[#allocation137_spill] sm:$0xff] }
 0x784   :  { %v4601_v6 = vpop.eup %4600  ;;  %v2856_v33 = vmul.f32 %v4599_v51, %v6273_v27  ;;  %v7929_v51 = vld [vmem:[#allocation138_spill] sm:$0xff] }
 0x785   :  { %v4603_v46 = vpop.eup %4602  ;;  %v2851_v63 = vadd.f32 1.0, %v4601_v6  ;;  %v7931_v6 = vld [vmem:[#allocation144_spill] sm:$0xff] }
 0x786   :  { %v6453_v14 = vadd.f32 %v2858_v21, %v2856_v33  ;;  %v2859_v39 = vmul.f32 %v4603_v46, %v4595_v35  ;;  %v4605_v24 = vpop.eup %4604  ;;  %v7927_v35 = vld [vmem:[#allocation136_spill] sm:$0xff]  ;;  %v7930_v21 = vld [vmem:[#allocation139_spill] sm:$0xff]  ;;  %v7932_v33 = vld [vmem:[#allocation145_spill] sm:$0xff] }
 0x787   :  { %v2857_v12 = vmul.f32 %v4605_v24, %v6277_v45  ;;  %v4607_v20 = vpop.eup %4606  ;;  %v7919_v45 = vld [vmem:[#allocation120_spill] sm:$0xff]  ;;  %v7933_v46 = vld [vmem:[#allocation146_spill] sm:$0xff]  ;;  %v7936_v24 = vld [vmem:[#allocation153_spill] sm:$0xff] }
 0x788   :  { %4608 = vtanh.f32 %v6453_v14 }
 0x789   :  { %v6457_v17 = vadd.f32 %v2859_v39, %v2857_v12  ;;  %4610 = vrcp.f32 %v2851_v63  ;;  %v7935_v39 = vld [vmem:[#allocation152_spill] sm:$0xff]  ;;  %v7937_v63 = vld [vmem:[#allocation154_spill] sm:$0xff]  ;;  %v7938_v12 = vld [vmem:[#allocation155_spill] sm:$0xff] }
 0x78b   :  { %4612 = vtanh.f32 %v6457_v17 }
 0x792   :  { %v4609_v5 = vpop.eup %4608 }
 0x793   :  { %v4611_v27 = vpop.eup %4610  ;;  %v2864_v55 = vmul.f32 %v4609_v5, %v4607_v20  ;;  %v7939_v20 = vld [vmem:[#allocation160_spill] sm:$0xff]  ;;  %v7940_v5 = vld [vmem:[#allocation161_spill] sm:$0xff] }
 0x795   :  { %v4613_v11 = vpop.eup %4612 }
 0x796   :  { %v2865_v0 = vmul.f32 %v4613_v11, %v4611_v27  ;;  %v7941_v27 = vld [vmem:[#allocation162_spill] sm:$0xff]  ;;  %v7942_v11 = vld [vmem:[#allocation163_spill] sm:$0xff] }
 0x798   :  { %v6460_v47 = vpack.c.bf16 %v2865_v0, %v2864_v55  ;;  %v7943_v55 = vld [vmem:[#allocation168_spill] sm:$0xff]  ;;  %v7944_v0 = vld [vmem:[#allocation169_spill] sm:$0xff] }
 0x79a   :  { %2901 = vmatmul.mubr.bf16.vlgmr.msra.gmra.mrb[72].mxu0 %v6460_v47  ;;  %2944 = vmatmul.mubr.bf16.vlgmr.msra.gmra.mrb[72].mxu1 %v6460_v47 }
 0x79b   :  { %2955 = vmatpush1.bf16.msra.mxu0 %v7469_v7  ;;  %2998 = vmatpush1.bf16.msra.mxu1 %v7470_v10 }
 0x79c   :  { %2986 = vmatprep.mubr.bf16.mxu0 %v6432_v48  ;;  %3029 = vmatprep.mubr.bf16.mxu1 %v6432_v48  ;;  %v7920_v48 = vld [vmem:[#allocation121_spill] sm:$0xff] }
 0x79d   :  { %2956 = vmatprep.subr.bf16.mxu0 %v7471_v22  ;;  %2999 = vmatprep.subr.bf16.mxu1 %v7472_v53 }
 0x79f   :  { %2957 = vmatpush1.bf16.msra.mxu0 %v7473_v8  ;;  %3000 = vmatpush1.bf16.msra.mxu1 %v7474_v23 }
 0x7a0   :  { %2958 = vmatprep.subr.bf16.mxu0 %v7475_v41  ;;  %3001 = vmatprep.subr.bf16.mxu1 %v7476_v44 }
 0x7a3   :  { %2959 = vmatpush1.bf16.msra.mxu0 %v7477_v15  ;;  %3002 = vmatpush1.bf16.msra.mxu1 %v7478_v58 }
 0x7a4   :  { %2960 = vmatprep.subr.bf16.mxu0 %v7479_v28  ;;  %3003 = vmatprep.subr.bf16.mxu1 %v7480_v4 }
 0x7a7   :  { %2961 = vmatpush1.bf16.msra.mxu0 %v7481_v49  ;;  %3004 = vmatpush1.bf16.msra.mxu1 %v7580_v50 }
 0x7a8   :  { %2962 = vmatprep.subr.bf16.mxu0 %v7581_v25  ;;  %3005 = vmatprep.subr.bf16.mxu1 %v7582_v16 }
 0x7ab   :  { %2963 = vmatpush1.bf16.msra.mxu0 %v7583_v26  ;;  %3006 = vmatpush1.bf16.msra.mxu1 %v7584_v29 }
 0x7ac   :  { %2964 = vmatprep.subr.bf16.mxu0 %v7585_v38  ;;  %3007 = vmatprep.subr.bf16.mxu1 %v7586_v9 }
 0x7af   :  { %2965 = vmatpush1.bf16.msra.mxu0 %v7587_v37  ;;  %3008 = vmatpush1.bf16.msra.mxu1 %v7588_v60 }
 0x7b0   :  { %2966 = vmatprep.subr.bf16.mxu0 %v7589_v52  ;;  %3009 = vmatprep.subr.bf16.mxu1 %v7590_v31 }
 0x7b3   :  { %2967 = vmatpush1.bf16.msra.mxu0 %v7591_v1  ;;  %3010 = vmatpush1.bf16.msra.mxu1 %v7592_v61 }
 0x7b4   :  { %2968 = vmatprep.subr.bf16.mxu0 %v7593_v2  ;;  %3011 = vmatprep.subr.bf16.mxu1 %v7594_v43 }
 0x7b7   :  { %2969 = vmatpush1.bf16.msra.mxu0 %v7595_v56  ;;  %3012 = vmatpush1.bf16.msra.mxu1 %v7596_v3 }
 0x7b8   :  { %2970 = vmatprep.subr.bf16.mxu0 %v7693_v57  ;;  %3013 = vmatprep.subr.bf16.mxu1 %v7598_v36 }
 0x7bb   :  { %2971 = vmatpush1.bf16.msra.mxu0 %v7919_v45  ;;  %3014 = vmatpush1.bf16.msra.mxu1 %v7920_v48 }
 0x7bc   :  { %2972 = vmatprep.subr.bf16.mxu0 %v7921_v62  ;;  %3015 = vmatprep.subr.bf16.mxu1 %v7922_v34 }
 0x7bf   :  { %2973 = vmatpush1.bf16.msra.mxu0 %v7923_v32  ;;  %3016 = vmatpush1.bf16.msra.mxu1 %v7924_v19 }
 0x7c0   :  { %2974 = vmatprep.subr.bf16.mxu0 %v7925_v30  ;;  %3017 = vmatprep.subr.bf16.mxu1 %v7926_v18  ;;  %v8018_v18 = vld [vmem:[#allocation205_spill] sm:$0xff] }
 0x7c3   :  { %2975 = vmatpush1.bf16.msra.mxu0 %v7927_v35  ;;  %3018 = vmatpush1.bf16.msra.mxu1 %v7928_v40  ;;  %v8017_v35 = vld [vmem:[#allocation204_spill] sm:$0xff] }
 0x7c4   :  { %2976 = vmatprep.subr.bf16.mxu0 %v7929_v51  ;;  %3019 = vmatprep.subr.bf16.mxu1 %v7930_v21 }
 0x7c7   :  { %2977 = vmatpush1.bf16.msra.mxu0 %v7931_v6  ;;  %3020 = vmatpush1.bf16.msra.mxu1 %v7932_v33  ;;  %v8016_v33 = vld [vmem:[#allocation203_spill] sm:$0xff] }
 0x7c8   :  { %2978 = vmatprep.subr.bf16.mxu0 %v7933_v46  ;;  %3021 = vmatprep.subr.bf16.mxu1 %v7934_v13  ;;  %v7945_v13 = vld [vmem:[#allocation170_spill] sm:$0xff] }
 0x7cb   :  { %2979 = vmatpush1.bf16.msra.mxu0 %v7935_v39  ;;  %3022 = vmatpush1.bf16.msra.mxu1 %v7936_v24  ;;  %v7946_v39 = vld [vmem:[#allocation171_spill] sm:$0xff]  ;;  %v7947_v24 = vld [vmem:[#allocation176_spill] sm:$0xff] }
 0x7cc   :  { %2980 = vmatprep.subr.bf16.mxu0 %v7937_v63  ;;  %3023 = vmatprep.subr.bf16.mxu1 %v7938_v12  ;;  %v7948_v63 = vld [vmem:[#allocation177_spill] sm:$0xff]  ;;  %v7949_v12 = vld [vmem:[#allocation12_spill] sm:$0xff] }
 0x7cf   :  { %2981 = vmatpush1.bf16.msra.mxu0 %v7939_v20  ;;  %3024 = vmatpush1.bf16.msra.mxu1 %v7940_v5  ;;  %v7950_v20 = vld [vmem:[#allocation14_spill] sm:$0xff] }
 0x7d0   :  { %2982 = vmatprep.subr.bf16.mxu0 %v7941_v27  ;;  %3025 = vmatprep.subr.bf16.mxu1 %v7942_v11  ;;  %v7951_v11 = vld [vmem:[#allocation13_spill] sm:$0xff]  ;;  %v7960_v27 = vld [vmem:[#allocation23_spill] sm:$0xff]  ;;  %v8015_v5 = vld [vmem:[#allocation202_spill] sm:$0xff] }
 0x7d3   :  { %2983 = vmatpush1.bf16.msra.mxu0 %v7943_v55  ;;  %3026 = vmatpush1.bf16.msra.mxu1 %v7944_v0  ;;  %v7952_v55 = vld [vmem:[#allocation15_spill] sm:$0xff]  ;;  %v7953_v0 = vld [vmem:[#allocation16_spill] sm:$0xff] }
 0x7d4   :  { %2984 = vmatprep.subr.bf16.mxu0 %v7945_v13  ;;  %3027 = vmatprep.subr.bf16.mxu1 %v7946_v39  ;;  %v7954_v13 = vld [vmem:[#allocation17_spill] sm:$0xff]  ;;  %v7955_v39 = vld [vmem:[#allocation18_spill] sm:$0xff] }
 0x7d7   :  { %2985 = vmatpush1.bf16.msra.mxu0 %v7947_v24  ;;  %3028 = vmatpush1.bf16.msra.mxu1 %v7948_v63  ;;  %v7956_v24 = vld [vmem:[#allocation20_spill] sm:$0xff]  ;;  %v7957_v63 = vld [vmem:[#allocation19_spill] sm:$0xff] }
 0x7d8   :  { %3162 = vmatprep.subr.bf16.mxu0 %v7949_v12  ;;  %3205 = vmatprep.subr.bf16.mxu1 %v7950_v20  ;;  %v7958_v12 = vld [vmem:[#allocation21_spill] sm:$0xff]  ;;  %v7959_v20 = vld [vmem:[#allocation22_spill] sm:$0xff] }
 0x7da   :  { %2987 = vmatmul.mubr.bf16.vlgmr.msra.gmra.mrb[76].mxu0 %v6460_v47  ;;  %3030 = vmatmul.mubr.bf16.vlgmr.msra.gmra.mrb[76].mxu1 %v6460_v47  ;;  %v7961_v47 = vld [vmem:[#allocation24_spill] sm:$0xff] }
 0x7db   :  { %3163 = vmatpush1.bf16.msra.mxu0 %v7951_v11  ;;  %3206 = vmatpush1.bf16.msra.mxu1 %v7952_v55  ;;  %v7962_v11 = vld [vmem:[#allocation25_spill] sm:$0xff]  ;;  %v7963_v55 = vld [vmem:[#allocation26_spill] sm:$0xff] }
 0x7dc   :  { %3164 = vmatprep.subr.bf16.mxu0 %v7953_v0  ;;  %3207 = vmatprep.subr.bf16.mxu1 %v7954_v13  ;;  %v7964_v0 = vld [vmem:[#allocation27_spill] sm:$0xff]  ;;  %v7965_v13 = vld [vmem:[#allocation28_spill] sm:$0xff] }
 0x7df   :  { %3165 = vmatpush1.bf16.msra.mxu0 %v7955_v39  ;;  %3208 = vmatpush1.bf16.msra.mxu1 %v7956_v24  ;;  %v7966_v39 = vld [vmem:[#allocation29_spill] sm:$0xff]  ;;  %v7967_v24 = vld [vmem:[#allocation30_spill] sm:$0xff] }
 0x7e0   :  { %3166 = vmatprep.subr.bf16.mxu0 %v7957_v63  ;;  %3209 = vmatprep.subr.bf16.mxu1 %v7958_v12  ;;  %v7968_v63 = vld [vmem:[#allocation31_spill] sm:$0xff]  ;;  %v7969_v12 = vld [vmem:[#allocation32_spill] sm:$0xff] }
 0x7e3   :  { %3167 = vmatpush1.bf16.msra.mxu0 %v7959_v20  ;;  %3210 = vmatpush1.bf16.msra.mxu1 %v7960_v27  ;;  %v7970_v20 = vld [vmem:[#allocation33_spill] sm:$0xff]  ;;  %v7971_v27 = vld [vmem:[#allocation34_spill] sm:$0xff] }
 0x7e4   :  { %3168 = vmatprep.subr.bf16.mxu0 %v7961_v47  ;;  %3211 = vmatprep.subr.bf16.mxu1 %v7962_v11  ;;  %v7972_v47 = vld [vmem:[#allocation35_spill] sm:$0xff]  ;;  %v7973_v11 = vld [vmem:[#allocation36_spill] sm:$0xff] }
 0x7e7   :  { %3169 = vmatpush1.bf16.msra.mxu0 %v7963_v55  ;;  %3212 = vmatpush1.bf16.msra.mxu1 %v7964_v0  ;;  %v7974_v55 = vld [vmem:[#allocation37_spill] sm:$0xff]  ;;  %v7975_v0 = vld [vmem:[#allocation38_spill] sm:$0xff] }
 0x7e8   :  { %3170 = vmatprep.subr.bf16.mxu0 %v7965_v13  ;;  %3213 = vmatprep.subr.bf16.mxu1 %v7966_v39  ;;  %v7976_v13 = vld [vmem:[#allocation39_spill] sm:$0xff]  ;;  %v7977_v39 = vld [vmem:[#allocation40_spill] sm:$0xff] }
 0x7eb   :  { %3171 = vmatpush1.bf16.msra.mxu0 %v7967_v24  ;;  %3214 = vmatpush1.bf16.msra.mxu1 %v7968_v63  ;;  %v7978_v24 = vld [vmem:[#allocation41_spill] sm:$0xff]  ;;  %v7979_v63 = vld [vmem:[#allocation42_spill] sm:$0xff] }
 0x7ec   :  { %3172 = vmatprep.subr.bf16.mxu0 %v7969_v12  ;;  %3215 = vmatprep.subr.bf16.mxu1 %v7970_v20  ;;  %v7980_v12 = vld [vmem:[#allocation43_spill] sm:$0xff]  ;;  %v7981_v20 = vld [vmem:[#allocation44_spill] sm:$0xff] }
 0x7ef   :  { %3173 = vmatpush1.bf16.msra.mxu0 %v7971_v27  ;;  %3216 = vmatpush1.bf16.msra.mxu1 %v7972_v47  ;;  %v7982_v27 = vld [vmem:[#allocation45_spill] sm:$0xff]  ;;  %v7983_v47 = vld [vmem:[#allocation46_spill] sm:$0xff] }
 0x7f0   :  { %3174 = vmatprep.subr.bf16.mxu0 %v7973_v11  ;;  %3217 = vmatprep.subr.bf16.mxu1 %v7974_v55  ;;  %v7984_v11 = vld [vmem:[#allocation47_spill] sm:$0xff]  ;;  %v7985_v55 = vld [vmem:[#allocation48_spill] sm:$0xff] }
 0x7f3   :  { %3175 = vmatpush1.bf16.msra.mxu0 %v7975_v0  ;;  %3218 = vmatpush1.bf16.msra.mxu1 %v7976_v13  ;;  %v7986_v0 = vld [vmem:[#allocation49_spill] sm:$0xff]  ;;  %v7987_v13 = vld [vmem:[#allocation50_spill] sm:$0xff] }
 0x7f4   :  { %3176 = vmatprep.subr.bf16.mxu0 %v7977_v39  ;;  %3219 = vmatprep.subr.bf16.mxu1 %v7978_v24  ;;  %v7988_v39 = vld [vmem:[#allocation51_spill] sm:$0xff]  ;;  %v7989_v24 = vld [vmem:[#allocation52_spill] sm:$0xff] }
 0x7f7   :  { %3177 = vmatpush1.bf16.msra.mxu0 %v7979_v63  ;;  %3220 = vmatpush1.bf16.msra.mxu1 %v7980_v12  ;;  %v7990_v63 = vld [vmem:[#allocation53_spill] sm:$0xff]  ;;  %v7991_v12 = vld [vmem:[#allocation54_spill] sm:$0xff] }
 0x7f8   :  { %3178 = vmatprep.subr.bf16.mxu0 %v7981_v20  ;;  %3221 = vmatprep.subr.bf16.mxu1 %v7982_v27  ;;  %v7992_v20 = vld [vmem:[#allocation55_spill] sm:$0xff]  ;;  %v7993_v27 = vld [vmem:[#allocation56_spill] sm:$0xff] }
 0x7fb   :  { %3179 = vmatpush1.bf16.msra.mxu0 %v7983_v47  ;;  %3222 = vmatpush1.bf16.msra.mxu1 %v7984_v11  ;;  %v7994_v47 = vld [vmem:[#allocation57_spill] sm:$0xff]  ;;  %v7995_v11 = vld [vmem:[#allocation58_spill] sm:$0xff] }
 0x7fc   :  { %3180 = vmatprep.subr.bf16.mxu0 %v7985_v55  ;;  %3223 = vmatprep.subr.bf16.mxu1 %v7986_v0  ;;  %v7996_v55 = vld [vmem:[#allocation59_spill] sm:$0xff]  ;;  %v7997_v0 = vld [vmem:[#allocation60_spill] sm:$0xff] }
 0x7ff   :  { %3181 = vmatpush1.bf16.msra.mxu0 %v7987_v13  ;;  %3224 = vmatpush1.bf16.msra.mxu1 %v7988_v39  ;;  %v7998_v13 = vld [vmem:[#allocation61_spill] sm:$0xff]  ;;  %v7999_v39 = vld [vmem:[#allocation62_spill] sm:$0xff] }
 0x800   :  { %3182 = vmatprep.subr.bf16.mxu0 %v7989_v24  ;;  %3225 = vmatprep.subr.bf16.mxu1 %v7990_v63  ;;  %v8000_v24 = vld [vmem:[#allocation63_spill] sm:$0xff]  ;;  %v8001_v63 = vld [vmem:[#allocation64_spill] sm:$0xff] }
 0x803   :  { %3183 = vmatpush1.bf16.msra.mxu0 %v7991_v12  ;;  %3226 = vmatpush1.bf16.msra.mxu1 %v7992_v20  ;;  %v8002_v12 = vld [vmem:[#allocation66_spill] sm:$0xff]  ;;  %v8003_v20 = vld [vmem:[#allocation65_spill] sm:$0xff] }
 0x804   :  { %3184 = vmatprep.subr.bf16.mxu0 %v7993_v27  ;;  %3227 = vmatprep.subr.bf16.mxu1 %v7994_v47  ;;  %v8004_v27 = vld [vmem:[#allocation67_spill] sm:$0xff]  ;;  %v8005_v47 = vld [vmem:[#allocation68_spill] sm:$0xff] }
 0x807   :  { %3185 = vmatpush1.bf16.msra.mxu0 %v7995_v11  ;;  %3228 = vmatpush1.bf16.msra.mxu1 %v7996_v55  ;;  %v8006_v11 = vld [vmem:[#allocation69_spill] sm:$0xff]  ;;  %v8007_v55 = vld [vmem:[#allocation70_spill] sm:$0xff] }
 0x808   :  { %3186 = vmatprep.subr.bf16.mxu0 %v7997_v0  ;;  %3229 = vmatprep.subr.bf16.mxu1 %v7998_v13  ;;  %v8008_v0 = vld [vmem:[#allocation71_spill] sm:$0xff]  ;;  %v8009_v13 = vld [vmem:[#allocation72_spill] sm:$0xff] }
 0x80b   :  { %3187 = vmatpush1.bf16.msra.mxu0 %v7999_v39  ;;  %3230 = vmatpush1.bf16.msra.mxu1 %v8000_v24  ;;  %v8010_v39 = vld [vmem:[#allocation73_spill] sm:$0xff]  ;;  %v8011_v24 = vld [vmem:[#allocation74_spill] sm:$0xff] }
 0x80c   :  { %3188 = vmatprep.subr.bf16.mxu0 %v8001_v63  ;;  %3231 = vmatprep.subr.bf16.mxu1 %v8002_v12  ;;  %v8012_v63 = vld [vmem:[#allocation75_spill] sm:$0xff]  ;;  %v8013_v12 = vld [vmem:[#allocation76_spill] sm:$0xff] }
 0x80f   :  { %3189 = vmatpush1.bf16.msra.mxu0 %v8003_v20  ;;  %3232 = vmatpush1.bf16.msra.mxu1 %v8004_v27  ;;  %v8014_v20 = vld [vmem:[#allocation77_spill] sm:$0xff] }
 0x810   :  { %3190 = vmatprep.subr.bf16.mxu0 %v8005_v47  ;;  %3233 = vmatprep.subr.bf16.mxu1 %v8006_v11 }
 0x813   :  { %3191 = vmatpush1.bf16.msra.mxu0 %v8007_v55  ;;  %3234 = vmatpush1.bf16.msra.mxu1 %v8008_v0 }
 0x814   :  { %3192 = vmatprep.subr.bf16.mxu0 %v8009_v13  ;;  %3235 = vmatprep.subr.bf16.mxu1 %v8010_v39 }
 0x817   :  { %3193 = vmatpush1.bf16.msra.mxu0 %v8011_v24  ;;  %3236 = vmatpush1.bf16.msra.mxu1 %v8012_v63 }
 0x818   :  { %3248 = vmatprep.subr.bf16.mxu0 %v8013_v12  ;;  %3291 = vmatprep.subr.bf16.mxu1 %v8014_v20 }
 0x86d   :  { %v2902_v27 = vpop.f32.mrb[72].mxu0  ;;  %v2945_v47 = vpop.f32.mrb[72].mxu1 }
 0x86e   :  { %v3040_v11 = vadd.f32 %v2902_v27, %v8015_v5  ;;  %v2904_v46 = vpop.f32.mrb[73].mxu0  ;;  %v2947_v55 = vpop.f32.mrb[73].mxu1 }
 0x86f   :  { %v3041_v0 = vadd.f32 %v2904_v46, %v8016_v33  ;;  %v2906_v6 = vpop.f32.mrb[74].mxu0  ;;  %v2949_v13 = vpop.f32.mrb[74].mxu1  ;;  %v3043_v27 = vadd.f32 %v2947_v55, %v8017_v35  ;;  %v3042_v46 = vadd.f32 %v2945_v47, %v8018_v18 }
 0x870   :  { %v4043_v21 = vmul.f32 -1.442695, %v3040_v11  ;;  %v3044_v39 = vadd.f32 %v2906_v6, %v8015_v5  ;;  %v2908_v24 = vpop.f32.mrb[75].mxu0  ;;  %v2951_v51 = vpop.f32.mrb[75].mxu1  ;;  %v3046_v6 = vadd.f32 %v2949_v13, %v8018_v18 }
 0x871   :  { %v4045_v63 = vmul.f32 -1.442695, %v3041_v0  ;;  %v3045_v12 = vadd.f32 %v2908_v24, %v8016_v33  ;;  %v4047_v30 = vmul.f32 -1.442695, %v3043_v27  ;;  %v3047_v11 = vadd.f32 %v2951_v51, %v8017_v35 }
 0x872   :  { %4614 = vpow2.f32 %v4043_v21  ;;  %v4044_v20 = vmul.f32 -1.442695, %v3044_v39 }
 0x873   :  { %4616 = vpow2.f32 %v4045_v63  ;;  %v4046_v40 = vmul.f32 -1.442695, %v3045_v12  ;;  %v4048_v21 = vmul.f32 -1.442695, %v3047_v11 }
 0x874   :  { %4618 = vpow2.f32 %v4044_v20 }
 0x875   :  { %4620 = vpow2.f32 %v4046_v40 }
 0x876   :  { %4622 = vtanh.f32 %v3042_v46 }
 0x877   :  { %4624 = vpow2.f32 %v4047_v30  ;;  %v8019_v30 = vld [vmem:[#allocation87_spill] sm:$0xff] }
 0x878   :  { %4626 = vtanh.f32 %v3046_v6 }
 0x87c   :  { %v4615_v5 = vpop.eup %4614 }
 0x87d   :  { %v4617_v0 = vpop.eup %4616  ;;  %v3054_v19 = vadd.f32 1.0, %v4615_v5 }
 0x87e   :  { %v3066_v39 = vadd.f32 1.0, %v4617_v0  ;;  %v4619_v24 = vpop.eup %4618 }
 0x87f   :  { %4628 = vrcp.f32 %v3054_v19  ;;  %v3055_v63 = vadd.f32 1.0, %v4619_v24  ;;  %v4621_v40 = vpop.eup %4620 }
 0x880   :  { %4630 = vrcp.f32 %v3066_v39  ;;  %v3067_v55 = vadd.f32 1.0, %v4621_v40  ;;  %v4623_v51 = vpop.eup %4622 }
 0x881   :  { %4632 = vpow2.f32 %v4048_v21  ;;  %v4625_v47 = vpop.eup %4624  ;;  %v8021_v21 = vld [vmem:[#allocation124_spill] sm:$0xff] }
 0x882   :  { %4634 = vrcp.f32 %v3055_v63  ;;  %v4627_v13 = vpop.eup %4626  ;;  %v3080_v6 = vadd.f32 1.0, %v4625_v47 }
 0x883   :  { %4636 = vrcp.f32 %v3067_v55 }
 0x884   :  { %4638 = vrcp.f32 %v3080_v6 }
 0x889   :  { %v4629_v12 = vpop.eup %4628 }
 0x88a   :  { %v4631_v20 = vpop.eup %4630  ;;  %v3088_v27 = vmul.f32 %v4629_v12, %v4623_v51 }
 0x88b   :  { %v4633_v5 = vpop.eup %4632  ;;  %v3086_v46 = vmul.f32 %v4631_v20, %v8019_v30 }
 0x88c   :  { %v4635_v11 = vpop.eup %4634  ;;  %v3081_v24 = vadd.f32 1.0, %v4633_v5  ;;  %v8024_v5 = vld [vmem:[#allocation186_spill] sm:$0xff] }
 0x88d   :  { %v6605_v0 = vadd.f32 %v3088_v27, %v3086_v46  ;;  %v3089_v19 = vmul.f32 %v4635_v11, %v4627_v13  ;;  %v4637_v39 = vpop.eup %4636  ;;  %v8023_v13 = vld [vmem:[#allocation80_spill] sm:$0xff] }
 0x88e   :  { %v3087_v63 = vmul.f32 %v4637_v39, %v8021_v21  ;;  %v4639_v55 = vpop.eup %4638  ;;  %v295_v46 = vadd.f32 %v8024_v5, %v8023_v13  ;;  %v8025_v11 = vld [vmem:[#allocation188_spill] sm:$0xff] }
 0x88f   :  { %8020 = vst [vmem:[#allocation126_spill] sm:$0xff] %v6605_v0  ;;  %4640 = vtanh.f32 %v6605_v0  ;;  %v456_v6 = vadd.f32 %v8025_v11, %v7457_v59  ;;  %v8030_v11 = vld [vmem:[#allocation191_spill] sm:$0xff] }
 0x890   :  { %v6609_v40 = vadd.f32 %v3089_v19, %v3087_v63  ;;  %4642 = vrcp.f32 %v3081_v24  ;;  %v8026_v19 = vld [vmem:[#allocation187_spill] sm:$0xff]  ;;  %v8027_v24 = vld [vmem:[#allocation189_spill] sm:$0xff]  ;;  %v303_v18 = vadd.f32 %v8030_v11, %v7459_v42 }
 0x891   :  { %v297_v39 = vadd.f32 %v8026_v19, %v7459_v42  ;;  %v458_v21 = vadd.f32 %v8027_v24, %v7461_v54  ;;  %v8031_v19 = vld [vmem:[#allocation193_spill] sm:$0xff] }
 0x892   :  { %8022 = vst [vmem:[#allocation125_spill] sm:$0xff] %v6609_v40  ;;  %4644 = vtanh.f32 %v6609_v40  ;;  %v464_v35 = vadd.f32 %v8031_v19, %v7461_v54 }
 0x899   :  { %v4641_v51 = vpop.eup %4640 }
 0x89a   :  { %v4643_v12 = vpop.eup %4642  ;;  %v3094_v47 = vmul.f32 %v4641_v51, %v4639_v55  ;;  %v8028_v51 = vld [vmem:[#allocation190_spill] sm:$0xff] }
 0x89c   :  { %v4645_v20 = vpop.eup %4644 }
 0x89d   :  { %v3095_v27 = vmul.f32 %v4645_v20, %v4643_v12  ;;  %v301_v12 = vadd.f32 %v8028_v51, %v8023_v13  ;;  %v8029_v20 = vld [vmem:[#allocation192_spill] sm:$0xff] }
 0x89f   :  { %v6612_v30 = vpack.c.bf16 %v3095_v27, %v3094_v47  ;;  %v462_v47 = vadd.f32 %v8029_v20, %v7457_v59 }
 0x8a1   :  { %3194 = vmatprep.mubr.bf16.mxu0 %v6612_v30  ;;  %3237 = vmatprep.mubr.bf16.mxu1 %v6612_v30 }
 0x8ad   :  { %v2988_v63 = vpop.f32.mrb[76].mxu0  ;;  %v3031_v55 = vpop.f32.mrb[76].mxu1 }
 0x8ae   :  { %v3104_v27 = vadd.f32 %v2988_v63, %v295_v46  ;;  %v3106_v40 = vadd.f32 %v3031_v55, %v456_v6  ;;  %v2990_v5 = vpop.f32.mrb[77].mxu0  ;;  %v3033_v0 = vpop.f32.mrb[77].mxu1 }
 0x8af   :  { %v3105_v33 = vadd.f32 %v2990_v5, %v297_v39  ;;  %v3107_v24 = vadd.f32 %v3033_v0, %v458_v21  ;;  %v2992_v32 = vpop.f32.mrb[78].mxu0  ;;  %v3035_v34 = vpop.f32.mrb[78].mxu1 }
 0x8b0   :  { %v4049_v62 = vmul.f32 -1.442695, %v3104_v27  ;;  %v3108_v48 = vadd.f32 %v2992_v32, %v301_v12  ;;  %v3110_v51 = vadd.f32 %v3035_v34, %v462_v47  ;;  %v2994_v13 = vpop.f32.mrb[79].mxu0  ;;  %v3037_v45 = vpop.f32.mrb[79].mxu1 }
 0x8b1   :  { %v4051_v20 = vmul.f32 -1.442695, %v3105_v33  ;;  %v3109_v46 = vadd.f32 %v2994_v13, %v303_v18  ;;  %v3111_v6 = vadd.f32 %v3037_v45, %v464_v35  ;;  %v4053_v11 = vmul.f32 -1.442695, %v3107_v24 }
 0x8b2   :  { %4646 = vpow2.f32 %v4049_v62  ;;  %v4050_v63 = vmul.f32 -1.442695, %v3108_v48 }
 0x8b3   :  { %4648 = vpow2.f32 %v4051_v20  ;;  %v4052_v55 = vmul.f32 -1.442695, %v3109_v46  ;;  %v4054_v21 = vmul.f32 -1.442695, %v3111_v6 }
 0x8b4   :  { %4650 = vpow2.f32 %v4050_v63 }
 0x8b5   :  { %4652 = vpow2.f32 %v4052_v55 }
 0x8b6   :  { %4654 = vtanh.f32 %v3106_v40 }
 0x8b7   :  { %4656 = vpow2.f32 %v4053_v11 }
 0x8b8   :  { %4658 = vtanh.f32 %v3110_v51 }
 0x8bc   :  { %v4647_v19 = vpop.eup %4646 }
 0x8bd   :  { %v4649_v0 = vpop.eup %4648  ;;  %v3118_v39 = vadd.f32 1.0, %v4647_v19 }
 0x8be   :  { %v3130_v32 = vadd.f32 1.0, %v4649_v0  ;;  %v4651_v34 = vpop.eup %4650 }
 0x8bf   :  { %4660 = vrcp.f32 %v3118_v39  ;;  %v3119_v18 = vadd.f32 1.0, %v4651_v34  ;;  %v4653_v45 = vpop.eup %4652  ;;  %v8066_v34 = vld [vmem:[#allocation16_spill] sm:$0xff] }
 0x8c0   :  { %4662 = vrcp.f32 %v3130_v32  ;;  %v3131_v48 = vadd.f32 1.0, %v4653_v45  ;;  %v4655_v62 = vpop.eup %4654  ;;  %v8068_v45 = vld [vmem:[#allocation18_spill] sm:$0xff] }
 0x8c1   :  { %4664 = vpow2.f32 %v4054_v21  ;;  %v4657_v35 = vpop.eup %4656 }
 0x8c2   :  { %4666 = vrcp.f32 %v3119_v18  ;;  %v4659_v33 = vpop.eup %4658  ;;  %v3144_v24 = vadd.f32 1.0, %v4657_v35  ;;  %v8067_v18 = vld [vmem:[#allocation17_spill] sm:$0xff] }
 0x8c3   :  { %4668 = vrcp.f32 %v3131_v48  ;;  %v8069_v48 = vld [vmem:[#allocation20_spill] sm:$0xff]  ;;  %v8071_v35 = vld [vmem:[#allocation21_spill] sm:$0xff] }
 0x8c4   :  { %4670 = vrcp.f32 %v3144_v24  ;;  %v8079_v24 = vld [vmem:[#allocation29_spill] sm:$0xff] }
 0x8c9   :  { %v4661_v13 = vpop.eup %4660 }
 0x8ca   :  { %v4663_v40 = vpop.eup %4662  ;;  %v3152_v12 = vmul.f32 %v4661_v13, %v4655_v62  ;;  %v8070_v62 = vld [vmem:[#allocation19_spill] sm:$0xff] }
 0x8cb   :  { %v4665_v47 = vpop.eup %4664  ;;  %v3150_v27 = vmul.f32 %v4663_v40, %v6453_v14  ;;  %v8073_v13 = vld [vmem:[#allocation23_spill] sm:$0xff]  ;;  %v8074_v40 = vld [vmem:[#allocation24_spill] sm:$0xff] }
 0x8cc   :  { %v4667_v5 = vpop.eup %4666  ;;  %v3145_v6 = vadd.f32 1.0, %v4665_v47  ;;  %v8076_v47 = vld [vmem:[#allocation26_spill] sm:$0xff] }
 0x8cd   :  { %v6633_v51 = vadd.f32 %v3152_v12, %v3150_v27  ;;  %v3153_v20 = vmul.f32 %v4667_v5, %v4659_v33  ;;  %v4669_v46 = vpop.eup %4668  ;;  %v8072_v33 = vld [vmem:[#allocation22_spill] sm:$0xff]  ;;  %v8075_v12 = vld [vmem:[#allocation25_spill] sm:$0xff]  ;;  %v8077_v27 = vld [vmem:[#allocation27_spill] sm:$0xff] }
 0x8ce   :  { %v3151_v63 = vmul.f32 %v4669_v46, %v6457_v17  ;;  %v4671_v11 = vpop.eup %4670  ;;  %v8064_v17 = vld [vmem:[#allocation13_spill] sm:$0xff]  ;;  %v8078_v5 = vld [vmem:[#allocation28_spill] sm:$0xff]  ;;  %v8081_v46 = vld [vmem:[#allocation31_spill] sm:$0xff] }
 0x8cf   :  { %4672 = vtanh.f32 %v6633_v51 }
 0x8d0   :  { %v6637_v55 = vadd.f32 %v3153_v20, %v3151_v63  ;;  %4674 = vrcp.f32 %v3145_v6  ;;  %v8080_v20 = vld [vmem:[#allocation30_spill] sm:$0xff]  ;;  %v8082_v6 = vld [vmem:[#allocation32_spill] sm:$0xff]  ;;  %v8083_v63 = vld [vmem:[#allocation33_spill] sm:$0xff] }
 0x8d2   :  { %4676 = vtanh.f32 %v6637_v55 }
 0x8d9   :  { %v4673_v19 = vpop.eup %4672 }
 0x8da   :  { %v4675_v14 = vpop.eup %4674  ;;  %v3158_v39 = vmul.f32 %v4673_v19, %v4671_v11  ;;  %v8084_v11 = vld [vmem:[#allocation34_spill] sm:$0xff]  ;;  %v8085_v19 = vld [vmem:[#allocation35_spill] sm:$0xff] }
 0x8dc   :  { %v4677_v0 = vpop.eup %4676 }
 0x8dd   :  { %v3159_v21 = vmul.f32 %v4677_v0, %v4675_v14  ;;  %v8086_v14 = vld [vmem:[#allocation36_spill] sm:$0xff]  ;;  %v8087_v0 = vld [vmem:[#allocation37_spill] sm:$0xff] }
 0x8df   :  { %v6640_v32 = vpack.c.bf16 %v3159_v21, %v3158_v39  ;;  %v8088_v39 = vld [vmem:[#allocation38_spill] sm:$0xff]  ;;  %v8089_v21 = vld [vmem:[#allocation39_spill] sm:$0xff] }
 0x8e1   :  { %3195 = vmatmul.mubr.bf16.vlgmr.msra.gmra.mrb[80].mxu0 %v6640_v32  ;;  %3238 = vmatmul.mubr.bf16.vlgmr.msra.gmra.mrb[80].mxu1 %v6640_v32 }
 0x8e2   :  { %3249 = vmatpush1.bf16.msra.mxu0 %v7469_v7  ;;  %3292 = vmatpush1.bf16.msra.mxu1 %v7470_v10  ;;  %v8032_v7 = vld [vmem:[#allocation120_spill] sm:$0xff]  ;;  %v8033_v10 = vld [vmem:[#allocation121_spill] sm:$0xff] }
 0x8e3   :  { %3280 = vmatprep.mubr.bf16.mxu0 %v6612_v30  ;;  %3323 = vmatprep.mubr.bf16.mxu1 %v6612_v30  ;;  %v8065_v30 = vld [vmem:[#allocation15_spill] sm:$0xff] }
 0x8e4   :  { %3250 = vmatprep.subr.bf16.mxu0 %v7471_v22  ;;  %3293 = vmatprep.subr.bf16.mxu1 %v7472_v53  ;;  %v8034_v22 = vld [vmem:[#allocation122_spill] sm:$0xff]  ;;  %v8035_v53 = vld [vmem:[#allocation123_spill] sm:$0xff] }
 0x8e6   :  { %3251 = vmatpush1.bf16.msra.mxu0 %v7473_v8  ;;  %3294 = vmatpush1.bf16.msra.mxu1 %v7474_v23  ;;  %v8036_v8 = vld [vmem:[#allocation128_spill] sm:$0xff]  ;;  %v8037_v23 = vld [vmem:[#allocation129_spill] sm:$0xff] }
 0x8e7   :  { %3252 = vmatprep.subr.bf16.mxu0 %v7475_v41  ;;  %3295 = vmatprep.subr.bf16.mxu1 %v7476_v44  ;;  %v8038_v41 = vld [vmem:[#allocation130_spill] sm:$0xff]  ;;  %v8039_v44 = vld [vmem:[#allocation131_spill] sm:$0xff] }
 0x8ea   :  { %3253 = vmatpush1.bf16.msra.mxu0 %v7477_v15  ;;  %3296 = vmatpush1.bf16.msra.mxu1 %v7478_v58  ;;  %v8040_v15 = vld [vmem:[#allocation136_spill] sm:$0xff]  ;;  %v8041_v58 = vld [vmem:[#allocation137_spill] sm:$0xff] }
 0x8eb   :  { %3254 = vmatprep.subr.bf16.mxu0 %v7479_v28  ;;  %3297 = vmatprep.subr.bf16.mxu1 %v7480_v4  ;;  %v8042_v28 = vld [vmem:[#allocation138_spill] sm:$0xff]  ;;  %v8043_v4 = vld [vmem:[#allocation139_spill] sm:$0xff] }
 0x8ee   :  { %3255 = vmatpush1.bf16.msra.mxu0 %v7481_v49  ;;  %3298 = vmatpush1.bf16.msra.mxu1 %v7580_v50  ;;  %v8044_v49 = vld [vmem:[#allocation144_spill] sm:$0xff]  ;;  %v8045_v50 = vld [vmem:[#allocation145_spill] sm:$0xff] }
 0x8ef   :  { %3256 = vmatprep.subr.bf16.mxu0 %v7581_v25  ;;  %3299 = vmatprep.subr.bf16.mxu1 %v7582_v16  ;;  %v8046_v25 = vld [vmem:[#allocation146_spill] sm:$0xff]  ;;  %v8047_v16 = vld [vmem:[#allocation147_spill] sm:$0xff] }
 0x8f2   :  { %3257 = vmatpush1.bf16.msra.mxu0 %v7583_v26  ;;  %3300 = vmatpush1.bf16.msra.mxu1 %v7584_v29  ;;  %v8048_v26 = vld [vmem:[#allocation152_spill] sm:$0xff]  ;;  %v8049_v29 = vld [vmem:[#allocation153_spill] sm:$0xff] }
 0x8f3   :  { %3258 = vmatprep.subr.bf16.mxu0 %v7585_v38  ;;  %3301 = vmatprep.subr.bf16.mxu1 %v7586_v9  ;;  %v8050_v38 = vld [vmem:[#allocation154_spill] sm:$0xff]  ;;  %v8051_v9 = vld [vmem:[#allocation155_spill] sm:$0xff] }
 0x8f6   :  { %3259 = vmatpush1.bf16.msra.mxu0 %v7587_v37  ;;  %3302 = vmatpush1.bf16.msra.mxu1 %v7588_v60  ;;  %v8052_v37 = vld [vmem:[#allocation160_spill] sm:$0xff]  ;;  %v8053_v60 = vld [vmem:[#allocation161_spill] sm:$0xff] }
 0x8f7   :  { %3260 = vmatprep.subr.bf16.mxu0 %v7589_v52  ;;  %3303 = vmatprep.subr.bf16.mxu1 %v7590_v31  ;;  %v8054_v52 = vld [vmem:[#allocation162_spill] sm:$0xff]  ;;  %v8055_v31 = vld [vmem:[#allocation163_spill] sm:$0xff] }
 0x8fa   :  { %3261 = vmatpush1.bf16.msra.mxu0 %v7591_v1  ;;  %3304 = vmatpush1.bf16.msra.mxu1 %v7592_v61  ;;  %v8056_v1 = vld [vmem:[#allocation168_spill] sm:$0xff]  ;;  %v8057_v61 = vld [vmem:[#allocation169_spill] sm:$0xff] }
 0x8fb   :  { %3262 = vmatprep.subr.bf16.mxu0 %v7593_v2  ;;  %3305 = vmatprep.subr.bf16.mxu1 %v7594_v43  ;;  %v8058_v2 = vld [vmem:[#allocation170_spill] sm:$0xff]  ;;  %v8059_v43 = vld [vmem:[#allocation171_spill] sm:$0xff] }
 0x8fe   :  { %3263 = vmatpush1.bf16.msra.mxu0 %v7595_v56  ;;  %3306 = vmatpush1.bf16.msra.mxu1 %v7596_v3  ;;  %v8060_v56 = vld [vmem:[#allocation176_spill] sm:$0xff]  ;;  %v8061_v3 = vld [vmem:[#allocation177_spill] sm:$0xff] }
 0x8ff   :  { %3264 = vmatprep.subr.bf16.mxu0 %v7693_v57  ;;  %3307 = vmatprep.subr.bf16.mxu1 %v7598_v36  ;;  %v8062_v36 = vld [vmem:[#allocation12_spill] sm:$0xff]  ;;  %v8063_v57 = vld [vmem:[#allocation14_spill] sm:$0xff] }
 0x902   :  { %3265 = vmatpush1.bf16.msra.mxu0 %v8032_v7  ;;  %3308 = vmatpush1.bf16.msra.mxu1 %v8033_v10  ;;  %v8091_v7 = vld [vmem:[#allocation41_spill] sm:$0xff]  ;;  %v8092_v10 = vld [vmem:[#allocation42_spill] sm:$0xff] }
 0x903   :  { %3266 = vmatprep.subr.bf16.mxu0 %v8034_v22  ;;  %3309 = vmatprep.subr.bf16.mxu1 %v8035_v53  ;;  %v8093_v22 = vld [vmem:[#allocation43_spill] sm:$0xff]  ;;  %v8094_v53 = vld [vmem:[#allocation44_spill] sm:$0xff] }
 0x906   :  { %3267 = vmatpush1.bf16.msra.mxu0 %v8036_v8  ;;  %3310 = vmatpush1.bf16.msra.mxu1 %v8037_v23  ;;  %v8095_v8 = vld [vmem:[#allocation45_spill] sm:$0xff]  ;;  %v8096_v23 = vld [vmem:[#allocation46_spill] sm:$0xff] }
 0x907   :  { %3268 = vmatprep.subr.bf16.mxu0 %v8038_v41  ;;  %3311 = vmatprep.subr.bf16.mxu1 %v8039_v44  ;;  %v8097_v41 = vld [vmem:[#allocation47_spill] sm:$0xff]  ;;  %v8098_v44 = vld [vmem:[#allocation48_spill] sm:$0xff] }
 0x90a   :  { %3269 = vmatpush1.bf16.msra.mxu0 %v8040_v15  ;;  %3312 = vmatpush1.bf16.msra.mxu1 %v8041_v58  ;;  %v8099_v15 = vld [vmem:[#allocation49_spill] sm:$0xff]  ;;  %v8100_v58 = vld [vmem:[#allocation50_spill] sm:$0xff] }
 0x90b   :  { %3270 = vmatprep.subr.bf16.mxu0 %v8042_v28  ;;  %3313 = vmatprep.subr.bf16.mxu1 %v8043_v4  ;;  %v8101_v28 = vld [vmem:[#allocation51_spill] sm:$0xff]  ;;  %v8102_v4 = vld [vmem:[#allocation52_spill] sm:$0xff] }
 0x90e   :  { %3271 = vmatpush1.bf16.msra.mxu0 %v8044_v49  ;;  %3314 = vmatpush1.bf16.msra.mxu1 %v8045_v50  ;;  %v8103_v49 = vld [vmem:[#allocation53_spill] sm:$0xff]  ;;  %v8104_v50 = vld [vmem:[#allocation54_spill] sm:$0xff] }
 0x90f   :  { %3272 = vmatprep.subr.bf16.mxu0 %v8046_v25  ;;  %3315 = vmatprep.subr.bf16.mxu1 %v8047_v16  ;;  %v8105_v25 = vld [vmem:[#allocation55_spill] sm:$0xff]  ;;  %v8106_v16 = vld [vmem:[#allocation56_spill] sm:$0xff] }
 0x912   :  { %3273 = vmatpush1.bf16.msra.mxu0 %v8048_v26  ;;  %3316 = vmatpush1.bf16.msra.mxu1 %v8049_v29  ;;  %v8107_v26 = vld [vmem:[#allocation57_spill] sm:$0xff]  ;;  %v8108_v29 = vld [vmem:[#allocation58_spill] sm:$0xff] }
 0x913   :  { %3274 = vmatprep.subr.bf16.mxu0 %v8050_v38  ;;  %3317 = vmatprep.subr.bf16.mxu1 %v8051_v9  ;;  %v8109_v38 = vld [vmem:[#allocation59_spill] sm:$0xff]  ;;  %v8110_v9 = vld [vmem:[#allocation60_spill] sm:$0xff] }
 0x916   :  { %3275 = vmatpush1.bf16.msra.mxu0 %v8052_v37  ;;  %3318 = vmatpush1.bf16.msra.mxu1 %v8053_v60  ;;  %v8111_v37 = vld [vmem:[#allocation61_spill] sm:$0xff]  ;;  %v8112_v60 = vld [vmem:[#allocation62_spill] sm:$0xff] }
 0x917   :  { %3276 = vmatprep.subr.bf16.mxu0 %v8054_v52  ;;  %3319 = vmatprep.subr.bf16.mxu1 %v8055_v31  ;;  %v8113_v52 = vld [vmem:[#allocation63_spill] sm:$0xff]  ;;  %v8114_v31 = vld [vmem:[#allocation64_spill] sm:$0xff] }
 0x91a   :  { %3277 = vmatpush1.bf16.msra.mxu0 %v8056_v1  ;;  %3320 = vmatpush1.bf16.msra.mxu1 %v8057_v61  ;;  %v8115_v1 = vld [vmem:[#allocation66_spill] sm:$0xff]  ;;  %v8116_v61 = vld [vmem:[#allocation65_spill] sm:$0xff] }
 0x91b   :  { %3278 = vmatprep.subr.bf16.mxu0 %v8058_v2  ;;  %3321 = vmatprep.subr.bf16.mxu1 %v8059_v43  ;;  %v8117_v2 = vld [vmem:[#allocation67_spill] sm:$0xff]  ;;  %v8118_v43 = vld [vmem:[#allocation68_spill] sm:$0xff] }
 0x91e   :  { %3279 = vmatpush1.bf16.msra.mxu0 %v8060_v56  ;;  %3322 = vmatpush1.bf16.msra.mxu1 %v8061_v3  ;;  %v8119_v56 = vld [vmem:[#allocation69_spill] sm:$0xff]  ;;  %v8120_v3 = vld [vmem:[#allocation70_spill] sm:$0xff] }
 0x91f   :  { %3456 = vmatprep.subr.bf16.mxu0 %v8062_v36  ;;  %3499 = vmatprep.subr.bf16.mxu1 %v8063_v57  ;;  %v8121_v36 = vld [vmem:[#allocation71_spill] sm:$0xff]  ;;  %v8122_v57 = vld [vmem:[#allocation72_spill] sm:$0xff] }
 0x921   :  { %3281 = vmatmul.mubr.bf16.vlgmr.msra.gmra.mrb[84].mxu0 %v6640_v32  ;;  %3324 = vmatmul.mubr.bf16.vlgmr.msra.gmra.mrb[84].mxu1 %v6640_v32  ;;  %v8090_v32 = vld [vmem:[#allocation40_spill] sm:$0xff] }
 0x922   :  { %3457 = vmatpush1.bf16.msra.mxu0 %v8064_v17  ;;  %3500 = vmatpush1.bf16.msra.mxu1 %v8065_v30  ;;  %v8123_v17 = vld [vmem:[#allocation73_spill] sm:$0xff]  ;;  %v8124_v30 = vld [vmem:[#allocation74_spill] sm:$0xff] }
 0x923   :  { %3458 = vmatprep.subr.bf16.mxu0 %v8066_v34  ;;  %3501 = vmatprep.subr.bf16.mxu1 %v8067_v18  ;;  %v8125_v34 = vld [vmem:[#allocation75_spill] sm:$0xff] }
 0x926   :  { %3459 = vmatpush1.bf16.msra.mxu0 %v8068_v45  ;;  %3502 = vmatpush1.bf16.msra.mxu1 %v8069_v48  ;;  %v8126_v48 = vld [vmem:[#allocation202_spill] sm:$0xff] }
 0x927   :  { %3460 = vmatprep.subr.bf16.mxu0 %v8070_v62  ;;  %3503 = vmatprep.subr.bf16.mxu1 %v8071_v35 }
 0x92a   :  { %3461 = vmatpush1.bf16.msra.mxu0 %v8072_v33  ;;  %3504 = vmatpush1.bf16.msra.mxu1 %v8073_v13  ;;  %v8127_v13 = vld [vmem:[#allocation203_spill] sm:$0xff] }
 0x92b   :  { %3462 = vmatprep.subr.bf16.mxu0 %v8074_v40  ;;  %3505 = vmatprep.subr.bf16.mxu1 %v8075_v12 }
 0x92e   :  { %3463 = vmatpush1.bf16.msra.mxu0 %v8076_v47  ;;  %3506 = vmatpush1.bf16.msra.mxu1 %v8077_v27 }
 0x92f   :  { %3464 = vmatprep.subr.bf16.mxu0 %v8078_v5  ;;  %3507 = vmatprep.subr.bf16.mxu1 %v8079_v24 }
 0x932   :  { %3465 = vmatpush1.bf16.msra.mxu0 %v8080_v20  ;;  %3508 = vmatpush1.bf16.msra.mxu1 %v8081_v46 }
 0x933   :  { %3466 = vmatprep.subr.bf16.mxu0 %v8082_v6  ;;  %3509 = vmatprep.subr.bf16.mxu1 %v8083_v63 }
 0x936   :  { %3467 = vmatpush1.bf16.msra.mxu0 %v8084_v11  ;;  %3510 = vmatpush1.bf16.msra.mxu1 %v8085_v19  ;;  %v8128_v19 = vld [vmem:[#allocation204_spill] sm:$0xff] }
 0x937   :  { %3468 = vmatprep.subr.bf16.mxu0 %v8086_v14  ;;  %3511 = vmatprep.subr.bf16.mxu1 %v8087_v0  ;;  %v8129_v0 = vld [vmem:[#allocation205_spill] sm:$0xff] }
 0x93a   :  { %3469 = vmatpush1.bf16.msra.mxu0 %v8088_v39  ;;  %3512 = vmatpush1.bf16.msra.mxu1 %v8089_v21 }
 0x93b   :  { %3470 = vmatprep.subr.bf16.mxu0 %v8090_v32  ;;  %3513 = vmatprep.subr.bf16.mxu1 %v8091_v7 }
 0x93e   :  { %3471 = vmatpush1.bf16.msra.mxu0 %v8092_v10  ;;  %3514 = vmatpush1.bf16.msra.mxu1 %v8093_v22 }
 0x93f   :  { %3472 = vmatprep.subr.bf16.mxu0 %v8094_v53  ;;  %3515 = vmatprep.subr.bf16.mxu1 %v8095_v8 }
 0x942   :  { %3473 = vmatpush1.bf16.msra.mxu0 %v8096_v23  ;;  %3516 = vmatpush1.bf16.msra.mxu1 %v8097_v41 }
 0x943   :  { %3474 = vmatprep.subr.bf16.mxu0 %v8098_v44  ;;  %3517 = vmatprep.subr.bf16.mxu1 %v8099_v15 }
 0x946   :  { %3475 = vmatpush1.bf16.msra.mxu0 %v8100_v58  ;;  %3518 = vmatpush1.bf16.msra.mxu1 %v8101_v28 }
 0x947   :  { %3476 = vmatprep.subr.bf16.mxu0 %v8102_v4  ;;  %3519 = vmatprep.subr.bf16.mxu1 %v8103_v49 }
 0x94a   :  { %3477 = vmatpush1.bf16.msra.mxu0 %v8104_v50  ;;  %3520 = vmatpush1.bf16.msra.mxu1 %v8105_v25 }
 0x94b   :  { %3478 = vmatprep.subr.bf16.mxu0 %v8106_v16  ;;  %3521 = vmatprep.subr.bf16.mxu1 %v8107_v26 }
 0x94e   :  { %3479 = vmatpush1.bf16.msra.mxu0 %v8108_v29  ;;  %3522 = vmatpush1.bf16.msra.mxu1 %v8109_v38  ;;  %v8130_v29 = vld [vmem:[#allocation126_spill] sm:$0xff] }
 0x94f   :  { %3480 = vmatprep.subr.bf16.mxu0 %v8110_v9  ;;  %3523 = vmatprep.subr.bf16.mxu1 %v8111_v37 }
 0x952   :  { %3481 = vmatpush1.bf16.msra.mxu0 %v8112_v60  ;;  %3524 = vmatpush1.bf16.msra.mxu1 %v8113_v52 }
 0x953   :  { %3482 = vmatprep.subr.bf16.mxu0 %v8114_v31  ;;  %3525 = vmatprep.subr.bf16.mxu1 %v8115_v1 }
 0x956   :  { %3483 = vmatpush1.bf16.msra.mxu0 %v8116_v61  ;;  %3526 = vmatpush1.bf16.msra.mxu1 %v8117_v2  ;;  %v8131_v61 = vld [vmem:[#allocation125_spill] sm:$0xff] }
 0x957   :  { %3484 = vmatprep.subr.bf16.mxu0 %v8118_v43  ;;  %3527 = vmatprep.subr.bf16.mxu1 %v8119_v56 }
 0x95a   :  { %3485 = vmatpush1.bf16.msra.mxu0 %v8120_v3  ;;  %3528 = vmatpush1.bf16.msra.mxu1 %v8121_v36 }
 0x95b   :  { %3486 = vmatprep.subr.bf16.mxu0 %v8122_v57  ;;  %3529 = vmatprep.subr.bf16.mxu1 %v8123_v17 }
 0x95e   :  { %3487 = vmatpush1.bf16.msra.mxu0 %v8124_v30  ;;  %3530 = vmatpush1.bf16.msra.mxu1 %v8125_v34 }
 0x9b4   :  { %v3196_v18 = vpop.f32.mrb[80].mxu0  ;;  %v3239_v45 = vpop.f32.mrb[80].mxu1 }
 0x9b5   :  { %v3334_v62 = vadd.f32 %v3196_v18, %v8126_v48  ;;  %v3198_v35 = vpop.f32.mrb[81].mxu0  ;;  %v3241_v33 = vpop.f32.mrb[81].mxu1  ;;  %v3336_v39 = vadd.f32 %v3239_v45, %v8129_v0  ;;  %v8132_v18 = vld [vmem:[#allocation80_spill] sm:$0xff]  ;;  %v8133_v45 = vld [vmem:[#allocation194_spill] sm:$0xff] }
 0x9b6   :  { %v3335_v40 = vadd.f32 %v3198_v35, %v8127_v13  ;;  %v3200_v12 = vpop.f32.mrb[82].mxu0  ;;  %v3243_v47 = vpop.f32.mrb[82].mxu1  ;;  %v3337_v14 = vadd.f32 %v3241_v33, %v8128_v19  ;;  %v8134_v35 = vld [vmem:[#allocation196_spill] sm:$0xff] }
 0x9b7   :  { %v4055_v27 = vmul.f32 -1.442695, %v3334_v62  ;;  %v3338_v5 = vadd.f32 %v3200_v12, %v8126_v48  ;;  %v3202_v24 = vpop.f32.mrb[83].mxu0  ;;  %v3245_v20 = vpop.f32.mrb[83].mxu1  ;;  %v3340_v7 = vadd.f32 %v3243_v47, %v8129_v0  ;;  %v307_v62 = vadd.f32 %v8133_v45, %v8132_v18  ;;  %v8136_v47 = vld [vmem:[#allocation197_spill] sm:$0xff] }
 0x9b8   :  { %v4057_v46 = vmul.f32 -1.442695, %v3335_v40  ;;  %v3339_v6 = vadd.f32 %v3202_v24, %v8127_v13  ;;  %v4059_v21 = vmul.f32 -1.442695, %v3337_v14  ;;  %v3341_v32 = vadd.f32 %v3245_v20, %v8128_v19  ;;  %v8135_v40 = vld [vmem:[#allocation195_spill] sm:$0xff]  ;;  %v8137_v20 = vld [vmem:[#allocation198_spill] sm:$0xff] }
 0x9b9   :  { %4678 = vpow2.f32 %v4055_v27  ;;  %v4056_v63 = vmul.f32 -1.442695, %v3338_v5  ;;  %v468_v33 = vadd.f32 %v8134_v35, %v7457_v59  ;;  %v309_v12 = vadd.f32 %v8135_v40, %v7459_v42 }
 0x9ba   :  { %4680 = vpow2.f32 %v4057_v46  ;;  %v4058_v11 = vmul.f32 -1.442695, %v3339_v6  ;;  %v4060_v8 = vmul.f32 -1.442695, %v3341_v32  ;;  %v470_v27 = vadd.f32 %v8136_v47, %v7461_v54  ;;  %v8138_v6 = vld [vmem:[#allocation200_spill] sm:$0xff]  ;;  %v8139_v32 = vld [vmem:[#allocation199_spill] sm:$0xff] }
 0x9bb   :  { %4682 = vpow2.f32 %v4056_v63  ;;  %v313_v46 = vadd.f32 %v8137_v20, %v8132_v18  ;;  %v474_v63 = vadd.f32 %v8138_v6, %v7457_v59 }
 0x9bc   :  { %4684 = vpow2.f32 %v4058_v11 }
 0x9bd   :  { %4686 = vtanh.f32 %v3336_v39 }
 0x9be   :  { %4688 = vpow2.f32 %v4059_v21 }
 0x9bf   :  { %4690 = vtanh.f32 %v3340_v7  ;;  %v315_v7 = vadd.f32 %v8139_v32, %v7459_v42  ;;  %v3603_v32 = vld [vmem:[#allocation6 + $0x28] sm:$0xff] }
 0x9c3   :  { %v4679_v10 = vpop.eup %4678 }
 0x9c4   :  { %v4681_v22 = vpop.eup %4680  ;;  %v3348_v53 = vadd.f32 1.0, %v4679_v10  ;;  %v8140_v10 = vld [vmem:[#allocation201_spill] sm:$0xff] }
 0x9c5   :  { %v3360_v23 = vadd.f32 1.0, %v4681_v22  ;;  %v4683_v41 = vpop.eup %4682  ;;  %v476_v22 = vadd.f32 %v8140_v10, %v7461_v54  ;;  %v3604_v10 = vld [vmem:[#allocation6 + $0x30] sm:$0xff] }
 0x9c6   :  { %4692 = vrcp.f32 %v3348_v53  ;;  %v3349_v44 = vadd.f32 1.0, %v4683_v41  ;;  %v4685_v15 = vpop.eup %4684 }
 0x9c7   :  { %4694 = vrcp.f32 %v3360_v23  ;;  %v3361_v58 = vadd.f32 1.0, %v4685_v15  ;;  %v4687_v28 = vpop.eup %4686 }
 0x9c8   :  { %4696 = vpow2.f32 %v4060_v8  ;;  %v4689_v4 = vpop.eup %4688 }
 0x9c9   :  { %4698 = vrcp.f32 %v3349_v44  ;;  %v4691_v49 = vpop.eup %4690  ;;  %v3374_v37 = vadd.f32 1.0, %v4689_v4 }
 0x9ca   :  { %4700 = vrcp.f32 %v3361_v58 }
 0x9cb   :  { %4702 = vrcp.f32 %v3374_v37 }
 0x9d0   :  { %v4693_v50 = vpop.eup %4692 }
 0x9d1   :  { %v4695_v25 = vpop.eup %4694  ;;  %v3382_v16 = vmul.f32 %v4693_v50, %v4687_v28 }
 0x9d2   :  { %v4697_v26 = vpop.eup %4696  ;;  %v3380_v38 = vmul.f32 %v4695_v25, %v8130_v29 }
 0x9d3   :  { %v4699_v9 = vpop.eup %4698  ;;  %v3375_v1 = vadd.f32 1.0, %v4697_v26 }
 0x9d4   :  { %v6783_v60 = vadd.f32 %v3382_v16, %v3380_v38  ;;  %v3383_v52 = vmul.f32 %v4699_v9, %v4691_v49  ;;  %v4701_v31 = vpop.eup %4700 }
 0x9d5   :  { %v3381_v2 = vmul.f32 %v4701_v31, %v8131_v61  ;;  %v4703_v56 = vpop.eup %4702 }
 0x9d6   :  { %4704 = vtanh.f32 %v6783_v60 }
 0x9d7   :  { %v6786_v43 = vadd.f32 %v3383_v52, %v3381_v2  ;;  %4706 = vrcp.f32 %v3375_v1 }
 0x9d9   :  { %4708 = vtanh.f32 %v6786_v43 }
 0x9e0   :  { %v4705_v3 = vpop.eup %4704 }
 0x9e1   :  { %v4707_v36 = vpop.eup %4706  ;;  %v3388_v17 = vmul.f32 %v4705_v3, %v4703_v56 }
 0x9e3   :  { %v4709_v57 = vpop.eup %4708 }
 0x9e4   :  { %v3389_v30 = vmul.f32 %v4709_v57, %v4707_v36 }
 0x9e6   :  { %v3455_v34 = vpack.c.bf16 %v3389_v30, %v3388_v17 }
 0x9e8   :  { %3488 = vmatprep.mubr.bf16.mxu0 %v3455_v34  ;;  %3531 = vmatprep.mubr.bf16.mxu1 %v3455_v34 }
 0x9f4   :  { %v3282_v5 = vpop.f32.mrb[84].mxu0  ;;  %v3325_v24 = vpop.f32.mrb[84].mxu1 }
 0x9f5   :  { %v3398_v11 = vadd.f32 %v3282_v5, %v307_v62  ;;  %v3400_v14 = vadd.f32 %v3325_v24, %v468_v33  ;;  %v3284_v39 = vpop.f32.mrb[85].mxu0  ;;  %v3327_v21 = vpop.f32.mrb[85].mxu1 }
 0x9f6   :  { %v3399_v53 = vadd.f32 %v3284_v39, %v309_v12  ;;  %v3401_v8 = vadd.f32 %v3327_v21, %v470_v27  ;;  %v3286_v23 = vpop.f32.mrb[86].mxu0  ;;  %v3329_v41 = vpop.f32.mrb[86].mxu1  ;;  %v3601_v39 = vld [vmem:[#allocation6 + $0x18] sm:$0xff]  ;;  %v3602_v21 = vld [vmem:[#allocation6 + $0x20] sm:$0xff] }
 0x9f7   :  { %v4061_v44 = vmul.f32 -1.442695, %v3398_v11  ;;  %v3402_v15 = vadd.f32 %v3286_v23, %v313_v46  ;;  %v3404_v58 = vadd.f32 %v3329_v41, %v474_v63  ;;  %v3288_v28 = vpop.f32.mrb[87].mxu0  ;;  %v3331_v4 = vpop.f32.mrb[87].mxu1  ;;  %v3599_v63 = vld [vmem:[#allocation6 + $0x8] sm:$0xff] }
 0x9f8   :  { %v4063_v59 = vmul.f32 -1.442695, %v3399_v53  ;;  %v3403_v49 = vadd.f32 %v3288_v28, %v315_v7  ;;  %v3405_v50 = vadd.f32 %v3331_v4, %v476_v22  ;;  %v4065_v42 = vmul.f32 -1.442695, %v3401_v8  ;;  %v3605_v22 = vld [vmem:[#allocation6 + $0x38] sm:$0xff]  ;;  %v3606_v8 = vld [vmem:[#allocation6 + $0x40] sm:$0xff] }
 0x9f9   :  { %4710 = vpow2.f32 %v4061_v44  ;;  %v4062_v25 = vmul.f32 -1.442695, %v3402_v15  ;;  %v4197_v7 = vpack.c.bf16 %v3603_v32, %v3602_v21  ;;  %v4201_v53 = vpack.c.bf16 %v3605_v22, %v3604_v10  ;;  %v3607_v23 = vld [vmem:[#allocation6 + $0x48] sm:$0xff]  ;;  %v3608_v44 = vld [vmem:[#allocation6 + $0x50] sm:$0xff]  ;;  %v3609_v15 = vld [vmem:[#allocation6 + $0x58] sm:$0xff] }
 0x9fa   :  { %4712 = vpow2.f32 %v4063_v59  ;;  %v4064_v16 = vmul.f32 -1.442695, %v3403_v49  ;;  %v4066_v38 = vmul.f32 -1.442695, %v3405_v50  ;;  %v4205_v41 = vpack.c.bf16 %v3607_v23, %v3606_v8  ;;  %v3611_v4 = vld [vmem:[#allocation6 + $0x68] sm:$0xff]  ;;  %v3612_v49 = vld [vmem:[#allocation6 + $0x70] sm:$0xff] }
 0x9fb   :  { %4714 = vpow2.f32 %v4062_v25  ;;  %v4209_v28 = vpack.c.bf16 %v3609_v15, %v3608_v44  ;;  %v3613_v50 = vld [vmem:[#allocation6 + $0x78] sm:$0xff] }
 0x9fc   :  { %4716 = vpow2.f32 %v4064_v16  ;;  %v4217_v25 = vpack.c.bf16 %v3613_v50, %v3612_v49  ;;  %v3698_v16 = vld [vmem:[%s6894_s7] sm:$0xff] }
 0x9fd   :  { %4718 = vtanh.f32 %v3400_v14  ;;  %v3600_v14 = vld [vmem:[#allocation6 + $0x10] sm:$0xff] }
 0x9fe   :  { %4720 = vpow2.f32 %v4065_v42  ;;  %v3699_v42 = vld [vmem:[%s6894_s7 + $0x8] sm:$0xff] }
 0x9ff   :  { %4722 = vtanh.f32 %v3404_v58  ;;  %v3610_v58 = vld [vmem:[#allocation6 + $0x60] sm:$0xff] }
 0xa00   :  { %v4213_v59 = vpack.c.bf16 %v3611_v4, %v3610_v58 }
 0xa03   :  { %v4711_v54 = vpop.eup %4710 }
 0xa04   :  { %v4713_v26 = vpop.eup %4712  ;;  %v3412_v29 = vadd.f32 1.0, %v4711_v54  ;;  %v3700_v54 = vld [vmem:[%s6894_s7 + $0x10] sm:$0xff] }
 0xa05   :  { %v3424_v9 = vadd.f32 1.0, %v4713_v26  ;;  %v4715_v37 = vpop.eup %4714  ;;  %v4221_v26 = vpack.c.bf16 %v3699_v42, %v3698_v16 }
 0xa06   :  { %4724 = vrcp.f32 %v3412_v29  ;;  %v3413_v52 = vadd.f32 1.0, %v4715_v37  ;;  %v4717_v31 = vpop.eup %4716  ;;  %v3701_v29 = vld [vmem:[%s6894_s7 + $0x18] sm:$0xff]  ;;  %v3703_v37 = vld [vmem:[%s6894_s7 + $0x28] sm:$0xff] }
 0xa07   :  { %4726 = vrcp.f32 %v3424_v9  ;;  %v3425_v1 = vadd.f32 1.0, %v4717_v31  ;;  %v4719_v61 = vpop.eup %4718  ;;  %v3702_v9 = vld [vmem:[%s6894_s7 + $0x20] sm:$0xff]  ;;  %4222 = vmatprep.subr.bf16.mxu1 %v4221_v26  ;;  %v3704_v31 = vld [vmem:[%s6894_s7 + $0x30] sm:$0xff] }
 0xa08   :  { %4728 = vpow2.f32 %v4066_v38  ;;  %v4721_v2 = vpop.eup %4720  ;;  %v4225_v38 = vpack.c.bf16 %v3701_v29, %v3700_v54 }
 0xa09   :  { %4730 = vrcp.f32 %v3413_v52  ;;  %v4723_v56 = vpop.eup %4722  ;;  %v3438_v17 = vadd.f32 1.0, %v4721_v2  ;;  %v4229_v52 = vpack.c.bf16 %v3703_v37, %v3702_v9  ;;  %v3706_v2 = vld [vmem:[%s6894_s7 + $0x40] sm:$0xff] }
 0xa0a   :  { %4732 = vrcp.f32 %v3425_v1  ;;  %v3705_v1 = vld [vmem:[%s6894_s7 + $0x38] sm:$0xff] }
 0xa0b   :  { %4734 = vrcp.f32 %v3438_v17 }
 0xa10   :  { %v4725_v3 = vpop.eup %4724 }
 0xa11   :  { %v4727_v36 = vpop.eup %4726  ;;  %v3446_v57 = vmul.f32 %v4725_v3, %v4719_v61  ;;  %v4233_v61 = vpack.c.bf16 %v3705_v1, %v3704_v31 }
 0xa12   :  { %v4729_v30 = vpop.eup %4728  ;;  %v3444_v34 = vmul.f32 %v4727_v36, %v6633_v51  ;;  %v3598_v51 = vld [vmem:[#allocation6] sm:$0xff]  ;;  %v3708_v36 = vld [vmem:[%s6894_s7 + $0x50] sm:$0xff] }
 0xa13   :  { %v4731_v18 = vpop.eup %4730  ;;  %v3439_v33 = vadd.f32 1.0, %v4729_v30  ;;  %v4189_v11 = vpack.c.bf16 %v3599_v63, %v3598_v51  ;;  %v3710_v30 = vld [vmem:[%s6894_s7 + $0x60] sm:$0xff] }
 0xa14   :  { %v3448_v45 = vadd.f32 %v3446_v57, %v3444_v34  ;;  %v3447_v62 = vmul.f32 %v4731_v18, %v4723_v56  ;;  %v4733_v35 = vpop.eup %4732  ;;  %v3707_v56 = vld [vmem:[%s6894_s7 + $0x48] sm:$0xff]  ;;  %v3709_v57 = vld [vmem:[%s6894_s7 + $0x58] sm:$0xff] }
 0xa15   :  { %v3445_v40 = vmul.f32 %v4733_v35, %v6637_v55  ;;  %v4735_v47 = vpop.eup %4734  ;;  %4190 = vmatprep.subr.bf16.mxu0 %v4189_v11  ;;  %v4193_v55 = vpack.c.bf16 %v3601_v39, %v3600_v14  ;;  %v4237_v3 = vpack.c.bf16 %v3707_v56, %v3706_v2  ;;  %v4241_v17 = vpack.c.bf16 %v3709_v57, %v3708_v36  ;;  %v3711_v34 = vld [vmem:[%s6894_s7 + $0x68] sm:$0xff]  ;;  %v4073_v2 = vld [vmem:[%s6893_s6] ss:$0 sm:$0xff] }
 0xa16   :  { %4736 = vtanh.f32 %v3448_v45  ;;  %v4245_v18 = vpack.c.bf16 %v3711_v34, %v3710_v30  ;;  %v4074_v34 = vld [vmem:[%s6895_s8] ss:$0 sm:$0xff] }
 0xa17   :  { %v3449_v12 = vadd.f32 %v3447_v62, %v3445_v40  ;;  %4738 = vrcp.f32 %v3439_v33 }
 0xa19   :  { %4740 = vtanh.f32 %v3449_v12 }
 0xa20   :  { %v4737_v27 = vpop.eup %4736 }
 0xa21   :  { %v3452_v5 = vmul.f32 %v4737_v27, %v4735_v47  ;;  %v4739_v24 = vpop.eup %4738 }
 0xa23   :  { %v4741_v20 = vpop.eup %4740 }
 0xa24   :  { %v3453_v46 = vmul.f32 %v4741_v20, %v4739_v24 }
 0xa26   :  { %v3454_v6 = vpack.c.bf16 %v3453_v46, %v3452_v5 }
 0xa28   :  { %3489 = vmatmul.mubr.bf16.vlgmr.msra.gmra.mrb[88].mxu0 %v3454_v6  ;;  %3532 = vmatmul.mubr.bf16.vlgmr.msra.gmra.mrb[88].mxu1 %v3454_v6 }
 0xa29   :  { %4192 = vmatpush3.bf16.msra.mxu0 %v4189_v11  ;;  %4224 = vmatpush3.bf16.msra.mxu1 %v4221_v26 }
 0xa2a   :  { %4194 = vmatprep.subr.bf16.mxu0 %v4193_v55  ;;  %4226 = vmatprep.subr.bf16.mxu1 %v4225_v38 }
 0xa2d   :  { %4196 = vmatpush3.bf16.msra.mxu0 %v4193_v55  ;;  %4228 = vmatpush3.bf16.msra.mxu1 %v4225_v38 }
 0xa2e   :  { %4198 = vmatprep.subr.bf16.mxu0 %v4197_v7  ;;  %4230 = vmatprep.subr.bf16.mxu1 %v4229_v52 }
 0xa31   :  { %4200 = vmatpush3.bf16.msra.mxu0 %v4197_v7  ;;  %4232 = vmatpush3.bf16.msra.mxu1 %v4229_v52 }
 0xa32   :  { %4202 = vmatprep.subr.bf16.mxu0 %v4201_v53  ;;  %4234 = vmatprep.subr.bf16.mxu1 %v4233_v61 }
 0xa35   :  { %4204 = vmatpush3.bf16.msra.mxu0 %v4201_v53  ;;  %4236 = vmatpush3.bf16.msra.mxu1 %v4233_v61 }
 0xa36   :  { %4206 = vmatprep.subr.bf16.mxu0 %v4205_v41  ;;  %4238 = vmatprep.subr.bf16.mxu1 %v4237_v3 }
 0xa39   :  { %4208 = vmatpush3.bf16.msra.mxu0 %v4205_v41  ;;  %4240 = vmatpush3.bf16.msra.mxu1 %v4237_v3 }
 0xa3a   :  { %4210 = vmatprep.subr.bf16.mxu0 %v4209_v28  ;;  %4242 = vmatprep.subr.bf16.mxu1 %v4241_v17 }
 0xa3d   :  { %4212 = vmatpush3.bf16.msra.mxu0 %v4209_v28  ;;  %4244 = vmatpush3.bf16.msra.mxu1 %v4241_v17 }
 0xa3e   :  { %4214 = vmatprep.subr.bf16.mxu0 %v4213_v59  ;;  %4246 = vmatprep.subr.bf16.mxu1 %v4245_v18 }
 0xa41   :  { %4216 = vmatpush3.bf16.msra.mxu0 %v4213_v59  ;;  %4248 = vmatpush3.bf16.msra.mxu1 %v4245_v18 }
 0xa42   :  { %4218 = vmatprep.subr.bf16.mxu0 %v4217_v25 }
 0xa45   :  { %4220 = vmatpush3.bf16.msra.mxu0 %v4217_v25 }
 0xafb   :  { %v3490_v45 = vpop.f32.mrb[88].mxu0  ;;  %v3533_v62 = vpop.f32.mrb[88].mxu1 }
 0xafc   :  { %v3542_v35 = vadd.f32 %v3490_v45, %v8126_v48  ;;  %v3492_v33 = vpop.f32.mrb[89].mxu0  ;;  %v3535_v40 = vpop.f32.mrb[89].mxu1  ;;  %v3544_v39 = vadd.f32 %v3533_v62, %v8129_v0 }
 0xafd   :  { %v3543_v12 = vadd.f32 %v3492_v33, %v8127_v13  ;;  %v3494_v47 = vpop.f32.mrb[90].mxu0  ;;  %v3537_v27 = vpop.f32.mrb[90].mxu1  ;;  %v3545_v14 = vadd.f32 %v3535_v40, %v8128_v19 }
 0xafe   :  { %v4067_v5 = vmul.f32 -1.442695, %v3542_v35  ;;  %v3546_v24 = vadd.f32 %v3494_v47, %v8126_v48  ;;  %v3496_v20 = vpop.f32.mrb[91].mxu0  ;;  %v3539_v46 = vpop.f32.mrb[91].mxu1  ;;  %v3548_v48 = vadd.f32 %v3537_v27, %v8129_v0 }
 0xaff   :  { %v4069_v6 = vmul.f32 -1.442695, %v3543_v12  ;;  %v3547_v51 = vadd.f32 %v3496_v20, %v8127_v13  ;;  %v4071_v55 = vmul.f32 -1.442695, %v3545_v14  ;;  %v3549_v21 = vadd.f32 %v3539_v46, %v8128_v19 }
 0xb00   :  { %4742 = vpow2.f32 %v4067_v5  ;;  %v4068_v63 = vmul.f32 -1.442695, %v3546_v24 }
 0xb01   :  { %4744 = vpow2.f32 %v4069_v6  ;;  %v4070_v11 = vmul.f32 -1.442695, %v3547_v51  ;;  %v4072_v13 = vmul.f32 -1.442695, %v3549_v21 }
 0xb02   :  { %4746 = vpow2.f32 %v4068_v63 }
 0xb03   :  { %4748 = vpow2.f32 %v4070_v11 }
 0xb04   :  { %4750 = vtanh.f32 %v3544_v39 }
 0xb05   :  { %4752 = vpow2.f32 %v4071_v55 }
 0xb06   :  { %4754 = vtanh.f32 %v3548_v48 }
 0xb0a   :  { %v4743_v32 = vpop.eup %4742 }
 0xb0b   :  { %v4745_v7 = vpop.eup %4744  ;;  %v3556_v10 = vadd.f32 1.0, %v4743_v32 }
 0xb0c   :  { %v3568_v22 = vadd.f32 1.0, %v4745_v7  ;;  %v4747_v53 = vpop.eup %4746 }
 0xb0d   :  { %4756 = vrcp.f32 %v3556_v10  ;;  %v3557_v8 = vadd.f32 1.0, %v4747_v53  ;;  %v4749_v23 = vpop.eup %4748 }
 0xb0e   :  { %4758 = vrcp.f32 %v3568_v22  ;;  %v3569_v41 = vadd.f32 1.0, %v4749_v23  ;;  %v4751_v19 = vpop.eup %4750 }
 0xb0f   :  { %4760 = vpow2.f32 %v4072_v13  ;;  %v4753_v44 = vpop.eup %4752 }
 0xb10   :  { %4762 = vrcp.f32 %v3557_v8  ;;  %v4755_v0 = vpop.eup %4754  ;;  %v3582_v4 = vadd.f32 1.0, %v4753_v44 }
 0xb11   :  { %4764 = vrcp.f32 %v3569_v41 }
 0xb12   :  { %4766 = vrcp.f32 %v3582_v4 }
 0xb17   :  { %v4757_v15 = vpop.eup %4756 }
 0xb18   :  { %v4759_v58 = vpop.eup %4758  ;;  %v3590_v28 = vmul.f32 %v4757_v15, %v4751_v19 }
 0xb19   :  { %v4761_v59 = vpop.eup %4760  ;;  %v3588_v49 = vmul.f32 %v4759_v58, %v6783_v60  ;;  %v3712_v60 = vld [vmem:[%s6894_s7 + $0x70] sm:$0xff] }
 0xb1a   :  { %v4763_v50 = vpop.eup %4762  ;;  %v3583_v54 = vadd.f32 1.0, %v4761_v59 }
 0xb1b   :  { %v3591_v25 = vmul.f32 %v4763_v50, %v4755_v0  ;;  %v3592_v16 = vadd.f32 %v3590_v28, %v3588_v49  ;;  %v4765_v42 = vpop.eup %4764 }
 0xb1c   :  { %v3589_v26 = vmul.f32 %v4765_v42, %v6786_v43  ;;  %v4767_v38 = vpop.eup %4766  ;;  %v3713_v43 = vld [vmem:[%s6894_s7 + $0x78] sm:$0xff]  ;;  %s4854_s7 = smov [#allocation8]  }
 0xb1d   :  { %4768 = vtanh.f32 %v3592_v16  ;;  %v4249_v61 = vpack.c.bf16 %v3713_v43, %v3712_v60  ;;  %s3804_s30 = sshll.u32 %s4854_s7, 4  ;;  %s3805_s30 = int_to_ptr.vmem [resolvable:$true] %s3804_s30 }
 0xb1e   :  { %v3593_v29 = vadd.f32 %v3591_v25, %v3589_v26  ;;  %4770 = vrcp.f32 %v3583_v54  ;;  %s4818_s6 = scalar_lea.vmem %s3805_s30, 256  ;;  %p4823_p3 = scmp.lt.s32.totalorder %s3805_s30, %s3805_s30 }
 0xb1f   :  { %4250 = vmatprep.subr.bf16.mxu1 %v4249_v61  ;;  %p4819_p2 = scmp.ne.s32.totalorder %s3805_s30, %s4818_s6  ;;  %p4824_p4 = scmp.lt.s32.totalorder %s4818_s6, %s4818_s6 }
 0xb20   :  { %4772 = vtanh.f32 %v3593_v29  ;;  %4252 = vmatpush3.bf16.msra.mxu1 %v4249_v61 }
 0xb21   :  { %p4825_p5 = por %p4824_p4, %p4823_p3 }
 0xb23   :  { %p4826_p6 = pnand %p4825_p5, %p4819_p2 }
 0xb27   :  { %v4769_v9 = vpop.eup %4768 }
 0xb28   :  { %v3596_v37 = vmul.f32 %v4769_v9, %v4767_v38  ;;  %v4771_v52 = vpop.eup %4770 }
 0xb2a   :  { %4143 = vmatprep.mubr.f32.mxu0 %v3596_v37  ;;  %v4773_v31 = vpop.eup %4772 }
 0xb2b   :  { %v3597_v1 = vmul.f32 %v4773_v31, %v4771_v52 }
 0xb2d   :  { %4144 = vmatmul.mubr.f32.vlgmr.msra.gmra.mrb[92].mxu0 %v3597_v1 }
 0xc00   :  { %v4145_v56 = vpop.f32.mrb[92].mxu0 }
 0xc01   :  { %v3693_v3 = vadd.f32 %v4145_v56, %v4073_v2  ;;  %v3687_v36 = vpop.f32.mrb[93].mxu0 }
 0xc02   :  { %v3688_v57 = vadd.f32 %v4073_v2, %v3687_v36 }
 0xc03   :  { %v3697_v30 = vmax.f32 %v3693_v3, 0.0 }
 0xc04   :  { %v3696_v17 = vmax.f32 %v3688_v57, 0.0 }
 0xc06   :  { %4178 = vmatprep.mubr.f32.mxu1 %v3696_v17 }
 0xc07   :  { %4179 = vmatmul.mubr.f32.vlgmr.msra.gmra.mrb[92].mxu1 %v3697_v30 }
 0xcda   :  { %v4180_v18 = vpop.f32.mrb[92].mxu1 }
 0xcdb   :  { %v3793_v45 = vadd.f32 %v4180_v18, %v4074_v34  ;;  %v3787_v62 = vpop.f32.mrb[93].mxu1 }
 0xcdc   :  { %v3788_v35 = vadd.f32 %v4074_v34, %v3787_v62 }
 0xcdd   :  { %3798 = vst.msk [vmem:[#allocation8 + $0x8] sm:$0xff] %vm3796_vm1, %v3793_v45 }
 0xcde   :  { %3797 = vst.msk [vmem:[#allocation8] sm:$0xff] %vm3796_vm1, %v3788_v35 }
 0xcdf   :  { %4829 = shalt.err (!%p4826_p6)
}
 0xce0   :  { %s4830_s8 = scalar_lea.hbm %s6896_s9, 256 }
 0xce1   :  { %p4831_p7 = scmp.ne.s32.totalorder %s6896_s9, %s4830_s8  ;;  %p4834_p8 = scmp.lt.u32.totalorder %s4830_s8, %s6896_s9 }
 0xce3   :  { %p4836_p9 = pnand %p4834_p8, %p4831_p7 }
 0xce5   :  { %4839 = shalt.err (!%p4836_p9)
}
 0xce6   :  { %3810 = dma.vmem_to_hbm [thread:$0]  %s3805_s30, 256, %s6896_s9, [#allocation5], %s4850_s3, %s4850_s3, %s4851_s10  }
 0xce7   :  { %4844 = dma.done.wait [#allocation5], 256  }
 0xce8   :  { %4845 = vsyncadd [#allocation5], 4294967040 }
 0xce9   :  { %3814 = vsyncpa [#allocation4], 1 }
 0xcea   :  { %3815 = vsyncpa [#allocation7], 1 }
 0xceb   :  { %3816 = vsyncpa [#allocation5], 1 }

</bundles_post_ra>
